<compile_context>
chip_gen: v5e
topology: v5e:2x2
jax: 0.10.0
libtpu: 0.0.40
codegen_flags: <defaults>
</compile_context>

<pallas_src>
import functools

import jax
import jax.numpy as jnp
from jax.experimental import pallas as pl
from jax.experimental.pallas import tpu as pltpu


def _round_up(x, m):
    return (x + m - 1) // m * m


def _vmem_limit_bytes():
    """~75% of physical per-core VMEM (48 MiB on v7x, 96 MiB on v5e/v6e)."""
    try:
        cap = int(pltpu.get_tpu_info().vmem_capacity_bytes)
        cap = min(cap, 128 * 1024 * 1024)
    except Exception:
        cap = 64 * 1024 * 1024          # conservative (v7x-sized) fallback
    return (cap // 4) * 3


def _is_two_core_chip():
    """v7x has 2 TensorCores per chip; v5e/v6e have 1."""
    try:
        return "v7" in jax.devices()[0].device_kind.lower()
    except Exception:
        return False


# ----------------------------- fused kernel -------------------------------- #

def _make_lstm_model_kernel(num_layers, T, TB, H_pad, t_chunk, compute_dtype):
    """Fused kernel: all LSTM layers + final Linear, one batch tile per grid step.

    Ref order: x, (wih, whh, b) * num_layers, w_fc, b_fc, out, proj_scratch, hseq_scratch.
      x_ref:    (T, TB, D)        time-major input tile (f32)
      wih:      (D_in, 4*H_pad)   gate blocks [i|f|o|g], compute_dtype, VMEM-resident
      whh:      (H_pad, 4*H_pad)  compute_dtype, VMEM-resident
      b:        (1, 4*H_pad)      combined b_ih + b_hh (f32, added after f32 accum)
      w_fc:     (H_pad, O_pad) compute_dtype; b_fc: (1, O_pad) f32
      out_ref:  (TB, O_pad)       f32
      proj_ref: (t_chunk*TB, 4*H_pad) f32 scratch  (chunked input projection)
      hseq_ref: (T*TB, H_pad) compute_dtype scratch (inter-layer hidden sequence)
    """

    def kernel(*refs):
        x_ref = refs[0]
        idx = 1
        layer_refs = []
        for _ in range(num_layers):
            layer_refs.append((refs[idx], refs[idx + 1], refs[idx + 2]))
            idx += 3
        wfc_ref, bfc_ref = refs[idx], refs[idx + 1]
        out_ref = refs[idx + 2]
        proj_ref = refs[idx + 3]
        hseq_ref = refs[idx + 4]

        h = jnp.zeros((TB, H_pad), jnp.float32)
        for layer in range(num_layers):
            wih_ref, whh_ref, b_ref = layer_refs[layer]
            is_last = layer == num_layers - 1
            bias = b_ref[...]                              # (1, 4*H_pad) f32, hoisted

            h = jnp.zeros((TB, H_pad), jnp.float32)
            c = jnp.zeros((TB, H_pad), jnp.float32)

            for t0 in range(0, T, t_chunk):
                tc = min(t_chunk, T - t0)

                # (1) Chunked, hoisted input projection: one lane-dense bf16 MXU
                #     matmul per chunk (bias folded in); off the serial h-chain.
                if layer == 0:
                    lhs = x_ref[t0:t0 + tc].reshape(tc * TB, -1).astype(compute_dtype)
                else:
                    lhs = hseq_ref[t0 * TB:(t0 + tc) * TB]  # already compute_dtype
                proj_ref[0:tc * TB] = jnp.dot(
                    lhs, wih_ref[...], preferred_element_type=jnp.float32) + bias

                # (2) Serial recurrence over the chunk: only h @ W_hh on the MXU.
                def step(tl, carry, whh_ref=whh_ref, is_last=is_last, t0=t0):
                    h, c = carry
                    row0 = pl.multiple_of(tl * TB, TB)
                    gates = proj_ref[pl.ds(row0, TB)] + jnp.dot(
                        h.astype(compute_dtype), whh_ref[...],
                        preferred_element_type=jnp.float32)
                    # Gates repacked [i|f|o|g]: one wide sigmoid slab, then tanh.
                    sig = jax.nn.sigmoid(gates[:, :3 * H_pad])
                    i_g = sig[:, 0 * H_pad:1 * H_pad]
                    f_g = sig[:, 1 * H_pad:2 * H_pad]
                    o_g = sig[:, 2 * H_pad:3 * H_pad]
                    g_g = jnp.tanh(gates[:, 3 * H_pad:4 * H_pad])
                    c_new = f_g * c + i_g * g_g
                    h_new = o_g * jnp.tanh(c_new)
                    if not is_last:
                        # Intermediate layers: lane-dense store into VMEM scratch
                        # only (compute_dtype -- feeds the next layer's matmul).
                        dst = pl.multiple_of((t0 + tl) * TB, TB)
                        hseq_ref[pl.ds(dst, TB)] = h_new.astype(compute_dtype)
                    # Last layer: no per-step store; only the final h is needed.
                    return (h_new, c_new)

                unroll = True if tc <= 16 else 8
                h, c = jax.lax.fori_loop(0, tc, step, (h, c), unroll=unroll)

        # (3) Fused final Linear on the last hidden state (== fc(out[:, -1, :])).
        out_ref[...] = (jnp.dot(h.astype(compute_dtype), wfc_ref[...],
                                preferred_element_type=jnp.float32)
                        + bfc_ref[...]).astype(out_ref.dtype)

    return kernel


# ------------------------------- wrapper ------------------------------------ #

@functools.partial(jax.jit, static_argnames=("num_layers", "compute_dtype"))
def lstm_model_forward(x, params, *, num_layers, compute_dtype=jnp.bfloat16):
    """x: (B, T, input_size) batch-first, like the PyTorch module."""
    B, T, D = x.shape
    H = params["layers"][0][1].shape[0]        # whh is (H, 4H)
    O = params["fc"][0].shape[1]

    H_pad = _round_up(H, 128)                  # lane-align hidden size
    O_pad = _round_up(O, 128)                  # lane-dense final store

    # Batch tile: sublane-aligned. On 2-TC chips (v7x) prefer >=2 grid tiles so the
    # "parallel" batch axis shards across both TensorCores; on 1-TC chips (v5e/v6e)
    # keep one bigger tile, up to 256 rows for the 256-wide MXU.
    two_core = _is_two_core_chip()
    TB = min(_round_up(B, 8), 128 if two_core else 256)
    if two_core and B > 8 and B <= TB:
        TB = max(8, _round_up((B + 1) // 2, 8))
    B_pad = _round_up(B, TB)

    t_chunk = min(T, 32)                       # chunked input projection

    gate_perm = [0, 1, 3, 2]                   # [i, f, g, o] -> [i, f, o, g]

    # --- repack / zero-pad weights: gate blocks each padded to H_pad lanes -----
    padded_layers = []
    for layer in range(num_layers):
        wih, whh, b = params["layers"][layer]
        d_in = D if layer == 0 else H
        d_in_pad = D if layer == 0 else H_pad
        wih_r = wih.reshape(d_in, 4, H)[:, gate_perm, :]
        whh_r = whh.reshape(H, 4, H)[:, gate_perm, :]
        b_r = b.reshape(1, 4, H)[:, gate_perm, :]
        wih_p = jnp.zeros((d_in_pad, 4, H_pad), jnp.float32).at[:d_in, :, :H].set(wih_r)
        whh_p = jnp.zeros((H_pad, 4, H_pad), jnp.float32).at[:H, :, :H].set(whh_r)
        b_p = jnp.zeros((1, 4, H_pad), jnp.float32).at[:, :, :H].set(b_r)
        padded_layers.append(
            (wih_p.reshape(d_in_pad, 4 * H_pad).astype(compute_dtype),
             whh_p.reshape(H_pad, 4 * H_pad).astype(compute_dtype),
             b_p.reshape(1, 4 * H_pad)))        # bias stays f32 (added post-accum)
    w_fc, b_fc = params["fc"]
    wfc_p = jnp.zeros((H_pad, O_pad), jnp.float32).at[:H, :O].set(w_fc).astype(compute_dtype)
    bfc_p = jnp.zeros((1, O_pad), jnp.float32).at[:, :O].set(b_fc)

    # --- time-major input, batch padded to a multiple of the batch tile --------
    xs = jnp.transpose(x, (1, 0, 2))           # (T, B, D)
    if B_pad != B:
        xs = jnp.pad(xs, ((0, 0), (0, B_pad - B), (0, 0)))

    # Weights/biases: single VMEM-resident copy (identical for every batch tile,
    # so no double buffering is wasted on them).
    vmem_spec = pl.BlockSpec(memory_space=pltpu.MemorySpace.VMEM)

    in_specs = [pl.BlockSpec((T, TB, D), lambda b: (0, b, 0))]
    flat_inputs = [xs]
    for layer in range(num_layers):
        in_specs += [vmem_spec, vmem_spec, vmem_spec]
        flat_inputs += list(padded_layers[layer])
    in_specs += [vmem_spec, vmem_spec]
    flat_inputs += [wfc_p, bfc_p]

    hseq_rows = T * TB if num_layers > 1 else TB
    kernel = _make_lstm_model_kernel(num_layers, T, TB, H_pad, t_chunk, compute_dtype)
    out_padded = pl.pallas_call(
        kernel,
        out_shape=jax.ShapeDtypeStruct((B_pad, O_pad), jnp.float32),
        grid_spec=pltpu.PrefetchScalarGridSpec(
            num_scalar_prefetch=0,
            grid=(B_pad // TB,),
            in_specs=in_specs,
            out_specs=pl.BlockSpec((TB, O_pad), lambda b: (b, 0)),
            scratch_shapes=[pltpu.VMEM((t_chunk * TB, 4 * H_pad), jnp.float32),
                            pltpu.VMEM((hseq_rows, H_pad), compute_dtype)]),
        compiler_params=pltpu.CompilerParams(
            dimension_semantics=("parallel",),
            vmem_limit_bytes=_vmem_limit_bytes()),
    )(*flat_inputs)
    return out_padded[:B, :O]


# --------------------------- reference (pure JAX) --------------------------- #

def lstm_model_reference(x, params, num_layers):
    B = x.shape[0]
    seq = jnp.transpose(x, (1, 0, 2))
    for layer in range(num_layers):
        wih, whh, b = params["layers"][layer]
        H = whh.shape[0]
        h = jnp.zeros((B, H), jnp.float32)
        c = jnp.zeros((B, H), jnp.float32)
        outs = []
        for t in range(seq.shape[0]):
            gates = seq[t] @ wih + h @ whh + b
            i_g = jax.nn.sigmoid(gates[:, 0 * H:1 * H])
            f_g = jax.nn.sigmoid(gates[:, 1 * H:2 * H])
            g_g = jnp.tanh(gates[:, 2 * H:3 * H])
            o_g = jax.nn.sigmoid(gates[:, 3 * H:4 * H])
            c = f_g * c + i_g * g_g
            h = o_g * jnp.tanh(c)
            outs.append(h)
        seq = jnp.stack(outs, axis=0)
    w_fc, b_fc = params["fc"]
    return seq[-1] @ w_fc + b_fc


# --------------------------------- params ----------------------------------- #

def init_params(key, input_size, hidden_size, num_layers, output_size):
    """Deterministic init matching PyTorch shapes (weights stored pre-transposed)."""
    bound = 1.0 / jnp.sqrt(hidden_size)
    layers = []
    for layer in range(num_layers):
        d_in = input_size if layer == 0 else hidden_size
        key, k1, k2, k3, k4 = jax.random.split(key, 5)
        # PyTorch: weight_ih_l{k} is (4H, d_in); we store the transpose (d_in, 4H).
        wih = jax.random.uniform(k1, (d_in, 4 * hidden_size), jnp.float32, -bound, bound)
        whh = jax.random.uniform(k2, (hidden_size, 4 * hidden_size), jnp.float32, -bound, bound)
        b_ih = jax.random.uniform(k3, (1, 4 * hidden_size), jnp.float32, -bound, bound)
        b_hh = jax.random.uniform(k4, (1, 4 * hidden_size), jnp.float32, -bound, bound)
        layers.append((wih, whh, b_ih + b_hh))
    key, k5, k6 = jax.random.split(key, 3)
    fc_bound = 1.0 / jnp.sqrt(hidden_size)
    w_fc = jax.random.uniform(k5, (hidden_size, output_size), jnp.float32, -fc_bound, fc_bound)
    b_fc = jax.random.uniform(k6, (1, output_size), jnp.float32, -fc_bound, fc_bound)
    return {"layers": layers, "fc": (w_fc, b_fc)}


# ---------------------------------- main ------------------------------------ #

if __name__ == "__main__":
    INPUT_SIZE = 4      # features per time step
    HIDDEN_SIZE = 32
    NUM_LAYERS = 2
    OUTPUT_SIZE = 1
    BATCH = 2
    SEQ = 8

    root = jax.random.PRNGKey(0)
    kx, kp = jax.random.split(root)

    x = jax.random.normal(kx, (BATCH, SEQ, INPUT_SIZE), jnp.float32)
    params = init_params(kp, INPUT_SIZE, HIDDEN_SIZE, NUM_LAYERS, OUTPUT_SIZE)

    out = lstm_model_forward(x, params, num_layers=NUM_LAYERS)
    out = jax.block_until_ready(out)

    ref = lstm_model_reference(x, params, NUM_LAYERS)
    assert out.shape == (BATCH, OUTPUT_SIZE), out.shape
    # bf16 MXU operands (f32 accumulation / f32 elementwise) -> relaxed tolerance.
    assert jnp.allclose(out, ref, rtol=2e-2, atol=2e-2), (out, ref)

    print("KERNEL_OK")
</pallas_src>

<mosaic_0001>
module attributes {stable_mosaic.version = 11 : i64} {
  func.func @kernel(%arg0: i32, %arg1: memref<8x8x4xf32, #tpu.memory_space<vmem>>, %arg2: memref<4x512xbf16, #tpu.memory_space<vmem>>, %arg3: memref<128x512xbf16, #tpu.memory_space<vmem>>, %arg4: memref<1x512xf32, #tpu.memory_space<vmem>>, %arg5: memref<128x512xbf16, #tpu.memory_space<vmem>>, %arg6: memref<128x512xbf16, #tpu.memory_space<vmem>>, %arg7: memref<1x512xf32, #tpu.memory_space<vmem>>, %arg8: memref<128x128xbf16, #tpu.memory_space<vmem>>, %arg9: memref<1x128xf32, #tpu.memory_space<vmem>>, %arg10: memref<8x128xf32, #tpu.memory_space<vmem>>, %arg11: memref<64x512xf32, #tpu.memory_space<vmem>>, %arg12: memref<64x128xbf16, #tpu.memory_space<vmem>>) attributes {dimension_semantics = [#tpu.dimension_semantics<parallel>], iteration_bounds = array<i64: 1>, scalar_prefetch = 0 : i64, scratch_operands = 2 : i64, tpu.core_type = #tpu.core_type<tc>, window_params = [{transform_indices = @transform_0, window_bounds = array<i64: 8, 8, 4>}, {pipeline_mode = #tpu.pipeline_mode<synchronous>, transform_indices = @transform_1, window_bounds = array<i64: 4, 512>}, {pipeline_mode = #tpu.pipeline_mode<synchronous>, transform_indices = @transform_2, window_bounds = array<i64: 128, 512>}, {pipeline_mode = #tpu.pipeline_mode<synchronous>, transform_indices = @transform_3, window_bounds = array<i64: 1, 512>}, {pipeline_mode = #tpu.pipeline_mode<synchronous>, transform_indices = @transform_4, window_bounds = array<i64: 128, 512>}, {pipeline_mode = #tpu.pipeline_mode<synchronous>, transform_indices = @transform_5, window_bounds = array<i64: 128, 512>}, {pipeline_mode = #tpu.pipeline_mode<synchronous>, transform_indices = @transform_6, window_bounds = array<i64: 1, 512>}, {pipeline_mode = #tpu.pipeline_mode<synchronous>, transform_indices = @transform_7, window_bounds = array<i64: 128, 128>}, {pipeline_mode = #tpu.pipeline_mode<synchronous>, transform_indices = @transform_8, window_bounds = array<i64: 1, 128>}, {transform_indices = @transform_9, window_bounds = array<i64: 8, 128>}]} {
    %c0 = arith.constant 0 : index
    %c0_0 = arith.constant 0 : index
    %0 = vector.load %arg4[%c0, %c0_0] : memref<1x512xf32, #tpu.memory_space<vmem>>, vector<1x512xf32>
    %cst = arith.constant 0.000000e+00 : f32
    %1 = vector.broadcast %cst : f32 to vector<8x128xf32>
    %cst_1 = arith.constant 0.000000e+00 : f32
    %2 = vector.broadcast %cst_1 : f32 to vector<8x128xf32>
    %c0_2 = arith.constant 0 : index
    %c0_3 = arith.constant 0 : index
    %c0_4 = arith.constant 0 : index
    %3 = vector.load %arg1[%c0_2, %c0_3, %c0_4] : memref<8x8x4xf32, #tpu.memory_space<vmem>>, vector<8x8x4xf32>
    %4 = vector.shape_cast %3 : vector<8x8x4xf32> to vector<64x4xf32>
    %5 = arith.truncf %4 : vector<64x4xf32> to vector<64x4xbf16>
    %c0_5 = arith.constant 0 : index
    %c0_6 = arith.constant 0 : index
    %6 = vector.load %arg2[%c0_5, %c0_6] : memref<4x512xbf16, #tpu.memory_space<vmem>>, vector<4x512xbf16>
    %cst_7 = arith.constant dense<0.000000e+00> : vector<64x512xf32>
    %7 = tpu.matmul %5, %6, %cst_7 {dimension_numbers = #tpu.dot_dimension_numbers<[1], [0], [0], [1], [0, 0, 1, 1], [], []>} : vector<64x4xbf16>, vector<4x512xbf16>, vector<64x512xf32> -> vector<64x512xf32>
    %8 = vector.broadcast %0 : vector<1x512xf32> to vector<64x512xf32>
    %9 = arith.addf %7, %8 : vector<64x512xf32>
    %c0_8 = arith.constant 0 : index
    %c0_9 = arith.constant 0 : index
    %10 = vector.load %arg11[%c0_8, %c0_9] : memref<64x512xf32, #tpu.memory_space<vmem>>, vector<64x512xf32>
    tpu.vector_store %arg11[%c0_8, %c0_9], %9 {strides = array<i32>} : memref<64x512xf32, #tpu.memory_space<vmem>>, vector<64x512xf32>,
    %c0_i32 = arith.constant 0 : i32
    %c8_i32 = arith.constant 8 : i32
    %11 = arith.muli %c0_i32, %c8_i32 : i32
    %12 = tpu.assume_multiple %11, 8 : i32
    %13 = arith.index_cast %12 : i32 to index
    %c0_10 = arith.constant 0 : index
    %14 = vector.load %arg11[%13, %c0_10] : memref<64x512xf32, #tpu.memory_space<vmem>>, vector<8x512xf32>
    %15 = arith.truncf %1 : vector<8x128xf32> to vector<8x128xbf16>
    %c0_11 = arith.constant 0 : index
    %c0_12 = arith.constant 0 : index
    %16 = vector.load %arg3[%c0_11, %c0_12] : memref<128x512xbf16, #tpu.memory_space<vmem>>, vector<128x512xbf16>
    %cst_13 = arith.constant dense<0.000000e+00> : vector<8x512xf32>
    %17 = tpu.matmul %15, %16, %cst_13 {dimension_numbers = #tpu.dot_dimension_numbers<[1], [0], [0], [1], [0, 0, 1, 1], [], []>} : vector<8x128xbf16>, vector<128x512xbf16>, vector<8x512xf32> -> vector<8x512xf32>
    %18 = arith.addf %14, %17 : vector<8x512xf32>
    %19 = vector.extract_strided_slice %18 {offsets = [0, 0], sizes = [8, 384], strides = [1, 1]} : vector<8x512xf32> to vector<8x384xf32>
    %20 = arith.negf %19 : vector<8x384xf32>
    %21 = math.exp %20 : vector<8x384xf32>
    %cst_14 = arith.constant 1.000000e+00 : f32
    %22 = vector.broadcast %cst_14 : f32 to vector<8x384xf32>
    %23 = arith.addf %22, %21 : vector<8x384xf32>
    %24 = arith.divf %22, %23 : vector<8x384xf32>
    %25 = vector.extract_strided_slice %24 {offsets = [0, 0], sizes = [8, 128], strides = [1, 1]} : vector<8x384xf32> to vector<8x128xf32>
    %26 = vector.extract_strided_slice %24 {offsets = [0, 128], sizes = [8, 128], strides = [1, 1]} : vector<8x384xf32> to vector<8x128xf32>
    %27 = vector.extract_strided_slice %24 {offsets = [0, 256], sizes = [8, 128], strides = [1, 1]} : vector<8x384xf32> to vector<8x128xf32>
    %28 = vector.extract_strided_slice %18 {offsets = [0, 384], sizes = [8, 128], strides = [1, 1]} : vector<8x512xf32> to vector<8x128xf32>
    %29 = math.tanh %28 : vector<8x128xf32>
    %30 = arith.mulf %26, %2 : vector<8x128xf32>
    %31 = arith.mulf %25, %29 : vector<8x128xf32>
    %32 = arith.addf %30, %31 : vector<8x128xf32>
    %33 = math.tanh %32 : vector<8x128xf32>
    %34 = arith.mulf %27, %33 : vector<8x128xf32>
    %c0_i32_15 = arith.constant 0 : i32
    %35 = arith.addi %c0_i32_15, %c0_i32 : i32
    %c8_i32_16 = arith.constant 8 : i32
    %36 = arith.muli %35, %c8_i32_16 : i32
    %37 = tpu.assume_multiple %36, 8 : i32
    %38 = arith.truncf %34 : vector<8x128xf32> to vector<8x128xbf16>
    %39 = arith.index_cast %37 : i32 to index
    %c0_17 = arith.constant 0 : index
    %40 = vector.load %arg12[%39, %c0_17] : memref<64x128xbf16, #tpu.memory_space<vmem>>, vector<8x128xbf16>
    tpu.vector_store %arg12[%39, %c0_17], %38 {strides = array<i32>} : memref<64x128xbf16, #tpu.memory_space<vmem>>, vector<8x128xbf16>,
    %c1_i32 = arith.constant 1 : i32
    %c8_i32_18 = arith.constant 8 : i32
    %41 = arith.muli %c1_i32, %c8_i32_18 : i32
    %42 = tpu.assume_multiple %41, 8 : i32
    %43 = arith.index_cast %42 : i32 to index
    %c0_19 = arith.constant 0 : index
    %44 = vector.load %arg11[%43, %c0_19] : memref<64x512xf32, #tpu.memory_space<vmem>>, vector<8x512xf32>
    %45 = arith.truncf %34 : vector<8x128xf32> to vector<8x128xbf16>
    %c0_20 = arith.constant 0 : index
    %c0_21 = arith.constant 0 : index
    %46 = vector.load %arg3[%c0_20, %c0_21] : memref<128x512xbf16, #tpu.memory_space<vmem>>, vector<128x512xbf16>
    %cst_22 = arith.constant dense<0.000000e+00> : vector<8x512xf32>
    %47 = tpu.matmul %45, %46, %cst_22 {dimension_numbers = #tpu.dot_dimension_numbers<[1], [0], [0], [1], [0, 0, 1, 1], [], []>} : vector<8x128xbf16>, vector<128x512xbf16>, vector<8x512xf32> -> vector<8x512xf32>
    %48 = arith.addf %44, %47 : vector<8x512xf32>
    %49 = vector.extract_strided_slice %48 {offsets = [0, 0], sizes = [8, 384], strides = [1, 1]} : vector<8x512xf32> to vector<8x384xf32>
    %50 = arith.negf %49 : vector<8x384xf32>
    %51 = math.exp %50 : vector<8x384xf32>
    %cst_23 = arith.constant 1.000000e+00 : f32
    %52 = vector.broadcast %cst_23 : f32 to vector<8x384xf32>
    %53 = arith.addf %52, %51 : vector<8x384xf32>
    %54 = arith.divf %52, %53 : vector<8x384xf32>
    %55 = vector.extract_strided_slice %54 {offsets = [0, 0], sizes = [8, 128], strides = [1, 1]} : vector<8x384xf32> to vector<8x128xf32>
    %56 = vector.extract_strided_slice %54 {offsets = [0, 128], sizes = [8, 128], strides = [1, 1]} : vector<8x384xf32> to vector<8x128xf32>
    %57 = vector.extract_strided_slice %54 {offsets = [0, 256], sizes = [8, 128], strides = [1, 1]} : vector<8x384xf32> to vector<8x128xf32>
    %58 = vector.extract_strided_slice %48 {offsets = [0, 384], sizes = [8, 128], strides = [1, 1]} : vector<8x512xf32> to vector<8x128xf32>
    %59 = math.tanh %58 : vector<8x128xf32>
    %60 = arith.mulf %56, %32 : vector<8x128xf32>
    %61 = arith.mulf %55, %59 : vector<8x128xf32>
    %62 = arith.addf %60, %61 : vector<8x128xf32>
    %63 = math.tanh %62 : vector<8x128xf32>
    %64 = arith.mulf %57, %63 : vector<8x128xf32>
    %c0_i32_24 = arith.constant 0 : i32
    %65 = arith.addi %c0_i32_24, %c1_i32 : i32
    %c8_i32_25 = arith.constant 8 : i32
    %66 = arith.muli %65, %c8_i32_25 : i32
    %67 = tpu.assume_multiple %66, 8 : i32
    %68 = arith.truncf %64 : vector<8x128xf32> to vector<8x128xbf16>
    %69 = arith.index_cast %67 : i32 to index
    %c0_26 = arith.constant 0 : index
    %70 = vector.load %arg12[%69, %c0_26] : memref<64x128xbf16, #tpu.memory_space<vmem>>, vector<8x128xbf16>
    tpu.vector_store %arg12[%69, %c0_26], %68 {strides = array<i32>} : memref<64x128xbf16, #tpu.memory_space<vmem>>, vector<8x128xbf16>,
    %c2_i32 = arith.constant 2 : i32
    %c8_i32_27 = arith.constant 8 : i32
    %71 = arith.muli %c2_i32, %c8_i32_27 : i32
    %72 = tpu.assume_multiple %71, 8 : i32
    %73 = arith.index_cast %72 : i32 to index
    %c0_28 = arith.constant 0 : index
    %74 = vector.load %arg11[%73, %c0_28] : memref<64x512xf32, #tpu.memory_space<vmem>>, vector<8x512xf32>
    %75 = arith.truncf %64 : vector<8x128xf32> to vector<8x128xbf16>
    %c0_29 = arith.constant 0 : index
    %c0_30 = arith.constant 0 : index
    %76 = vector.load %arg3[%c0_29, %c0_30] : memref<128x512xbf16, #tpu.memory_space<vmem>>, vector<128x512xbf16>
    %cst_31 = arith.constant dense<0.000000e+00> : vector<8x512xf32>
    %77 = tpu.matmul %75, %76, %cst_31 {dimension_numbers = #tpu.dot_dimension_numbers<[1], [0], [0], [1], [0, 0, 1, 1], [], []>} : vector<8x128xbf16>, vector<128x512xbf16>, vector<8x512xf32> -> vector<8x512xf32>
    %78 = arith.addf %74, %77 : vector<8x512xf32>
    %79 = vector.extract_strided_slice %78 {offsets = [0, 0], sizes = [8, 384], strides = [1, 1]} : vector<8x512xf32> to vector<8x384xf32>
    %80 = arith.negf %79 : vector<8x384xf32>
    %81 = math.exp %80 : vector<8x384xf32>
    %cst_32 = arith.constant 1.000000e+00 : f32
    %82 = vector.broadcast %cst_32 : f32 to vector<8x384xf32>
    %83 = arith.addf %82, %81 : vector<8x384xf32>
    %84 = arith.divf %82, %83 : vector<8x384xf32>
    %85 = vector.extract_strided_slice %84 {offsets = [0, 0], sizes = [8, 128], strides = [1, 1]} : vector<8x384xf32> to vector<8x128xf32>
    %86 = vector.extract_strided_slice %84 {offsets = [0, 128], sizes = [8, 128], strides = [1, 1]} : vector<8x384xf32> to vector<8x128xf32>
    %87 = vector.extract_strided_slice %84 {offsets = [0, 256], sizes = [8, 128], strides = [1, 1]} : vector<8x384xf32> to vector<8x128xf32>
    %88 = vector.extract_strided_slice %78 {offsets = [0, 384], sizes = [8, 128], strides = [1, 1]} : vector<8x512xf32> to vector<8x128xf32>
    %89 = math.tanh %88 : vector<8x128xf32>
    %90 = arith.mulf %86, %62 : vector<8x128xf32>
    %91 = arith.mulf %85, %89 : vector<8x128xf32>
    %92 = arith.addf %90, %91 : vector<8x128xf32>
    %93 = math.tanh %92 : vector<8x128xf32>
    %94 = arith.mulf %87, %93 : vector<8x128xf32>
    %c0_i32_33 = arith.constant 0 : i32
    %95 = arith.addi %c0_i32_33, %c2_i32 : i32
    %c8_i32_34 = arith.constant 8 : i32
    %96 = arith.muli %95, %c8_i32_34 : i32
    %97 = tpu.assume_multiple %96, 8 : i32
    %98 = arith.truncf %94 : vector<8x128xf32> to vector<8x128xbf16>
    %99 = arith.index_cast %97 : i32 to index
    %c0_35 = arith.constant 0 : index
    %100 = vector.load %arg12[%99, %c0_35] : memref<64x128xbf16, #tpu.memory_space<vmem>>, vector<8x128xbf16>
    tpu.vector_store %arg12[%99, %c0_35], %98 {strides = array<i32>} : memref<64x128xbf16, #tpu.memory_space<vmem>>, vector<8x128xbf16>,
    %c3_i32 = arith.constant 3 : i32
    %c8_i32_36 = arith.constant 8 : i32
    %101 = arith.muli %c3_i32, %c8_i32_36 : i32
    %102 = tpu.assume_multiple %101, 8 : i32
    %103 = arith.index_cast %102 : i32 to index
    %c0_37 = arith.constant 0 : index
    %104 = vector.load %arg11[%103, %c0_37] : memref<64x512xf32, #tpu.memory_space<vmem>>, vector<8x512xf32>
    %105 = arith.truncf %94 : vector<8x128xf32> to vector<8x128xbf16>
    %c0_38 = arith.constant 0 : index
    %c0_39 = arith.constant 0 : index
    %106 = vector.load %arg3[%c0_38, %c0_39] : memref<128x512xbf16, #tpu.memory_space<vmem>>, vector<128x512xbf16>
    %cst_40 = arith.constant dense<0.000000e+00> : vector<8x512xf32>
    %107 = tpu.matmul %105, %106, %cst_40 {dimension_numbers = #tpu.dot_dimension_numbers<[1], [0], [0], [1], [0, 0, 1, 1], [], []>} : vector<8x128xbf16>, vector<128x512xbf16>, vector<8x512xf32> -> vector<8x512xf32>
    %108 = arith.addf %104, %107 : vector<8x512xf32>
    %109 = vector.extract_strided_slice %108 {offsets = [0, 0], sizes = [8, 384], strides = [1, 1]} : vector<8x512xf32> to vector<8x384xf32>
    %110 = arith.negf %109 : vector<8x384xf32>
    %111 = math.exp %110 : vector<8x384xf32>
    %cst_41 = arith.constant 1.000000e+00 : f32
    %112 = vector.broadcast %cst_41 : f32 to vector<8x384xf32>
    %113 = arith.addf %112, %111 : vector<8x384xf32>
    %114 = arith.divf %112, %113 : vector<8x384xf32>
    %115 = vector.extract_strided_slice %114 {offsets = [0, 0], sizes = [8, 128], strides = [1, 1]} : vector<8x384xf32> to vector<8x128xf32>
    %116 = vector.extract_strided_slice %114 {offsets = [0, 128], sizes = [8, 128], strides = [1, 1]} : vector<8x384xf32> to vector<8x128xf32>
    %117 = vector.extract_strided_slice %114 {offsets = [0, 256], sizes = [8, 128], strides = [1, 1]} : vector<8x384xf32> to vector<8x128xf32>
    %118 = vector.extract_strided_slice %108 {offsets = [0, 384], sizes = [8, 128], strides = [1, 1]} : vector<8x512xf32> to vector<8x128xf32>
    %119 = math.tanh %118 : vector<8x128xf32>
    %120 = arith.mulf %116, %92 : vector<8x128xf32>
    %121 = arith.mulf %115, %119 : vector<8x128xf32>
    %122 = arith.addf %120, %121 : vector<8x128xf32>
    %123 = math.tanh %122 : vector<8x128xf32>
    %124 = arith.mulf %117, %123 : vector<8x128xf32>
    %c0_i32_42 = arith.constant 0 : i32
    %125 = arith.addi %c0_i32_42, %c3_i32 : i32
    %c8_i32_43 = arith.constant 8 : i32
    %126 = arith.muli %125, %c8_i32_43 : i32
    %127 = tpu.assume_multiple %126, 8 : i32
    %128 = arith.truncf %124 : vector<8x128xf32> to vector<8x128xbf16>
    %129 = arith.index_cast %127 : i32 to index
    %c0_44 = arith.constant 0 : index
    %130 = vector.load %arg12[%129, %c0_44] : memref<64x128xbf16, #tpu.memory_space<vmem>>, vector<8x128xbf16>
    tpu.vector_store %arg12[%129, %c0_44], %128 {strides = array<i32>} : memref<64x128xbf16, #tpu.memory_space<vmem>>, vector<8x128xbf16>,
    %c4_i32 = arith.constant 4 : i32
    %c8_i32_45 = arith.constant 8 : i32
    %131 = arith.muli %c4_i32, %c8_i32_45 : i32
    %132 = tpu.assume_multiple %131, 8 : i32
    %133 = arith.index_cast %132 : i32 to index
    %c0_46 = arith.constant 0 : index
    %134 = vector.load %arg11[%133, %c0_46] : memref<64x512xf32, #tpu.memory_space<vmem>>, vector<8x512xf32>
    %135 = arith.truncf %124 : vector<8x128xf32> to vector<8x128xbf16>
    %c0_47 = arith.constant 0 : index
    %c0_48 = arith.constant 0 : index
    %136 = vector.load %arg3[%c0_47, %c0_48] : memref<128x512xbf16, #tpu.memory_space<vmem>>, vector<128x512xbf16>
    %cst_49 = arith.constant dense<0.000000e+00> : vector<8x512xf32>
    %137 = tpu.matmul %135, %136, %cst_49 {dimension_numbers = #tpu.dot_dimension_numbers<[1], [0], [0], [1], [0, 0, 1, 1], [], []>} : vector<8x128xbf16>, vector<128x512xbf16>, vector<8x512xf32> -> vector<8x512xf32>
    %138 = arith.addf %134, %137 : vector<8x512xf32>
    %139 = vector.extract_strided_slice %138 {offsets = [0, 0], sizes = [8, 384], strides = [1, 1]} : vector<8x512xf32> to vector<8x384xf32>
    %140 = arith.negf %139 : vector<8x384xf32>
    %141 = math.exp %140 : vector<8x384xf32>
    %cst_50 = arith.constant 1.000000e+00 : f32
    %142 = vector.broadcast %cst_50 : f32 to vector<8x384xf32>
    %143 = arith.addf %142, %141 : vector<8x384xf32>
    %144 = arith.divf %142, %143 : vector<8x384xf32>
    %145 = vector.extract_strided_slice %144 {offsets = [0, 0], sizes = [8, 128], strides = [1, 1]} : vector<8x384xf32> to vector<8x128xf32>
    %146 = vector.extract_strided_slice %144 {offsets = [0, 128], sizes = [8, 128], strides = [1, 1]} : vector<8x384xf32> to vector<8x128xf32>
    %147 = vector.extract_strided_slice %144 {offsets = [0, 256], sizes = [8, 128], strides = [1, 1]} : vector<8x384xf32> to vector<8x128xf32>
    %148 = vector.extract_strided_slice %138 {offsets = [0, 384], sizes = [8, 128], strides = [1, 1]} : vector<8x512xf32> to vector<8x128xf32>
    %149 = math.tanh %148 : vector<8x128xf32>
    %150 = arith.mulf %146, %122 : vector<8x128xf32>
    %151 = arith.mulf %145, %149 : vector<8x128xf32>
    %152 = arith.addf %150, %151 : vector<8x128xf32>
    %153 = math.tanh %152 : vector<8x128xf32>
    %154 = arith.mulf %147, %153 : vector<8x128xf32>
    %c0_i32_51 = arith.constant 0 : i32
    %155 = arith.addi %c0_i32_51, %c4_i32 : i32
    %c8_i32_52 = arith.constant 8 : i32
    %156 = arith.muli %155, %c8_i32_52 : i32
    %157 = tpu.assume_multiple %156, 8 : i32
    %158 = arith.truncf %154 : vector<8x128xf32> to vector<8x128xbf16>
    %159 = arith.index_cast %157 : i32 to index
    %c0_53 = arith.constant 0 : index
    %160 = vector.load %arg12[%159, %c0_53] : memref<64x128xbf16, #tpu.memory_space<vmem>>, vector<8x128xbf16>
    tpu.vector_store %arg12[%159, %c0_53], %158 {strides = array<i32>} : memref<64x128xbf16, #tpu.memory_space<vmem>>, vector<8x128xbf16>,
    %c5_i32 = arith.constant 5 : i32
    %c8_i32_54 = arith.constant 8 : i32
    %161 = arith.muli %c5_i32, %c8_i32_54 : i32
    %162 = tpu.assume_multiple %161, 8 : i32
    %163 = arith.index_cast %162 : i32 to index
    %c0_55 = arith.constant 0 : index
    %164 = vector.load %arg11[%163, %c0_55] : memref<64x512xf32, #tpu.memory_space<vmem>>, vector<8x512xf32>
    %165 = arith.truncf %154 : vector<8x128xf32> to vector<8x128xbf16>
    %c0_56 = arith.constant 0 : index
    %c0_57 = arith.constant 0 : index
    %166 = vector.load %arg3[%c0_56, %c0_57] : memref<128x512xbf16, #tpu.memory_space<vmem>>, vector<128x512xbf16>
    %cst_58 = arith.constant dense<0.000000e+00> : vector<8x512xf32>
    %167 = tpu.matmul %165, %166, %cst_58 {dimension_numbers = #tpu.dot_dimension_numbers<[1], [0], [0], [1], [0, 0, 1, 1], [], []>} : vector<8x128xbf16>, vector<128x512xbf16>, vector<8x512xf32> -> vector<8x512xf32>
    %168 = arith.addf %164, %167 : vector<8x512xf32>
    %169 = vector.extract_strided_slice %168 {offsets = [0, 0], sizes = [8, 384], strides = [1, 1]} : vector<8x512xf32> to vector<8x384xf32>
    %170 = arith.negf %169 : vector<8x384xf32>
    %171 = math.exp %170 : vector<8x384xf32>
    %cst_59 = arith.constant 1.000000e+00 : f32
    %172 = vector.broadcast %cst_59 : f32 to vector<8x384xf32>
    %173 = arith.addf %172, %171 : vector<8x384xf32>
    %174 = arith.divf %172, %173 : vector<8x384xf32>
    %175 = vector.extract_strided_slice %174 {offsets = [0, 0], sizes = [8, 128], strides = [1, 1]} : vector<8x384xf32> to vector<8x128xf32>
    %176 = vector.extract_strided_slice %174 {offsets = [0, 128], sizes = [8, 128], strides = [1, 1]} : vector<8x384xf32> to vector<8x128xf32>
    %177 = vector.extract_strided_slice %174 {offsets = [0, 256], sizes = [8, 128], strides = [1, 1]} : vector<8x384xf32> to vector<8x128xf32>
    %178 = vector.extract_strided_slice %168 {offsets = [0, 384], sizes = [8, 128], strides = [1, 1]} : vector<8x512xf32> to vector<8x128xf32>
    %179 = math.tanh %178 : vector<8x128xf32>
    %180 = arith.mulf %176, %152 : vector<8x128xf32>
    %181 = arith.mulf %175, %179 : vector<8x128xf32>
    %182 = arith.addf %180, %181 : vector<8x128xf32>
    %183 = math.tanh %182 : vector<8x128xf32>
    %184 = arith.mulf %177, %183 : vector<8x128xf32>
    %c0_i32_60 = arith.constant 0 : i32
    %185 = arith.addi %c0_i32_60, %c5_i32 : i32
    %c8_i32_61 = arith.constant 8 : i32
    %186 = arith.muli %185, %c8_i32_61 : i32
    %187 = tpu.assume_multiple %186, 8 : i32
    %188 = arith.truncf %184 : vector<8x128xf32> to vector<8x128xbf16>
    %189 = arith.index_cast %187 : i32 to index
    %c0_62 = arith.constant 0 : index
    %190 = vector.load %arg12[%189, %c0_62] : memref<64x128xbf16, #tpu.memory_space<vmem>>, vector<8x128xbf16>
    tpu.vector_store %arg12[%189, %c0_62], %188 {strides = array<i32>} : memref<64x128xbf16, #tpu.memory_space<vmem>>, vector<8x128xbf16>,
    %c6_i32 = arith.constant 6 : i32
    %c8_i32_63 = arith.constant 8 : i32
    %191 = arith.muli %c6_i32, %c8_i32_63 : i32
    %192 = tpu.assume_multiple %191, 8 : i32
    %193 = arith.index_cast %192 : i32 to index
    %c0_64 = arith.constant 0 : index
    %194 = vector.load %arg11[%193, %c0_64] : memref<64x512xf32, #tpu.memory_space<vmem>>, vector<8x512xf32>
    %195 = arith.truncf %184 : vector<8x128xf32> to vector<8x128xbf16>
    %c0_65 = arith.constant 0 : index
    %c0_66 = arith.constant 0 : index
    %196 = vector.load %arg3[%c0_65, %c0_66] : memref<128x512xbf16, #tpu.memory_space<vmem>>, vector<128x512xbf16>
    %cst_67 = arith.constant dense<0.000000e+00> : vector<8x512xf32>
    %197 = tpu.matmul %195, %196, %cst_67 {dimension_numbers = #tpu.dot_dimension_numbers<[1], [0], [0], [1], [0, 0, 1, 1], [], []>} : vector<8x128xbf16>, vector<128x512xbf16>, vector<8x512xf32> -> vector<8x512xf32>
    %198 = arith.addf %194, %197 : vector<8x512xf32>
    %199 = vector.extract_strided_slice %198 {offsets = [0, 0], sizes = [8, 384], strides = [1, 1]} : vector<8x512xf32> to vector<8x384xf32>
    %200 = arith.negf %199 : vector<8x384xf32>
    %201 = math.exp %200 : vector<8x384xf32>
    %cst_68 = arith.constant 1.000000e+00 : f32
    %202 = vector.broadcast %cst_68 : f32 to vector<8x384xf32>
    %203 = arith.addf %202, %201 : vector<8x384xf32>
    %204 = arith.divf %202, %203 : vector<8x384xf32>
    %205 = vector.extract_strided_slice %204 {offsets = [0, 0], sizes = [8, 128], strides = [1, 1]} : vector<8x384xf32> to vector<8x128xf32>
    %206 = vector.extract_strided_slice %204 {offsets = [0, 128], sizes = [8, 128], strides = [1, 1]} : vector<8x384xf32> to vector<8x128xf32>
    %207 = vector.extract_strided_slice %204 {offsets = [0, 256], sizes = [8, 128], strides = [1, 1]} : vector<8x384xf32> to vector<8x128xf32>
    %208 = vector.extract_strided_slice %198 {offsets = [0, 384], sizes = [8, 128], strides = [1, 1]} : vector<8x512xf32> to vector<8x128xf32>
    %209 = math.tanh %208 : vector<8x128xf32>
    %210 = arith.mulf %206, %182 : vector<8x128xf32>
    %211 = arith.mulf %205, %209 : vector<8x128xf32>
    %212 = arith.addf %210, %211 : vector<8x128xf32>
    %213 = math.tanh %212 : vector<8x128xf32>
    %214 = arith.mulf %207, %213 : vector<8x128xf32>
    %c0_i32_69 = arith.constant 0 : i32
    %215 = arith.addi %c0_i32_69, %c6_i32 : i32
    %c8_i32_70 = arith.constant 8 : i32
    %216 = arith.muli %215, %c8_i32_70 : i32
    %217 = tpu.assume_multiple %216, 8 : i32
    %218 = arith.truncf %214 : vector<8x128xf32> to vector<8x128xbf16>
    %219 = arith.index_cast %217 : i32 to index
    %c0_71 = arith.constant 0 : index
    %220 = vector.load %arg12[%219, %c0_71] : memref<64x128xbf16, #tpu.memory_space<vmem>>, vector<8x128xbf16>
    tpu.vector_store %arg12[%219, %c0_71], %218 {strides = array<i32>} : memref<64x128xbf16, #tpu.memory_space<vmem>>, vector<8x128xbf16>,
    %c7_i32 = arith.constant 7 : i32
    %c8_i32_72 = arith.constant 8 : i32
    %221 = arith.muli %c7_i32, %c8_i32_72 : i32
    %222 = tpu.assume_multiple %221, 8 : i32
    %223 = arith.index_cast %222 : i32 to index
    %c0_73 = arith.constant 0 : index
    %224 = vector.load %arg11[%223, %c0_73] : memref<64x512xf32, #tpu.memory_space<vmem>>, vector<8x512xf32>
    %225 = arith.truncf %214 : vector<8x128xf32> to vector<8x128xbf16>
    %c0_74 = arith.constant 0 : index
    %c0_75 = arith.constant 0 : index
    %226 = vector.load %arg3[%c0_74, %c0_75] : memref<128x512xbf16, #tpu.memory_space<vmem>>, vector<128x512xbf16>
    %cst_76 = arith.constant dense<0.000000e+00> : vector<8x512xf32>
    %227 = tpu.matmul %225, %226, %cst_76 {dimension_numbers = #tpu.dot_dimension_numbers<[1], [0], [0], [1], [0, 0, 1, 1], [], []>} : vector<8x128xbf16>, vector<128x512xbf16>, vector<8x512xf32> -> vector<8x512xf32>
    %228 = arith.addf %224, %227 : vector<8x512xf32>
    %229 = vector.extract_strided_slice %228 {offsets = [0, 0], sizes = [8, 384], strides = [1, 1]} : vector<8x512xf32> to vector<8x384xf32>
    %230 = arith.negf %229 : vector<8x384xf32>
    %231 = math.exp %230 : vector<8x384xf32>
    %cst_77 = arith.constant 1.000000e+00 : f32
    %232 = vector.broadcast %cst_77 : f32 to vector<8x384xf32>
    %233 = arith.addf %232, %231 : vector<8x384xf32>
    %234 = arith.divf %232, %233 : vector<8x384xf32>
    %235 = vector.extract_strided_slice %234 {offsets = [0, 0], sizes = [8, 128], strides = [1, 1]} : vector<8x384xf32> to vector<8x128xf32>
    %236 = vector.extract_strided_slice %234 {offsets = [0, 128], sizes = [8, 128], strides = [1, 1]} : vector<8x384xf32> to vector<8x128xf32>
    %237 = vector.extract_strided_slice %234 {offsets = [0, 256], sizes = [8, 128], strides = [1, 1]} : vector<8x384xf32> to vector<8x128xf32>
    %238 = vector.extract_strided_slice %228 {offsets = [0, 384], sizes = [8, 128], strides = [1, 1]} : vector<8x512xf32> to vector<8x128xf32>
    %239 = math.tanh %238 : vector<8x128xf32>
    %240 = arith.mulf %236, %212 : vector<8x128xf32>
    %241 = arith.mulf %235, %239 : vector<8x128xf32>
    %242 = arith.addf %240, %241 : vector<8x128xf32>
    %243 = math.tanh %242 : vector<8x128xf32>
    %244 = arith.mulf %237, %243 : vector<8x128xf32>
    %c0_i32_78 = arith.constant 0 : i32
    %245 = arith.addi %c0_i32_78, %c7_i32 : i32
    %c8_i32_79 = arith.constant 8 : i32
    %246 = arith.muli %245, %c8_i32_79 : i32
    %247 = tpu.assume_multiple %246, 8 : i32
    %248 = arith.truncf %244 : vector<8x128xf32> to vector<8x128xbf16>
    %249 = arith.index_cast %247 : i32 to index
    %c0_80 = arith.constant 0 : index
    %250 = vector.load %arg12[%249, %c0_80] : memref<64x128xbf16, #tpu.memory_space<vmem>>, vector<8x128xbf16>
    tpu.vector_store %arg12[%249, %c0_80], %248 {strides = array<i32>} : memref<64x128xbf16, #tpu.memory_space<vmem>>, vector<8x128xbf16>,
    %c8_i32_81 = arith.constant 8 : i32
    %c0_82 = arith.constant 0 : index
    %c0_83 = arith.constant 0 : index
    %251 = vector.load %arg7[%c0_82, %c0_83] : memref<1x512xf32, #tpu.memory_space<vmem>>, vector<1x512xf32>
    %cst_84 = arith.constant 0.000000e+00 : f32
    %252 = vector.broadcast %cst_84 : f32 to vector<8x128xf32>
    %cst_85 = arith.constant 0.000000e+00 : f32
    %253 = vector.broadcast %cst_85 : f32 to vector<8x128xf32>
    %c0_86 = arith.constant 0 : index
    %c0_87 = arith.constant 0 : index
    %254 = vector.load %arg12[%c0_86, %c0_87] : memref<64x128xbf16, #tpu.memory_space<vmem>>, vector<64x128xbf16>
    %c0_88 = arith.constant 0 : index
    %c0_89 = arith.constant 0 : index
    %255 = vector.load %arg5[%c0_88, %c0_89] : memref<128x512xbf16, #tpu.memory_space<vmem>>, vector<128x512xbf16>
    %cst_90 = arith.constant dense<0.000000e+00> : vector<64x512xf32>
    %256 = tpu.matmul %254, %255, %cst_90 {dimension_numbers = #tpu.dot_dimension_numbers<[1], [0], [0], [1], [0, 0, 1, 1], [], []>} : vector<64x128xbf16>, vector<128x512xbf16>, vector<64x512xf32> -> vector<64x512xf32>
    %257 = vector.broadcast %251 : vector<1x512xf32> to vector<64x512xf32>
    %258 = arith.addf %256, %257 : vector<64x512xf32>
    %c0_91 = arith.constant 0 : index
    %c0_92 = arith.constant 0 : index
    %259 = vector.load %arg11[%c0_91, %c0_92] : memref<64x512xf32, #tpu.memory_space<vmem>>, vector<64x512xf32>
    tpu.vector_store %arg11[%c0_91, %c0_92], %258 {strides = array<i32>} : memref<64x512xf32, #tpu.memory_space<vmem>>, vector<64x512xf32>,
    %c0_i32_93 = arith.constant 0 : i32
    %c8_i32_94 = arith.constant 8 : i32
    %260 = arith.muli %c0_i32_93, %c8_i32_94 : i32
    %261 = tpu.assume_multiple %260, 8 : i32
    %262 = arith.index_cast %261 : i32 to index
    %c0_95 = arith.constant 0 : index
    %263 = vector.load %arg11[%262, %c0_95] : memref<64x512xf32, #tpu.memory_space<vmem>>, vector<8x512xf32>
    %264 = arith.truncf %252 : vector<8x128xf32> to vector<8x128xbf16>
    %c0_96 = arith.constant 0 : index
    %c0_97 = arith.constant 0 : index
    %265 = vector.load %arg6[%c0_96, %c0_97] : memref<128x512xbf16, #tpu.memory_space<vmem>>, vector<128x512xbf16>
    %cst_98 = arith.constant dense<0.000000e+00> : vector<8x512xf32>
    %266 = tpu.matmul %264, %265, %cst_98 {dimension_numbers = #tpu.dot_dimension_numbers<[1], [0], [0], [1], [0, 0, 1, 1], [], []>} : vector<8x128xbf16>, vector<128x512xbf16>, vector<8x512xf32> -> vector<8x512xf32>
    %267 = arith.addf %263, %266 : vector<8x512xf32>
    %268 = vector.extract_strided_slice %267 {offsets = [0, 0], sizes = [8, 384], strides = [1, 1]} : vector<8x512xf32> to vector<8x384xf32>
    %269 = arith.negf %268 : vector<8x384xf32>
    %270 = math.exp %269 : vector<8x384xf32>
    %cst_99 = arith.constant 1.000000e+00 : f32
    %271 = vector.broadcast %cst_99 : f32 to vector<8x384xf32>
    %272 = arith.addf %271, %270 : vector<8x384xf32>
    %273 = arith.divf %271, %272 : vector<8x384xf32>
    %274 = vector.extract_strided_slice %273 {offsets = [0, 0], sizes = [8, 128], strides = [1, 1]} : vector<8x384xf32> to vector<8x128xf32>
    %275 = vector.extract_strided_slice %273 {offsets = [0, 128], sizes = [8, 128], strides = [1, 1]} : vector<8x384xf32> to vector<8x128xf32>
    %276 = vector.extract_strided_slice %273 {offsets = [0, 256], sizes = [8, 128], strides = [1, 1]} : vector<8x384xf32> to vector<8x128xf32>
    %277 = vector.extract_strided_slice %267 {offsets = [0, 384], sizes = [8, 128], strides = [1, 1]} : vector<8x512xf32> to vector<8x128xf32>
    %278 = math.tanh %277 : vector<8x128xf32>
    %279 = arith.mulf %275, %253 : vector<8x128xf32>
    %280 = arith.mulf %274, %278 : vector<8x128xf32>
    %281 = arith.addf %279, %280 : vector<8x128xf32>
    %282 = math.tanh %281 : vector<8x128xf32>
    %283 = arith.mulf %276, %282 : vector<8x128xf32>
    %c1_i32_100 = arith.constant 1 : i32
    %c8_i32_101 = arith.constant 8 : i32
    %284 = arith.muli %c1_i32_100, %c8_i32_101 : i32
    %285 = tpu.assume_multiple %284, 8 : i32
    %286 = arith.index_cast %285 : i32 to index
    %c0_102 = arith.constant 0 : index
    %287 = vector.load %arg11[%286, %c0_102] : memref<64x512xf32, #tpu.memory_space<vmem>>, vector<8x512xf32>
    %288 = arith.truncf %283 : vector<8x128xf32> to vector<8x128xbf16>
    %c0_103 = arith.constant 0 : index
    %c0_104 = arith.constant 0 : index
    %289 = vector.load %arg6[%c0_103, %c0_104] : memref<128x512xbf16, #tpu.memory_space<vmem>>, vector<128x512xbf16>
    %cst_105 = arith.constant dense<0.000000e+00> : vector<8x512xf32>
    %290 = tpu.matmul %288, %289, %cst_105 {dimension_numbers = #tpu.dot_dimension_numbers<[1], [0], [0], [1], [0, 0, 1, 1], [], []>} : vector<8x128xbf16>, vector<128x512xbf16>, vector<8x512xf32> -> vector<8x512xf32>
    %291 = arith.addf %287, %290 : vector<8x512xf32>
    %292 = vector.extract_strided_slice %291 {offsets = [0, 0], sizes = [8, 384], strides = [1, 1]} : vector<8x512xf32> to vector<8x384xf32>
    %293 = arith.negf %292 : vector<8x384xf32>
    %294 = math.exp %293 : vector<8x384xf32>
    %cst_106 = arith.constant 1.000000e+00 : f32
    %295 = vector.broadcast %cst_106 : f32 to vector<8x384xf32>
    %296 = arith.addf %295, %294 : vector<8x384xf32>
    %297 = arith.divf %295, %296 : vector<8x384xf32>
    %298 = vector.extract_strided_slice %297 {offsets = [0, 0], sizes = [8, 128], strides = [1, 1]} : vector<8x384xf32> to vector<8x128xf32>
    %299 = vector.extract_strided_slice %297 {offsets = [0, 128], sizes = [8, 128], strides = [1, 1]} : vector<8x384xf32> to vector<8x128xf32>
    %300 = vector.extract_strided_slice %297 {offsets = [0, 256], sizes = [8, 128], strides = [1, 1]} : vector<8x384xf32> to vector<8x128xf32>
    %301 = vector.extract_strided_slice %291 {offsets = [0, 384], sizes = [8, 128], strides = [1, 1]} : vector<8x512xf32> to vector<8x128xf32>
    %302 = math.tanh %301 : vector<8x128xf32>
    %303 = arith.mulf %299, %281 : vector<8x128xf32>
    %304 = arith.mulf %298, %302 : vector<8x128xf32>
    %305 = arith.addf %303, %304 : vector<8x128xf32>
    %306 = math.tanh %305 : vector<8x128xf32>
    %307 = arith.mulf %300, %306 : vector<8x128xf32>
    %c2_i32_107 = arith.constant 2 : i32
    %c8_i32_108 = arith.constant 8 : i32
    %308 = arith.muli %c2_i32_107, %c8_i32_108 : i32
    %309 = tpu.assume_multiple %308, 8 : i32
    %310 = arith.index_cast %309 : i32 to index
    %c0_109 = arith.constant 0 : index
    %311 = vector.load %arg11[%310, %c0_109] : memref<64x512xf32, #tpu.memory_space<vmem>>, vector<8x512xf32>
    %312 = arith.truncf %307 : vector<8x128xf32> to vector<8x128xbf16>
    %c0_110 = arith.constant 0 : index
    %c0_111 = arith.constant 0 : index
    %313 = vector.load %arg6[%c0_110, %c0_111] : memref<128x512xbf16, #tpu.memory_space<vmem>>, vector<128x512xbf16>
    %cst_112 = arith.constant dense<0.000000e+00> : vector<8x512xf32>
    %314 = tpu.matmul %312, %313, %cst_112 {dimension_numbers = #tpu.dot_dimension_numbers<[1], [0], [0], [1], [0, 0, 1, 1], [], []>} : vector<8x128xbf16>, vector<128x512xbf16>, vector<8x512xf32> -> vector<8x512xf32>
    %315 = arith.addf %311, %314 : vector<8x512xf32>
    %316 = vector.extract_strided_slice %315 {offsets = [0, 0], sizes = [8, 384], strides = [1, 1]} : vector<8x512xf32> to vector<8x384xf32>
    %317 = arith.negf %316 : vector<8x384xf32>
    %318 = math.exp %317 : vector<8x384xf32>
    %cst_113 = arith.constant 1.000000e+00 : f32
    %319 = vector.broadcast %cst_113 : f32 to vector<8x384xf32>
    %320 = arith.addf %319, %318 : vector<8x384xf32>
    %321 = arith.divf %319, %320 : vector<8x384xf32>
    %322 = vector.extract_strided_slice %321 {offsets = [0, 0], sizes = [8, 128], strides = [1, 1]} : vector<8x384xf32> to vector<8x128xf32>
    %323 = vector.extract_strided_slice %321 {offsets = [0, 128], sizes = [8, 128], strides = [1, 1]} : vector<8x384xf32> to vector<8x128xf32>
    %324 = vector.extract_strided_slice %321 {offsets = [0, 256], sizes = [8, 128], strides = [1, 1]} : vector<8x384xf32> to vector<8x128xf32>
    %325 = vector.extract_strided_slice %315 {offsets = [0, 384], sizes = [8, 128], strides = [1, 1]} : vector<8x512xf32> to vector<8x128xf32>
    %326 = math.tanh %325 : vector<8x128xf32>
    %327 = arith.mulf %323, %305 : vector<8x128xf32>
    %328 = arith.mulf %322, %326 : vector<8x128xf32>
    %329 = arith.addf %327, %328 : vector<8x128xf32>
    %330 = math.tanh %329 : vector<8x128xf32>
    %331 = arith.mulf %324, %330 : vector<8x128xf32>
    %c3_i32_114 = arith.constant 3 : i32
    %c8_i32_115 = arith.constant 8 : i32
    %332 = arith.muli %c3_i32_114, %c8_i32_115 : i32
    %333 = tpu.assume_multiple %332, 8 : i32
    %334 = arith.index_cast %333 : i32 to index
    %c0_116 = arith.constant 0 : index
    %335 = vector.load %arg11[%334, %c0_116] : memref<64x512xf32, #tpu.memory_space<vmem>>, vector<8x512xf32>
    %336 = arith.truncf %331 : vector<8x128xf32> to vector<8x128xbf16>
    %c0_117 = arith.constant 0 : index
    %c0_118 = arith.constant 0 : index
    %337 = vector.load %arg6[%c0_117, %c0_118] : memref<128x512xbf16, #tpu.memory_space<vmem>>, vector<128x512xbf16>
    %cst_119 = arith.constant dense<0.000000e+00> : vector<8x512xf32>
    %338 = tpu.matmul %336, %337, %cst_119 {dimension_numbers = #tpu.dot_dimension_numbers<[1], [0], [0], [1], [0, 0, 1, 1], [], []>} : vector<8x128xbf16>, vector<128x512xbf16>, vector<8x512xf32> -> vector<8x512xf32>
    %339 = arith.addf %335, %338 : vector<8x512xf32>
    %340 = vector.extract_strided_slice %339 {offsets = [0, 0], sizes = [8, 384], strides = [1, 1]} : vector<8x512xf32> to vector<8x384xf32>
    %341 = arith.negf %340 : vector<8x384xf32>
    %342 = math.exp %341 : vector<8x384xf32>
    %cst_120 = arith.constant 1.000000e+00 : f32
    %343 = vector.broadcast %cst_120 : f32 to vector<8x384xf32>
    %344 = arith.addf %343, %342 : vector<8x384xf32>
    %345 = arith.divf %343, %344 : vector<8x384xf32>
    %346 = vector.extract_strided_slice %345 {offsets = [0, 0], sizes = [8, 128], strides = [1, 1]} : vector<8x384xf32> to vector<8x128xf32>
    %347 = vector.extract_strided_slice %345 {offsets = [0, 128], sizes = [8, 128], strides = [1, 1]} : vector<8x384xf32> to vector<8x128xf32>
    %348 = vector.extract_strided_slice %345 {offsets = [0, 256], sizes = [8, 128], strides = [1, 1]} : vector<8x384xf32> to vector<8x128xf32>
    %349 = vector.extract_strided_slice %339 {offsets = [0, 384], sizes = [8, 128], strides = [1, 1]} : vector<8x512xf32> to vector<8x128xf32>
    %350 = math.tanh %349 : vector<8x128xf32>
    %351 = arith.mulf %347, %329 : vector<8x128xf32>
    %352 = arith.mulf %346, %350 : vector<8x128xf32>
    %353 = arith.addf %351, %352 : vector<8x128xf32>
    %354 = math.tanh %353 : vector<8x128xf32>
    %355 = arith.mulf %348, %354 : vector<8x128xf32>
    %c4_i32_121 = arith.constant 4 : i32
    %c8_i32_122 = arith.constant 8 : i32
    %356 = arith.muli %c4_i32_121, %c8_i32_122 : i32
    %357 = tpu.assume_multiple %356, 8 : i32
    %358 = arith.index_cast %357 : i32 to index
    %c0_123 = arith.constant 0 : index
    %359 = vector.load %arg11[%358, %c0_123] : memref<64x512xf32, #tpu.memory_space<vmem>>, vector<8x512xf32>
    %360 = arith.truncf %355 : vector<8x128xf32> to vector<8x128xbf16>
    %c0_124 = arith.constant 0 : index
    %c0_125 = arith.constant 0 : index
    %361 = vector.load %arg6[%c0_124, %c0_125] : memref<128x512xbf16, #tpu.memory_space<vmem>>, vector<128x512xbf16>
    %cst_126 = arith.constant dense<0.000000e+00> : vector<8x512xf32>
    %362 = tpu.matmul %360, %361, %cst_126 {dimension_numbers = #tpu.dot_dimension_numbers<[1], [0], [0], [1], [0, 0, 1, 1], [], []>} : vector<8x128xbf16>, vector<128x512xbf16>, vector<8x512xf32> -> vector<8x512xf32>
    %363 = arith.addf %359, %362 : vector<8x512xf32>
    %364 = vector.extract_strided_slice %363 {offsets = [0, 0], sizes = [8, 384], strides = [1, 1]} : vector<8x512xf32> to vector<8x384xf32>
    %365 = arith.negf %364 : vector<8x384xf32>
    %366 = math.exp %365 : vector<8x384xf32>
    %cst_127 = arith.constant 1.000000e+00 : f32
    %367 = vector.broadcast %cst_127 : f32 to vector<8x384xf32>
    %368 = arith.addf %367, %366 : vector<8x384xf32>
    %369 = arith.divf %367, %368 : vector<8x384xf32>
    %370 = vector.extract_strided_slice %369 {offsets = [0, 0], sizes = [8, 128], strides = [1, 1]} : vector<8x384xf32> to vector<8x128xf32>
    %371 = vector.extract_strided_slice %369 {offsets = [0, 128], sizes = [8, 128], strides = [1, 1]} : vector<8x384xf32> to vector<8x128xf32>
    %372 = vector.extract_strided_slice %369 {offsets = [0, 256], sizes = [8, 128], strides = [1, 1]} : vector<8x384xf32> to vector<8x128xf32>
    %373 = vector.extract_strided_slice %363 {offsets = [0, 384], sizes = [8, 128], strides = [1, 1]} : vector<8x512xf32> to vector<8x128xf32>
    %374 = math.tanh %373 : vector<8x128xf32>
    %375 = arith.mulf %371, %353 : vector<8x128xf32>
    %376 = arith.mulf %370, %374 : vector<8x128xf32>
    %377 = arith.addf %375, %376 : vector<8x128xf32>
    %378 = math.tanh %377 : vector<8x128xf32>
    %379 = arith.mulf %372, %378 : vector<8x128xf32>
    %c5_i32_128 = arith.constant 5 : i32
    %c8_i32_129 = arith.constant 8 : i32
    %380 = arith.muli %c5_i32_128, %c8_i32_129 : i32
    %381 = tpu.assume_multiple %380, 8 : i32
    %382 = arith.index_cast %381 : i32 to index
    %c0_130 = arith.constant 0 : index
    %383 = vector.load %arg11[%382, %c0_130] : memref<64x512xf32, #tpu.memory_space<vmem>>, vector<8x512xf32>
    %384 = arith.truncf %379 : vector<8x128xf32> to vector<8x128xbf16>
    %c0_131 = arith.constant 0 : index
    %c0_132 = arith.constant 0 : index
    %385 = vector.load %arg6[%c0_131, %c0_132] : memref<128x512xbf16, #tpu.memory_space<vmem>>, vector<128x512xbf16>
    %cst_133 = arith.constant dense<0.000000e+00> : vector<8x512xf32>
    %386 = tpu.matmul %384, %385, %cst_133 {dimension_numbers = #tpu.dot_dimension_numbers<[1], [0], [0], [1], [0, 0, 1, 1], [], []>} : vector<8x128xbf16>, vector<128x512xbf16>, vector<8x512xf32> -> vector<8x512xf32>
    %387 = arith.addf %383, %386 : vector<8x512xf32>
    %388 = vector.extract_strided_slice %387 {offsets = [0, 0], sizes = [8, 384], strides = [1, 1]} : vector<8x512xf32> to vector<8x384xf32>
    %389 = arith.negf %388 : vector<8x384xf32>
    %390 = math.exp %389 : vector<8x384xf32>
    %cst_134 = arith.constant 1.000000e+00 : f32
    %391 = vector.broadcast %cst_134 : f32 to vector<8x384xf32>
    %392 = arith.addf %391, %390 : vector<8x384xf32>
    %393 = arith.divf %391, %392 : vector<8x384xf32>
    %394 = vector.extract_strided_slice %393 {offsets = [0, 0], sizes = [8, 128], strides = [1, 1]} : vector<8x384xf32> to vector<8x128xf32>
    %395 = vector.extract_strided_slice %393 {offsets = [0, 128], sizes = [8, 128], strides = [1, 1]} : vector<8x384xf32> to vector<8x128xf32>
    %396 = vector.extract_strided_slice %393 {offsets = [0, 256], sizes = [8, 128], strides = [1, 1]} : vector<8x384xf32> to vector<8x128xf32>
    %397 = vector.extract_strided_slice %387 {offsets = [0, 384], sizes = [8, 128], strides = [1, 1]} : vector<8x512xf32> to vector<8x128xf32>
    %398 = math.tanh %397 : vector<8x128xf32>
    %399 = arith.mulf %395, %377 : vector<8x128xf32>
    %400 = arith.mulf %394, %398 : vector<8x128xf32>
    %401 = arith.addf %399, %400 : vector<8x128xf32>
    %402 = math.tanh %401 : vector<8x128xf32>
    %403 = arith.mulf %396, %402 : vector<8x128xf32>
    %c6_i32_135 = arith.constant 6 : i32
    %c8_i32_136 = arith.constant 8 : i32
    %404 = arith.muli %c6_i32_135, %c8_i32_136 : i32
    %405 = tpu.assume_multiple %404, 8 : i32
    %406 = arith.index_cast %405 : i32 to index
    %c0_137 = arith.constant 0 : index
    %407 = vector.load %arg11[%406, %c0_137] : memref<64x512xf32, #tpu.memory_space<vmem>>, vector<8x512xf32>
    %408 = arith.truncf %403 : vector<8x128xf32> to vector<8x128xbf16>
    %c0_138 = arith.constant 0 : index
    %c0_139 = arith.constant 0 : index
    %409 = vector.load %arg6[%c0_138, %c0_139] : memref<128x512xbf16, #tpu.memory_space<vmem>>, vector<128x512xbf16>
    %cst_140 = arith.constant dense<0.000000e+00> : vector<8x512xf32>
    %410 = tpu.matmul %408, %409, %cst_140 {dimension_numbers = #tpu.dot_dimension_numbers<[1], [0], [0], [1], [0, 0, 1, 1], [], []>} : vector<8x128xbf16>, vector<128x512xbf16>, vector<8x512xf32> -> vector<8x512xf32>
    %411 = arith.addf %407, %410 : vector<8x512xf32>
    %412 = vector.extract_strided_slice %411 {offsets = [0, 0], sizes = [8, 384], strides = [1, 1]} : vector<8x512xf32> to vector<8x384xf32>
    %413 = arith.negf %412 : vector<8x384xf32>
    %414 = math.exp %413 : vector<8x384xf32>
    %cst_141 = arith.constant 1.000000e+00 : f32
    %415 = vector.broadcast %cst_141 : f32 to vector<8x384xf32>
    %416 = arith.addf %415, %414 : vector<8x384xf32>
    %417 = arith.divf %415, %416 : vector<8x384xf32>
    %418 = vector.extract_strided_slice %417 {offsets = [0, 0], sizes = [8, 128], strides = [1, 1]} : vector<8x384xf32> to vector<8x128xf32>
    %419 = vector.extract_strided_slice %417 {offsets = [0, 128], sizes = [8, 128], strides = [1, 1]} : vector<8x384xf32> to vector<8x128xf32>
    %420 = vector.extract_strided_slice %417 {offsets = [0, 256], sizes = [8, 128], strides = [1, 1]} : vector<8x384xf32> to vector<8x128xf32>
    %421 = vector.extract_strided_slice %411 {offsets = [0, 384], sizes = [8, 128], strides = [1, 1]} : vector<8x512xf32> to vector<8x128xf32>
    %422 = math.tanh %421 : vector<8x128xf32>
    %423 = arith.mulf %419, %401 : vector<8x128xf32>
    %424 = arith.mulf %418, %422 : vector<8x128xf32>
    %425 = arith.addf %423, %424 : vector<8x128xf32>
    %426 = math.tanh %425 : vector<8x128xf32>
    %427 = arith.mulf %420, %426 : vector<8x128xf32>
    %c7_i32_142 = arith.constant 7 : i32
    %c8_i32_143 = arith.constant 8 : i32
    %428 = arith.muli %c7_i32_142, %c8_i32_143 : i32
    %429 = tpu.assume_multiple %428, 8 : i32
    %430 = arith.index_cast %429 : i32 to index
    %c0_144 = arith.constant 0 : index
    %431 = vector.load %arg11[%430, %c0_144] : memref<64x512xf32, #tpu.memory_space<vmem>>, vector<8x512xf32>
    %432 = arith.truncf %427 : vector<8x128xf32> to vector<8x128xbf16>
    %c0_145 = arith.constant 0 : index
    %c0_146 = arith.constant 0 : index
    %433 = vector.load %arg6[%c0_145, %c0_146] : memref<128x512xbf16, #tpu.memory_space<vmem>>, vector<128x512xbf16>
    %cst_147 = arith.constant dense<0.000000e+00> : vector<8x512xf32>
    %434 = tpu.matmul %432, %433, %cst_147 {dimension_numbers = #tpu.dot_dimension_numbers<[1], [0], [0], [1], [0, 0, 1, 1], [], []>} : vector<8x128xbf16>, vector<128x512xbf16>, vector<8x512xf32> -> vector<8x512xf32>
    %435 = arith.addf %431, %434 : vector<8x512xf32>
    %436 = vector.extract_strided_slice %435 {offsets = [0, 0], sizes = [8, 384], strides = [1, 1]} : vector<8x512xf32> to vector<8x384xf32>
    %437 = arith.negf %436 : vector<8x384xf32>
    %438 = math.exp %437 : vector<8x384xf32>
    %cst_148 = arith.constant 1.000000e+00 : f32
    %439 = vector.broadcast %cst_148 : f32 to vector<8x384xf32>
    %440 = arith.addf %439, %438 : vector<8x384xf32>
    %441 = arith.divf %439, %440 : vector<8x384xf32>
    %442 = vector.extract_strided_slice %441 {offsets = [0, 0], sizes = [8, 128], strides = [1, 1]} : vector<8x384xf32> to vector<8x128xf32>
    %443 = vector.extract_strided_slice %441 {offsets = [0, 128], sizes = [8, 128], strides = [1, 1]} : vector<8x384xf32> to vector<8x128xf32>
    %444 = vector.extract_strided_slice %441 {offsets = [0, 256], sizes = [8, 128], strides = [1, 1]} : vector<8x384xf32> to vector<8x128xf32>
    %445 = vector.extract_strided_slice %435 {offsets = [0, 384], sizes = [8, 128], strides = [1, 1]} : vector<8x512xf32> to vector<8x128xf32>
    %446 = math.tanh %445 : vector<8x128xf32>
    %447 = arith.mulf %443, %425 : vector<8x128xf32>
    %448 = arith.mulf %442, %446 : vector<8x128xf32>
    %449 = arith.addf %447, %448 : vector<8x128xf32>
    %450 = math.tanh %449 : vector<8x128xf32>
    %451 = arith.mulf %444, %450 : vector<8x128xf32>
    %c8_i32_149 = arith.constant 8 : i32
    %452 = arith.truncf %451 : vector<8x128xf32> to vector<8x128xbf16>
    %c0_150 = arith.constant 0 : index
    %c0_151 = arith.constant 0 : index
    %453 = vector.load %arg8[%c0_150, %c0_151] : memref<128x128xbf16, #tpu.memory_space<vmem>>, vector<128x128xbf16>
    %cst_152 = arith.constant dense<0.000000e+00> : vector<8x128xf32>
    %454 = tpu.matmul %452, %453, %cst_152 {dimension_numbers = #tpu.dot_dimension_numbers<[1], [0], [0], [1], [0, 0, 1, 1], [], []>} : vector<8x128xbf16>, vector<128x128xbf16>, vector<8x128xf32> -> vector<8x128xf32>
    %c0_153 = arith.constant 0 : index
    %c0_154 = arith.constant 0 : index
    %455 = vector.load %arg9[%c0_153, %c0_154] : memref<1x128xf32, #tpu.memory_space<vmem>>, vector<1x128xf32>
    %456 = vector.broadcast %455 : vector<1x128xf32> to vector<8x128xf32>
    %457 = arith.addf %454, %456 : vector<8x128xf32>
    %c0_155 = arith.constant 0 : index
    %c0_156 = arith.constant 0 : index
    %458 = vector.load %arg10[%c0_155, %c0_156] : memref<8x128xf32, #tpu.memory_space<vmem>>, vector<8x128xf32>
    tpu.vector_store %arg10[%c0_155, %c0_156], %457 {strides = array<i32>} : memref<8x128xf32, #tpu.memory_space<vmem>>, vector<8x128xf32>,
    return
  }
  func.func @transform_0(%arg0: i32) -> (i32, i32, i32) {
    %c0_i32 = arith.constant 0 : i32
    %c0_i32_0 = arith.constant 0 : i32
    %c0_i32_1 = arith.constant 0 : i32
    return %c0_i32, %arg0, %c0_i32_0 : i32, i32, i32
  }
  func.func @transform_1(%arg0: i32) -> (i32, i32) {
    %c0_i32 = arith.constant 0 : i32
    %c0_i32_0 = arith.constant 0 : i32
    %c0_i32_1 = arith.constant 0 : i32
    return %c0_i32, %c0_i32_0 : i32, i32
  }
  func.func @transform_2(%arg0: i32) -> (i32, i32) {
    %c0_i32 = arith.constant 0 : i32
    %c0_i32_0 = arith.constant 0 : i32
    %c0_i32_1 = arith.constant 0 : i32
    return %c0_i32, %c0_i32_0 : i32, i32
  }
  func.func @transform_3(%arg0: i32) -> (i32, i32) {
    %c0_i32 = arith.constant 0 : i32
    %c0_i32_0 = arith.constant 0 : i32
    %c0_i32_1 = arith.constant 0 : i32
    return %c0_i32, %c0_i32_0 : i32, i32
  }
  func.func @transform_4(%arg0: i32) -> (i32, i32) {
    %c0_i32 = arith.constant 0 : i32
    %c0_i32_0 = arith.constant 0 : i32
    %c0_i32_1 = arith.constant 0 : i32
    return %c0_i32, %c0_i32_0 : i32, i32
  }
  func.func @transform_5(%arg0: i32) -> (i32, i32) {
    %c0_i32 = arith.constant 0 : i32
    %c0_i32_0 = arith.constant 0 : i32
    %c0_i32_1 = arith.constant 0 : i32
    return %c0_i32, %c0_i32_0 : i32, i32
  }
  func.func @transform_6(%arg0: i32) -> (i32, i32) {
    %c0_i32 = arith.constant 0 : i32
    %c0_i32_0 = arith.constant 0 : i32
    %c0_i32_1 = arith.constant 0 : i32
    return %c0_i32, %c0_i32_0 : i32, i32
  }
  func.func @transform_7(%arg0: i32) -> (i32, i32) {
    %c0_i32 = arith.constant 0 : i32
    %c0_i32_0 = arith.constant 0 : i32
    %c0_i32_1 = arith.constant 0 : i32
    return %c0_i32, %c0_i32_0 : i32, i32
  }
  func.func @transform_8(%arg0: i32) -> (i32, i32) {
    %c0_i32 = arith.constant 0 : i32
    %c0_i32_0 = arith.constant 0 : i32
    %c0_i32_1 = arith.constant 0 : i32
    return %c0_i32, %c0_i32_0 : i32, i32
  }
  func.func @transform_9(%arg0: i32) -> (i32, i32) {
    %c0_i32 = arith.constant 0 : i32
    %c0_i32_0 = arith.constant 0 : i32
    return %arg0, %c0_i32 : i32, i32
  }
}

</mosaic_0001>

<bundles_post_ra>
// kernel: lstm_model_forward.1
= control target key start
LH: loop header
LB: loop body
LE: loop exit
PB: predicated region body
PF: predicated region fallthrough
CT: control target
= control target key end

     0   :  { %vm75_vm0 = vcmask 1041408   ;;  %vm62_vm1 = vcmask 31744   ;;  %s9289_s1 = inlined_call_operand.vmem [shape: bf16[4,512], index: 1, kind: input, shape index: {}]   ;;  %s9290_s0 = inlined_call_operand.vmem [shape: f32[8,8,4], index: 0, kind: input, shape index: {}]   ;;  %s9291_s2 = inlined_call_operand.vmem [shape: bf16[128,512], index: 2, kind: input, shape index: {}]   ;;  %s9292_s3 = inlined_call_operand.vmem [shape: f32[1,512], index: 3, kind: input, shape index: {}]   ;;  %s9293_s4 = inlined_call_operand.vmem [shape: bf16[128,512], index: 4, kind: input, shape index: {}]   ;;  %s9294_s5 = inlined_call_operand.vmem [shape: bf16[128,512], index: 5, kind: input, shape index: {}]   ;;  %s9295_s6 = inlined_call_operand.vmem [shape: f32[1,512], index: 6, kind: input, shape index: {}]   ;;  %s9296_s8 = inlined_call_operand.vmem [shape: f32[1,128], index: 8, kind: input, shape index: {}]   ;;  %s9297_s7 = inlined_call_operand.vmem [shape: bf16[128,128], index: 7, kind: input, shape index: {}]   ;;  %s9298_s9 = inlined_call_operand.vmem [shape: f32[8,128], index: 9, kind: output, shape index: {}]  }
   0x1   :  { %v46_v0 = vld [vmem:[%s9289_s1] sm:$0xff]  ;;  %v35_v2 = vld [vmem:[%s9290_s0 + $0x8] sm:$0xff]  ;;  %v40_v3 = vld [vmem:[%s9290_s0 + $0x30] sm:$0xff] }
   0x2   :  { %57 = vst [vmem:[#allocation1] ss:$4 sm:$0xff] %v46_v0  ;;  %v34_v1 = vld [vmem:[%s9290_s0] sm:$0xff]  ;;  %v5880_v5 = vld [vmem:[%s9291_s2 + $0xec] sm:$0xf0]  ;;  %v41_v6 = vld [vmem:[%s9290_s0 + $0x38] sm:$0xff] }
   0x3   :  { %v4588_v4 = vld [vmem:[%s9291_s2 + $0xe0] sm:$0xf]  ;;  %v5878_v7 = vld [vmem:[%s9291_s2 + $0xe4] sm:$0xf]  ;;  %v4590_v8 = vld [vmem:[%s9291_s2 + $0xf0] sm:$0xf0]  ;;  %v6536_v20 = vpack.c.bf16 %v35_v2, %v34_v1  ;;  %v6538_v21 = vpack.c.bf16 %v41_v6, %v40_v3 }
   0x4   :  { %v4572_v9 = vld [vmem:[%s9291_s2 + $0xc0] sm:$0xf]  ;;  %v5876_v10 = vld [vmem:[%s9291_s2 + $0xcc] sm:$0xf0]  ;;  %v4596_v11 = vld [vmem:[%s9291_s2 + $0xe8] sm:$0xf]  ;;  %v4589_v16 = vor.u32 %v5880_v5, %v4588_v4  ;;  %v4593_v26 = vor.u32 %v5878_v7, %v4590_v8 }
   0x5   :  { %v5881_v12 = vld [vmem:[%s9291_s2 + $0xf4] sm:$0xf0]  ;;  %v5879_v13 = vld [vmem:[%s9291_s2 + $0xec] sm:$0xf]  ;;  %v4598_v24 = vld [vmem:[%s9291_s2 + $0xf8] sm:$0xf0]  ;;  %v4573_v29 = vor.u32 %v5876_v10, %v4572_v9 }
   0x6   :  { %v4597_v27 = vor.u32 %v5881_v12, %v4596_v11  ;;  %v5874_v28 = vld [vmem:[%s9291_s2 + $0xc4] sm:$0xf]  ;;  %v4574_v30 = vld [vmem:[%s9291_s2 + $0xd0] sm:$0xf0]  ;;  %v4580_v31 = vld [vmem:[%s9291_s2 + $0xc8] sm:$0xf]  ;;  %v4601_v33 = vor.u32 %v5879_v13, %v4598_v24 }
   0x7   :  { %v5877_v32 = vld [vmem:[%s9291_s2 + $0xd4] sm:$0xf0]  ;;  %v4556_v34 = vld [vmem:[%s9291_s2 + $0xa0] sm:$0xf]  ;;  %v5872_v35 = vld [vmem:[%s9291_s2 + $0xac] sm:$0xf0]  ;;  %v4577_v36 = vor.u32 %v5874_v28, %v4574_v30 }
   0x8   :  { %v4581_v37 = vor.u32 %v5877_v32, %v4580_v31  ;;  %v5870_v38 = vld [vmem:[%s9291_s2 + $0xa4] sm:$0xf]  ;;  %v4558_v39 = vld [vmem:[%s9291_s2 + $0xb0] sm:$0xf0]  ;;  %v4564_v40 = vld [vmem:[%s9291_s2 + $0xa8] sm:$0xf]  ;;  %v4557_v41 = vor.u32 %v5872_v35, %v4556_v34 }
   0x9   :  { %v58_v14 = vld.sshfl [vmem:[#allocation1] sm:$0xff pattern:$0x73625140]  ;;  %v60_v15 = vld.sshfl [vmem:[#allocation1 + $0x10] sm:$0xff pattern:$0x73625140]  ;;  %v4561_v50 = vor.u32 %v5870_v38, %v4558_v39 }
   0xa   :  { %v76_v17 = vsel %vm75_vm0, %v58_v14, 0  ;;  %v80_v18 = vsel %vm75_vm0, %v60_v15, 0  ;;  %v61_v19 = vld.sshfl [vmem:[#allocation1 + $0x18] sm:$0xff pattern:$0x73625140]  ;;  %v36_v62 = vld [vmem:[%s9290_s0 + $0x10] sm:$0xff] }
   0xb   :  { %91 = vmatpush.bf16.msra.mxu0 %v76_v17  ;;  %6182 = vmatpush.bf16.msra.mxu1 %v76_v17  ;;  %v82_v22 = vsel %vm75_vm0, %v61_v19, 0  ;;  %v59_v23 = vld.sshfl [vmem:[#allocation1 + $0x8] sm:$0xff pattern:$0x73625140]  ;;  %v5873_v42 = vld [vmem:[%s9291_s2 + $0xb4] sm:$0xf0] }
   0xc   :  { %149 = vmatpush.bf16.msra.mxu2 %v80_v18  ;;  %178 = vmatpush.bf16.msra.mxu3 %v82_v22  ;;  %v78_v25 = vsel %vm75_vm0, %v59_v23, 0  ;;  %v5875_v43 = vld [vmem:[%s9291_s2 + $0xcc] sm:$0xf]  ;;  %v4582_v44 = vld [vmem:[%s9291_s2 + $0xd8] sm:$0xf0]  ;;  %v4565_v52 = vor.u32 %v5873_v42, %v4564_v40 }
   0xd   :  { %v4540_v45 = vld [vmem:[%s9291_s2 + $0x80] sm:$0xf]  ;;  %v5868_v46 = vld [vmem:[%s9291_s2 + $0x8c] sm:$0xf0]  ;;  %v4585_v47 = vor.u32 %v5875_v43, %v4582_v44  ;;  %v5871_v48 = vld [vmem:[%s9291_s2 + $0xac] sm:$0xf] }
   0xe   :  { %4458 = vmatmul.msk.bf16.vlgmr.msra.gmra.mxu0 %vm62_vm1, %v6536_v20  ;;  %4461 = vmatmul.msk.bf16.vlgmr.msra.gmra.mxu1 %vm62_vm1, %v6538_v21  ;;  %v4566_v49 = vld [vmem:[%s9291_s2 + $0xb8] sm:$0xf0]  ;;  %v4524_v51 = vld [vmem:[%s9291_s2 + $0x60] sm:$0xf]  ;;  %v5866_v53 = vld [vmem:[%s9291_s2 + $0x84] sm:$0xf]  ;;  %v4541_v54 = vor.u32 %v5868_v46, %v4540_v45 }
   0xf   :  { %120 = vmatpush.bf16.msrb.mxu1 %v78_v25  ;;  %431 = vmatpush.bf16.msrb.mxu0 %v4589_v16  ;;  %v4542_v55 = vld [vmem:[%s9291_s2 + $0x90] sm:$0xf0]  ;;  %v4569_v56 = vor.u32 %v5871_v48, %v4566_v49  ;;  %v4548_v57 = vld [vmem:[%s9291_s2 + $0x88] sm:$0xf]  ;;  %v5869_v58 = vld [vmem:[%s9291_s2 + $0x94] sm:$0xf0] }
  0x10   :  { %4466 = vmatmul.msk.bf16.vlgmr.msra.gmra.mxu2 %vm62_vm1, %v6536_v20  ;;  %4470 = vmatmul.msk.bf16.vlgmr.msra.gmra.mxu3 %vm62_vm1, %v6536_v20  ;;  %v5864_v59 = vld [vmem:[%s9291_s2 + $0x6c] sm:$0xf0]  ;;  %v5867_v60 = vld [vmem:[%s9291_s2 + $0x8c] sm:$0xf]  ;;  %v4550_v61 = vld [vmem:[%s9291_s2 + $0x98] sm:$0xf0]  ;;  %v4545_v0 = vor.u32 %v5866_v53, %v4542_v55  ;;  %v4549_v1 = vor.u32 %v5869_v58, %v4548_v57 }
  0x11   :  { %457 = vmatpush.bf16.msrb.mxu2 %v4597_v27  ;;  %470 = vmatpush.bf16.msrb.mxu3 %v4601_v33  ;;  %v37_v63 = vld [vmem:[%s9290_s0 + $0x18] sm:$0xff]  ;;  %v4525_v2 = vor.u32 %v5864_v59, %v4524_v51  ;;  %v4553_v3 = vor.u32 %v5867_v60, %v4550_v61  ;;  %v4508_v5 = vld [vmem:[%s9291_s2 + $0x40] sm:$0xf]  ;;  %v5860_v6 = vld [vmem:[%s9291_s2 + $0x4c] sm:$0xf0] }
  0x12   :  { %v6631_v4 = vpack.c.bf16 %v37_v63, %v36_v62  ;;  %v4509_v7 = vor.u32 %v5860_v6, %v4508_v5  ;;  %v4532_v8 = vld [vmem:[%s9291_s2 + $0x68] sm:$0xf]  ;;  %v5865_v9 = vld [vmem:[%s9291_s2 + $0x74] sm:$0xf0]  ;;  %v5863_v10 = vld [vmem:[%s9291_s2 + $0x6c] sm:$0xf] }
  0x13   :  { %444 = vmatpush.bf16.msra.mxu1 %v4593_v26  ;;  %432 = vmatpush.bf16.msrb.mxu0 %v4573_v29  ;;  %v4492_v11 = vld [vmem:[%s9291_s2 + $0x20] sm:$0xf]  ;;  %v5856_v12 = vld [vmem:[%s9291_s2 + $0x2c] sm:$0xf0]  ;;  %v4533_v13 = vor.u32 %v5865_v9, %v4532_v8  ;;  %v4534_v14 = vld [vmem:[%s9291_s2 + $0x78] sm:$0xf0] }
  0x14   :  { %v5862_v15 = vld [vmem:[%s9291_s2 + $0x64] sm:$0xf]  ;;  %v4526_v16 = vld [vmem:[%s9291_s2 + $0x70] sm:$0xf0]  ;;  %v4537_v17 = vor.u32 %v5863_v10, %v4534_v14  ;;  %v4516_v18 = vld [vmem:[%s9291_s2 + $0x48] sm:$0xf]  ;;  %v4493_v26 = vor.u32 %v5856_v12, %v4492_v11 }
  0x15   :  { %458 = vmatpush.bf16.msrb.mxu2 %v4581_v37  ;;  %471 = vmatpush.bf16.msrb.mxu3 %v4585_v47  ;;  %v4476_v19 = vld [vmem:[%s9291_s2] sm:$0xf]  ;;  %v4529_v22 = vor.u32 %v5862_v15, %v4526_v16  ;;  %v5861_v23 = vld [vmem:[%s9291_s2 + $0x54] sm:$0xf0]  ;;  %v5859_v24 = vld [vmem:[%s9291_s2 + $0x4c] sm:$0xf] }
  0x16   :  { %v4518_v25 = vld [vmem:[%s9291_s2 + $0x58] sm:$0xf0]  ;;  %v4517_v27 = vor.u32 %v5861_v23, %v4516_v18  ;;  %v5858_v29 = vld [vmem:[%s9291_s2 + $0x44] sm:$0xf]  ;;  %v4510_v30 = vld [vmem:[%s9291_s2 + $0x50] sm:$0xf0] }
  0x17   :  { %445 = vmatpush.bf16.msra.mxu1 %v4577_v36  ;;  %433 = vmatpush.bf16.msrb.mxu0 %v4557_v41  ;;  %v4521_v28 = vor.u32 %v5859_v24, %v4518_v25  ;;  %v4500_v31 = vld [vmem:[%s9291_s2 + $0x28] sm:$0xf]  ;;  %v4513_v32 = vor.u32 %v5858_v29, %v4510_v30  ;;  %v5857_v33 = vld [vmem:[%s9291_s2 + $0x34] sm:$0xf0]  ;;  %v5855_v34 = vld [vmem:[%s9291_s2 + $0x2c] sm:$0xf] }
  0x18   :  { %v4502_v35 = vld [vmem:[%s9291_s2 + $0x38] sm:$0xf0]  ;;  %v4501_v36 = vor.u32 %v5857_v33, %v4500_v31  ;;  %v4484_v39 = vld [vmem:[%s9291_s2 + $0x8] sm:$0xf]  ;;  %v5853_v40 = vld [vmem:[%s9291_s2 + $0x14] sm:$0xf0] }
  0x19   :  { %459 = vmatpush.bf16.msrb.mxu2 %v4565_v52  ;;  %472 = vmatpush.bf16.msrb.mxu3 %v4569_v56  ;;  %v4505_v38 = vor.u32 %v5855_v34, %v4502_v35  ;;  %v5851_v41 = vld [vmem:[%s9291_s2 + $0xc] sm:$0xf]  ;;  %v4486_v42 = vld [vmem:[%s9291_s2 + $0x18] sm:$0xf0]  ;;  %v38_v43 = vld [vmem:[%s9290_s0 + $0x20] sm:$0xff]  ;;  %v4485_v45 = vor.u32 %v5853_v40, %v4484_v39 }
  0x1a   :  { %v39_v44 = vld [vmem:[%s9290_s0 + $0x28] sm:$0xff]  ;;  %v4489_v46 = vor.u32 %v5851_v41, %v4486_v42  ;;  %v5854_v48 = vld [vmem:[%s9291_s2 + $0x24] sm:$0xf]  ;;  %v4494_v49 = vld [vmem:[%s9291_s2 + $0x30] sm:$0xf0] }
  0x1b   :  { %446 = vmatpush.bf16.msra.mxu1 %v4561_v50  ;;  %434 = vmatpush.bf16.msrb.mxu0 %v4541_v54  ;;  %v44_v47 = vpack.c.bf16 %v39_v44, %v38_v43  ;;  %v4497_v50 = vor.u32 %v5854_v48, %v4494_v49  ;;  %v5850_v51 = vld [vmem:[%s9291_s2 + $0x4] sm:$0xf]  ;;  %v4478_v52 = vld [vmem:[%s9291_s2 + $0x10] sm:$0xf0]  ;;  %v6441_v54 = vmov 0  }
  0x1c   :  { %v4481_v53 = vor.u32 %v5850_v51, %v4478_v52  ;;  %v33_v55 = vld [vmem:[%s9292_s3] sm:$0xf]  ;;  %v5912_v43 = vld [vmem:[%s9291_s2 + $0xec] sm:$0xf0]  ;;  %v5910_v44 = vld [vmem:[%s9291_s2 + $0xe4] sm:$0xf] }
  0x1d   :  { %460 = vmatpush.bf16.msrb.mxu2 %v4549_v1  ;;  %473 = vmatpush.bf16.msrb.mxu3 %v4553_v3  ;;  %v6756_v56 = vperm.slane %v33_v55, 0  ;;  %v6780_v5 = vperm.slane %v33_v55, 3  ;;  %v6792_v12 = vperm.slane %v33_v55, 1  ;;  %v4719_v42 = vld [vmem:[%s9291_s2 + $0xe0] sm:$0xf] }
  0x1e   :  { %4459 = vmatmul.msk.bf16.gmra.mxu0 %vm62_vm1, %v6631_v4  ;;  %4462 = vmatmul.msk.bf16.vlgmr.msrb.gmra.mxu1 %vm62_vm1, %v6536_v20  ;;  %v5852_v20 = vld [vmem:[%s9291_s2 + $0xc] sm:$0xf0]  ;;  %v4720_v48 = vor.u32 %v5912_v43, %v4719_v42  ;;  %v5913_v51 = vld [vmem:[%s9291_s2 + $0xf4] sm:$0xf0]  ;;  %v5911_v52 = vld [vmem:[%s9291_s2 + $0xec] sm:$0xf] }
  0x1f   :  { %447 = vmatpush.bf16.msra.mxu1 %v4545_v0  ;;  %435 = vmatpush.bf16.msrb.mxu0 %v4525_v2  ;;  %v4477_v37 = vor.u32 %v5852_v20, %v4476_v19  ;;  %v5904_v42 = vld [vmem:[%s9291_s2 + $0xac] sm:$0xf0]  ;;  %v5902_v43 = vld [vmem:[%s9291_s2 + $0xa4] sm:$0xf] }
  0x20   :  { %4467 = vmatmul.msk.bf16.gmra.mxu2 %vm62_vm1, %v6631_v4  ;;  %4471 = vmatmul.msk.bf16.gmra.mxu3 %vm62_vm1, %v6631_v4 }
  0x21   :  { %461 = vmatpush.bf16.msrb.mxu2 %v4533_v13  ;;  %474 = vmatpush.bf16.msrb.mxu3 %v4537_v17 }
  0x23   :  { %436 = vmatpush.bf16.msrb.mxu0 %v4509_v7  ;;  %448 = vmatpush.bf16.msra.mxu1 %v4529_v22 }
  0x25   :  { %462 = vmatpush.bf16.msrb.mxu2 %v4517_v27  ;;  %475 = vmatpush.bf16.msrb.mxu3 %v4521_v28 }
  0x27   :  { %437 = vmatpush.bf16.msrb.mxu0 %v4493_v26  ;;  %449 = vmatpush.bf16.msra.mxu1 %v4513_v32 }
  0x29   :  { %463 = vmatpush.bf16.msrb.mxu2 %v4501_v36  ;;  %476 = vmatpush.bf16.msrb.mxu3 %v4505_v38 }
  0x2b   :  { %438 = vmatpush.bf16.msrb.mxu0 %v4477_v37  ;;  %450 = vmatpush.bf16.msra.mxu1 %v4497_v50  ;;  %v4727_v50 = vld [vmem:[%s9291_s2 + $0xe8] sm:$0xf] }
  0x2d   :  { %464 = vmatpush.bf16.msrb.mxu2 %v4485_v45  ;;  %477 = vmatpush.bf16.msrb.mxu3 %v4489_v46  ;;  %v4721_v45 = vld [vmem:[%s9291_s2 + $0xf0] sm:$0xf0] }
  0x2e   :  { %4460 = vmatmul.msk.bf16.gmra.mxu0 %vm62_vm1, %v44_v47  ;;  %4463 = vmatmul.msk.bf16.gmra.mxu1 %vm62_vm1, %v6631_v4  ;;  %v6778_v4 = vperm.slane %v33_v55, 2  ;;  %v4724_v49 = vor.u32 %v5910_v44, %v4721_v45  ;;  %v4729_v55 = vld [vmem:[%s9291_s2 + $0xf8] sm:$0xf0] }
  0x2f   :  { %451 = vmatpush.bf16.msra.mxu1 %v4481_v53  ;;  %751 = vmatpush.bf16.msra.mxu0 %v4720_v48 }
  0x30   :  { %4468 = vmatmul.msk.bf16.gmra.mxu2 %vm62_vm1, %v44_v47  ;;  %4472 = vmatmul.msk.bf16.gmra.mxu3 %vm62_vm1, %v44_v47 }
  0x33   :  { %764 = vmatpush.bf16.msrb.mxu1 %v4724_v49 }
  0x3e   :  { %4464 = vmatmul.msk.bf16.gmra.mxu1 %vm62_vm1, %v44_v47  ;;  %439 = vmatmul.bf16.vlgmr.msrb.gmra.mxu0 %v6441_v54 }
  0x40   :  { %4469 = vmatmul.msk.bf16.gmra.mxu2 %vm62_vm1, %v6538_v21  ;;  %4473 = vmatmul.msk.bf16.gmra.mxu3 %vm62_vm1, %v6538_v21 }
  0x4e   :  { %4465 = vmatmul.msk.bf16.gmra.mxu1 %vm62_vm1, %v6538_v21 }
  0x50   :  { %465 = vmatmul.bf16.vlgmr.msrb.gmra.mxu2 %v6441_v54  ;;  %478 = vmatmul.bf16.vlgmr.msrb.gmra.mxu3 %v6441_v54 }
  0x5e   :  { %452 = vmatmul.bf16.vlgmr.msra.gmra.mxu1 %v6441_v54 }
  0x8b   :  { %v93_v57 = vpop.f32.mrf.mxu0  ;;  %v108_v58 = vpop.f32.mrf.mxu1 }
  0x8c   :  { %v6759_v59 = vadd.f32 %v108_v58, %v6756_v56  ;;  %v94_v26 = vadd.f32 %v93_v57, %v6756_v56  ;;  %v4728_v58 = vor.u32 %v5913_v51, %v4727_v50  ;;  %v4689_v50 = vld [vmem:[%s9291_s2 + $0xb0] sm:$0xf0]  ;;  %v4695_v51 = vld [vmem:[%s9291_s2 + $0xa8] sm:$0xf] }
  0x8e   :  { %777 = vmatpush.bf16.msra.mxu2 %v4728_v58  ;;  %v5903_v58 = vld [vmem:[%s9291_s2 + $0xac] sm:$0xf] }
  0x93   :  { %v6761_v60 = vpop.f32.mrf.mxu2  ;;  %v6763_v21 = vpop.f32.mrf.mxu3 }
  0x94   :  { %v6765_v61 = vpop.f32.mrf.mxu0  ;;  %v6767_v62 = vpop.f32.mrf.mxu1  ;;  %v152_v44 = vadd.f32 %v6761_v60, %v6778_v4  ;;  %v181_v45 = vadd.f32 %v6763_v21, %v6780_v5  ;;  %v4692_v60 = vor.u32 %v5902_v43, %v4689_v50  ;;  %v5905_v21 = vld [vmem:[%s9291_s2 + $0xb4] sm:$0xf0] }
  0x9b   :  { %v6769_v63 = vpop.f32.mrf.mxu2  ;;  %v6771_v0 = vpop.f32.mrf.mxu3 }
  0x9c   :  { %v98_v1 = vpop.f32.mrf.mxu0  ;;  %v6773_v2 = vpop.f32.mrf.mxu1 }
  0x9d   :  { %v6776_v3 = vadd.f32 %v98_v1, %v6756_v56  ;;  %v4732_v1 = vor.u32 %v5911_v52, %v4729_v55 }
  0x9f   :  { %790 = vmatpush.bf16.msra.mxu3 %v4732_v1 }
  0xa3   :  { %v156_v6 = vpop.f32.mrf.mxu2  ;;  %v185_v7 = vpop.f32.mrf.mxu3 }
  0xa4   :  { %v6783_v8 = vadd.f32 %v156_v6, %v6778_v4  ;;  %v6786_v9 = vadd.f32 %v185_v7, %v6780_v5  ;;  %v6788_v10 = vpop.f32.mrf.mxu0  ;;  %v6790_v11 = vpop.f32.mrf.mxu1  ;;  %v4703_v6 = vld [vmem:[%s9291_s2 + $0xc0] sm:$0xf]  ;;  %v5908_v7 = vld [vmem:[%s9291_s2 + $0xcc] sm:$0xf0] }
  0xab   :  { %v6794_v13 = vpop.f32.mrf.mxu2  ;;  %v6796_v14 = vpop.f32.mrf.mxu3 }
  0xac   :  { %v103_v15 = vpop.f32.mrf.mxu0  ;;  %v127_v16 = vpop.f32.mrf.mxu1 }
  0xad   :  { %v6799_v17 = vadd.f32 %v103_v15, %v6756_v56  ;;  %v6802_v18 = vadd.f32 %v127_v16, %v6792_v12  ;;  %v5906_v15 = vld [vmem:[%s9291_s2 + $0xc4] sm:$0xf]  ;;  %v4704_v16 = vor.u32 %v5908_v7, %v4703_v6 }
  0xaf   :  { %752 = vmatpush.bf16.msra.mxu0 %v4704_v16  ;;  %v4696_v16 = vor.u32 %v5905_v21, %v4695_v51 }
  0xb3   :  { %v161_v19 = vpop.f32.mrf.mxu2  ;;  %v190_v20 = vpop.f32.mrf.mxu3 }
  0xb4   :  { %v6805_v22 = vadd.f32 %v161_v19, %v6778_v4  ;;  %v6808_v23 = vadd.f32 %v190_v20, %v6780_v5  ;;  %v6810_v24 = vpop.f32.mrf.mxu0  ;;  %v6812_v25 = vpop.f32.mrf.mxu1  ;;  %v4705_v19 = vld [vmem:[%s9291_s2 + $0xd0] sm:$0xf0]  ;;  %v4711_v20 = vld [vmem:[%s9291_s2 + $0xc8] sm:$0xf] }
  0xbb   :  { %v6815_v27 = vpop.f32.mrf.mxu2  ;;  %v6817_v28 = vpop.f32.mrf.mxu3 }
  0xbc   :  { %v132_v29 = vpop.f32.mrf.mxu1  ;;  %v440_v30 = vpop.f32.mrf.mxu0 }
  0xbd   :  { %v6820_v31 = vadd.f32 %v132_v29, %v6792_v12  ;;  %v483_v32 = vadd.f32 %v440_v30, %v94_v26  ;;  %v5909_v26 = vld [vmem:[%s9291_s2 + $0xd4] sm:$0xf0]  ;;  %v4708_v29 = vor.u32 %v5906_v15, %v4705_v19  ;;  %v4697_v19 = vld [vmem:[%s9291_s2 + $0xb8] sm:$0xf0] }
  0xbe   :  { %v4712_v30 = vor.u32 %v5909_v26, %v4711_v20  ;;  %v4700_v26 = vor.u32 %v5903_v58, %v4697_v19 }
  0xbf   :  { %v4602_v33 = vmul.f32 -1.442695, %v483_v32  ;;  %v5907_v32 = vld [vmem:[%s9291_s2 + $0xcc] sm:$0xf]  ;;  %765 = vmatpush.bf16.msrb.mxu1 %v4708_v29  ;;  %v4671_v29 = vld [vmem:[%s9291_s2 + $0x80] sm:$0xf] }
  0xc0   :  { %778 = vmatpush.bf16.msra.mxu2 %v4712_v30  ;;  %v5900_v30 = vld [vmem:[%s9291_s2 + $0x8c] sm:$0xf0] }
  0xc1   :  { %6185 = vpow2.f32 %v4602_v33  ;;  %v4713_v33 = vld [vmem:[%s9291_s2 + $0xd8] sm:$0xf0] }
  0xc3   :  { %v166_v34 = vpop.f32.mrf.mxu2  ;;  %v195_v35 = vpop.f32.mrf.mxu3  ;;  %766 = vmatpush.bf16.msrb.mxu1 %v4692_v60  ;;  %v5894_v60 = vld [vmem:[%s9291_s2 + $0x64] sm:$0xf] }
  0xc4   :  { %v6823_v36 = vadd.f32 %v166_v34, %v6778_v4  ;;  %v6826_v37 = vadd.f32 %v195_v35, %v6780_v5  ;;  %v6828_v38 = vpop.f32.mrf.mxu1  ;;  %v442_v39 = vpop.f32.mrf.mxu0  ;;  %v4716_v35 = vor.u32 %v5907_v32, %v4713_v33  ;;  %v5898_v32 = vld [vmem:[%s9291_s2 + $0x84] sm:$0xf]  ;;  %779 = vmatpush.bf16.msra.mxu2 %v4696_v16 }
  0xc6   :  { %791 = vmatpush.bf16.msra.mxu3 %v4716_v35  ;;  %v4672_v35 = vor.u32 %v5900_v30, %v4671_v29  ;;  %v5895_v29 = vld [vmem:[%s9291_s2 + $0x6c] sm:$0xf]  ;;  %v4665_v30 = vld [vmem:[%s9291_s2 + $0x78] sm:$0xf0] }
  0xc7   :  { %v6186_v40 = vpop.eup %6185 }
  0xc8   :  { %v6830_v41 = vadd.f32 1.0, %v6186_v40  ;;  %v4687_v40 = vld [vmem:[%s9291_s2 + $0xa0] sm:$0xf] }
  0xc9   :  { %v4688_v49 = vor.u32 %v5904_v42, %v4687_v40  ;;  %v4679_v40 = vld [vmem:[%s9291_s2 + $0x88] sm:$0xf] }
  0xca   :  { %6187 = vrcp.f32 %v6830_v41  ;;  %v508_v48 = vand.u32 2147483647, %v6830_v41  ;;  %v510_v7 = vand.u32 2147483648, %v6830_v41  ;;  %vm504_vm4 = vweird.f32 %v6830_v41  ;;  %792 = vmatpush.bf16.msra.mxu3 %v4700_v26 }
  0xcb   :  { %v6845_v46 = vpop.f32.mrf.mxu2  ;;  %v6847_v47 = vpop.f32.mrf.mxu3  ;;  %753 = vmatpush.bf16.msra.mxu0 %v4688_v49 }
  0xcc   :  { %v137_v53 = vpop.f32.mrf.mxu1  ;;  %vm6930_vm3 = vcmp.eq.f32.partialorder %v508_v48, 8.507059e+37  ;;  %v4681_v48 = vld [vmem:[%s9291_s2 + $0x98] sm:$0xf0]  ;;  %v511_v50 = vor.u32 1.1754944e-38, %v510_v7  ;;  %v123_v7 = vadd.f32 %v6773_v2, %v6792_v12 }
  0xcd   :  { %v6862_v57 = vadd.f32 %v137_v53, %v6792_v12 }
  0xcf   :  { %754 = vmatpush.bf16.msra.mxu0 %v4672_v35  ;;  %v4668_v35 = vor.u32 %v5895_v29, %v4665_v30  ;;  %v4633_v29 = vld [vmem:[%s9291_s2 + $0x38] sm:$0xf0] }
  0xd0   :  { %v6188_v34 = vpop.eup %6187 }
  0xd1   :  { %v500_v39 = vmul.f32 %v6188_v34, %v6830_v41  ;;  %vm505_vm2 = vweird.f32 %v6188_v34 }
  0xd2   :  { %vm506_vm5 = vmor %vm504_vm4, %vm505_vm2 }
  0xd3   :  { %v501_v52 = vsub.f32 1.0, %v500_v39  ;;  %v466_v53 = vpop.f32.mrf.mxu2  ;;  %v479_v55 = vpop.f32.mrf.mxu3  ;;  %v4673_v39 = vld [vmem:[%s9291_s2 + $0x90] sm:$0xf0] }
  0xd4   :  { %v485_v1 = vadd.f32 %v466_v53, %v152_v44  ;;  %v486_v6 = vadd.f32 %v479_v55, %v181_v45  ;;  %v6916_v15 = vpop.f32.mrf.mxu1  ;;  %v4676_v43 = vor.u32 %v5898_v32, %v4673_v39  ;;  %v5901_v44 = vld [vmem:[%s9291_s2 + $0x94] sm:$0xf0]  ;;  %v5899_v45 = vld [vmem:[%s9291_s2 + $0x8c] sm:$0xf]  ;;  %v4655_v53 = vld [vmem:[%s9291_s2 + $0x60] sm:$0xf] }
  0xd5   :  { %v502_v20 = vmul.f32 %v6188_v34, %v501_v52  ;;  %v4680_v41 = vor.u32 %v5901_v44, %v4679_v40  ;;  %v4684_v51 = vor.u32 %v5899_v45, %v4681_v48  ;;  %v5896_v55 = vld [vmem:[%s9291_s2 + $0x6c] sm:$0xf0]  ;;  %v4639_v40 = vld [vmem:[%s9291_s2 + $0x40] sm:$0xf]  ;;  %v4641_v45 = vld [vmem:[%s9291_s2 + $0x50] sm:$0xf0] }
  0xd6   :  { %6189 = vtanh.f32 %v486_v6  ;;  %v4604_v49 = vmul.f32 -1.442695, %v485_v1  ;;  %767 = vmatpush.bf16.msrb.mxu1 %v4676_v43  ;;  %v4656_v58 = vor.u32 %v5896_v55, %v4655_v53  ;;  %v4663_v1 = vld [vmem:[%s9291_s2 + $0x68] sm:$0xf]  ;;  %v5897_v6 = vld [vmem:[%s9291_s2 + $0x74] sm:$0xf0] }
  0xd7   :  { %v503_v42 = vadd.f32 %v6188_v34, %v502_v20  ;;  %780 = vmatpush.bf16.msra.mxu2 %v4680_v41  ;;  %793 = vmatpush.bf16.msra.mxu3 %v4684_v51  ;;  %v4664_v26 = vor.u32 %v5897_v6, %v4663_v1  ;;  %v5890_v43 = vld [vmem:[%s9291_s2 + $0x44] sm:$0xf]  ;;  %v4647_v48 = vld [vmem:[%s9291_s2 + $0x48] sm:$0xf]  ;;  %v4649_v53 = vld [vmem:[%s9291_s2 + $0x58] sm:$0xf0] }
  0xd8   :  { %6191 = vpow2.f32 %v4604_v49  ;;  %755 = vmatpush.bf16.msra.mxu0 %v4656_v58  ;;  %v5893_v49 = vld [vmem:[%s9291_s2 + $0x54] sm:$0xf0]  ;;  %v4644_v41 = vor.u32 %v5890_v43, %v4641_v45  ;;  %v4623_v55 = vld [vmem:[%s9291_s2 + $0x20] sm:$0xf]  ;;  %v4625_v1 = vld [vmem:[%s9291_s2 + $0x30] sm:$0xf0] }
  0xd9   :  { %v507_v52 = vsel %vm506_vm5, %v6188_v34, %v503_v42  ;;  %v4657_v34 = vld [vmem:[%s9291_s2 + $0x70] sm:$0xf0]  ;;  %v5892_v42 = vld [vmem:[%s9291_s2 + $0x4c] sm:$0xf0]  ;;  %v4648_v51 = vor.u32 %v5893_v49, %v4647_v48  ;;  %v4631_v6 = vld [vmem:[%s9291_s2 + $0x28] sm:$0xf] }
  0xda   :  { %v512_v21 = vsel %vm6930_vm3, %v511_v50, %v507_v52  ;;  %v4660_v20 = vor.u32 %v5894_v60, %v4657_v34  ;;  %v4640_v44 = vor.u32 %v5892_v42, %v4639_v40  ;;  %v5891_v52 = vld [vmem:[%s9291_s2 + $0x4c] sm:$0xf]  ;;  %v5888_v60 = vld [vmem:[%s9291_s2 + $0x2c] sm:$0xf0]  ;;  %v4609_v42 = vld [vmem:[%s9291_s2 + $0x10] sm:$0xf0] }
  0xdb   :  { %v468_v16 = vpop.f32.mrf.mxu2  ;;  %v481_v19 = vpop.f32.mrf.mxu3  ;;  %781 = vmatpush.bf16.msra.mxu2 %v4664_v26  ;;  %794 = vmatpush.bf16.msra.mxu3 %v4668_v35  ;;  %v4652_v58 = vor.u32 %v5891_v52, %v4649_v53  ;;  %v4624_v34 = vor.u32 %v5888_v60, %v4623_v55  ;;  %v5887_v26 = vld [vmem:[%s9291_s2 + $0x2c] sm:$0xf]  ;;  %v5884_v35 = vld [vmem:[%s9291_s2 + $0xc] sm:$0xf0]  ;;  %v4615_v43 = vld [vmem:[%s9291_s2 + $0x8] sm:$0xf] }
  0xdc   :  { %v6190_v32 = vpop.eup %6189  ;;  %v453_v33 = vpop.f32.mrf.mxu1  ;;  %768 = vmatpush.bf16.msrb.mxu1 %v4660_v20  ;;  %756 = vmatpush.bf16.msra.mxu0 %v4640_v44  ;;  %v5885_v44 = vld [vmem:[%s9291_s2 + $0x14] sm:$0xf0]  ;;  %v5883_v49 = vld [vmem:[%s9291_s2 + $0xc] sm:$0xf] }
  0xdd   :  { %v6979_v39 = vmul.f32 %v6190_v32, %v512_v21  ;;  %v484_v2 = vadd.f32 %v453_v33, %v123_v7  ;;  %v5886_v21 = vld [vmem:[%s9291_s2 + $0x24] sm:$0xf]  ;;  %v5889_v7 = vld [vmem:[%s9291_s2 + $0x34] sm:$0xf0]  ;;  %v4636_v32 = vor.u32 %v5887_v26, %v4633_v29  ;;  %v4607_v33 = vld [vmem:[%s9291_s2] sm:$0xf] }
  0xde   :  { %v6192_v16 = vpop.eup %6191  ;;  %v4628_v19 = vor.u32 %v5886_v21, %v4625_v1  ;;  %v4632_v20 = vor.u32 %v5889_v7, %v4631_v6  ;;  %v4608_v40 = vor.u32 %v5884_v35, %v4607_v33 }
  0xdf   :  { %v4603_v50 = vmul.f32 -1.442695, %v484_v2  ;;  %782 = vmatpush.bf16.msra.mxu2 %v4648_v51  ;;  %795 = vmatpush.bf16.msra.mxu3 %v4652_v58  ;;  %v5882_v2 = vld [vmem:[%s9291_s2 + $0x4] sm:$0xf]  ;;  %v498_v45 = vadd.f32 1.0, %v6192_v16 }
  0xe0   :  { %769 = vmatpush.bf16.msrb.mxu1 %v4644_v41  ;;  %757 = vmatpush.bf16.msra.mxu0 %v4624_v34  ;;  %v4612_v48 = vor.u32 %v5882_v2, %v4609_v42  ;;  %v4616_v41 = vor.u32 %v5885_v44, %v4615_v43 }
  0xe1   :  { %6193 = vpow2.f32 %v4603_v50  ;;  %v4617_v50 = vld [vmem:[%s9291_s2 + $0x18] sm:$0xf0]  ;;  %v540_v2 = vand.u32 2147483648, %v498_v45  ;;  %vm534_vm11 = vweird.f32 %v498_v45 }
  0xe2   :  { %v4620_v52 = vor.u32 %v5883_v49, %v4617_v50  ;;  %6195 = vrcp.f32 %v498_v45 }
  0xe3   :  { %783 = vmatpush.bf16.msra.mxu2 %v4632_v20  ;;  %796 = vmatpush.bf16.msra.mxu3 %v4636_v32  ;;  %v541_v43 = vor.u32 1.1754944e-38, %v540_v2  ;;  %v4844_v2 = vld [vmem:[%s9291_s2 + $0xd8] sm:$0xf0] }
  0xe4   :  { %v455_v30 = vpop.f32.mrf.mxu1  ;;  %770 = vmatpush.bf16.msrb.mxu1 %v4628_v19  ;;  %758 = vmatpush.bf16.msra.mxu0 %v4608_v40  ;;  %v538_v40 = vand.u32 2147483647, %v498_v45 }
  0xe6   :  { %vm539_vm13 = vcmp.eq.f32.partialorder %v538_v40, 8.507059e+37 }
  0xe7   :  { %v6194_v51 = vpop.eup %6193  ;;  %784 = vmatpush.bf16.msra.mxu2 %v4616_v41  ;;  %797 = vmatpush.bf16.msra.mxu3 %v4620_v52  ;;  %v5942_v41 = vld [vmem:[%s9291_s2 + $0xe4] sm:$0xf]  ;;  %v4852_v52 = vld [vmem:[%s9291_s2 + $0xf0] sm:$0xf0] }
  0xe8   :  { %v497_v53 = vadd.f32 1.0, %v6194_v51  ;;  %771 = vmatpush.bf16.msrb.mxu1 %v4612_v48  ;;  %v6196_v55 = vpop.eup %6195 }
  0xe9   :  { %v530_v58 = vmul.f32 %v6196_v55, %v498_v45  ;;  %vm535_vm10 = vweird.f32 %v6196_v55  ;;  %v5944_v45 = vld [vmem:[%s9291_s2 + $0xec] sm:$0xf0] }
  0xea   :  { %6197 = vrcp.f32 %v497_v53  ;;  %v525_v1 = vand.u32 2147483648, %v497_v53  ;;  %v523_v7 = vand.u32 2147483647, %v497_v53  ;;  %vm519_vm7 = vweird.f32 %v497_v53  ;;  %vm536_vm12 = vmor %vm534_vm11, %vm535_vm10 }
  0xeb   :  { %v531_v16 = vsub.f32 1.0, %v530_v58  ;;  %v5943_v58 = vld [vmem:[%s9291_s2 + $0xec] sm:$0xf] }
  0xec   :  { %v526_v20 = vor.u32 1.1754944e-38, %v525_v1  ;;  %vm524_vm9 = vcmp.eq.f32.partialorder %v523_v7, 8.507059e+37  ;;  %v5940_v7 = vld [vmem:[%s9291_s2 + $0xcc] sm:$0xf0] }
  0xed   :  { %v532_v29 = vmul.f32 %v6196_v55, %v531_v16  ;;  %v5938_v16 = vld [vmem:[%s9291_s2 + $0xc4] sm:$0xf] }
  0xef   :  { %v533_v35 = vadd.f32 %v6196_v55, %v532_v29  ;;  %v5941_v29 = vld [vmem:[%s9291_s2 + $0xd4] sm:$0xf0] }
  0xf0   :  { %v6198_v60 = vpop.eup %6197 }
  0xf1   :  { %v515_v21 = vmul.f32 %v6198_v60, %v497_v53  ;;  %vm520_vm6 = vweird.f32 %v6198_v60  ;;  %v537_v42 = vsel %vm536_vm12, %v6196_v55, %v533_v35  ;;  %v4858_v53 = vld [vmem:[%s9291_s2 + $0xe8] sm:$0xf]  ;;  %v5945_v55 = vld [vmem:[%s9291_s2 + $0xf4] sm:$0xf0]  ;;  %v5939_v35 = vld [vmem:[%s9291_s2 + $0xcc] sm:$0xf] }
  0xf2   :  { %vm521_vm8 = vmor %vm519_vm7, %vm520_vm6  ;;  %v542_v48 = vsel %vm539_vm13, %v541_v43, %v537_v42  ;;  %v4847_v40 = vor.u32 %v5939_v35, %v4844_v2  ;;  %v4818_v42 = vld [vmem:[%s9291_s2 + $0xa0] sm:$0xf]  ;;  %v5936_v43 = vld [vmem:[%s9291_s2 + $0xac] sm:$0xf0]  ;;  %v96_v35 = vadd.f32 %v6765_v61, %v6756_v56  ;;  %v125_v2 = vadd.f32 %v6790_v11, %v6792_v12 }
  0xf3   :  { %v516_v34 = vsub.f32 1.0, %v515_v21  ;;  %v4859_v21 = vor.u32 %v5945_v55, %v4858_v53  ;;  %v4802_v55 = vld [vmem:[%s9291_s2 + $0x80] sm:$0xf]  ;;  %v5927_v11 = vld [vmem:[%s9291_s2 + $0x6c] sm:$0xf] }
  0xf5   :  { %v517_v6 = vmul.f32 %v6198_v60, %v516_v34  ;;  %v4860_v34 = vld [vmem:[%s9291_s2 + $0xf8] sm:$0xf0]  ;;  %1098 = vmatpush.bf16.msrb.mxu2 %v4859_v21  ;;  %v5930_v21 = vld [vmem:[%s9291_s2 + $0x84] sm:$0xf] }
  0xf6   :  { %v4863_v1 = vor.u32 %v5943_v58, %v4860_v34  ;;  %v4804_v34 = vld [vmem:[%s9291_s2 + $0x90] sm:$0xf0] }
  0xf7   :  { %v518_v19 = vadd.f32 %v6198_v60, %v517_v6  ;;  %v4834_v6 = vld [vmem:[%s9291_s2 + $0xc0] sm:$0xf] }
  0xf8   :  { %1111 = vmatpush.bf16.msrb.mxu3 %v4863_v1  ;;  %v4810_v1 = vld [vmem:[%s9291_s2 + $0x88] sm:$0xf] }
  0xf9   :  { %v522_v26 = vsel %vm521_vm8, %v6198_v60, %v518_v19  ;;  %v4855_v60 = vor.u32 %v5942_v41, %v4852_v52  ;;  %v4835_v19 = vor.u32 %v5940_v7, %v4834_v6  ;;  %v4828_v52 = vld [vmem:[%s9291_s2 + $0xb8] sm:$0xf0]  ;;  %v5933_v6 = vld [vmem:[%s9291_s2 + $0x94] sm:$0xf0]  ;;  %v4807_v7 = vor.u32 %v5930_v21, %v4804_v34  ;;  %v4772_v34 = vld [vmem:[%s9291_s2 + $0x50] sm:$0xf0] }
  0xfa   :  { %v527_v30 = vsel %vm524_vm9, %v526_v20, %v522_v26  ;;  %v4836_v20 = vld [vmem:[%s9291_s2 + $0xd0] sm:$0xf0]  ;;  %v4842_v26 = vld [vmem:[%s9291_s2 + $0xc8] sm:$0xf] }
  0xfb   :  { %v545_v32 = vmul.f32 0.0, %v527_v30  ;;  %1085 = vmatpush.bf16.msra.mxu1 %v4855_v60  ;;  %v4839_v30 = vor.u32 %v5938_v16, %v4836_v20  ;;  %v5932_v60 = vld [vmem:[%s9291_s2 + $0x8c] sm:$0xf0]  ;;  %v4811_v16 = vor.u32 %v5933_v6, %v4810_v1  ;;  %v4812_v20 = vld [vmem:[%s9291_s2 + $0x98] sm:$0xf0] }
  0xfc   :  { %1112 = vmatpush.bf16.msrb.mxu3 %v4847_v40  ;;  %v4803_v58 = vor.u32 %v5932_v60, %v4802_v55  ;;  %v5922_v55 = vld [vmem:[%s9291_s2 + $0x44] sm:$0xf]  ;;  %v4778_v6 = vld [vmem:[%s9291_s2 + $0x48] sm:$0xf] }
  0xfd   :  { %v7054_v33 = vadd.f32 %v6979_v39, %v545_v32  ;;  %v4850_v39 = vld [vmem:[%s9291_s2 + $0xe0] sm:$0xf]  ;;  %v4843_v32 = vor.u32 %v5941_v29, %v4842_v26  ;;  %v4775_v1 = vor.u32 %v5922_v55, %v4772_v34 }
  0xfe   :  { %v4851_v51 = vor.u32 %v5944_v45, %v4850_v39  ;;  %v5937_v39 = vld [vmem:[%s9291_s2 + $0xb4] sm:$0xf0]  ;;  %v4786_v29 = vld [vmem:[%s9291_s2 + $0x60] sm:$0xf] }
  0xff   :  { %6199 = vtanh.f32 %v7054_v33  ;;  %1086 = vmatpush.bf16.msra.mxu1 %v4839_v30  ;;  %1099 = vmatpush.bf16.msrb.mxu2 %v4843_v32  ;;  %v5928_v30 = vld [vmem:[%s9291_s2 + $0x6c] sm:$0xf0]  ;;  %v5926_v32 = vld [vmem:[%s9291_s2 + $0x64] sm:$0xf] }
 0x100   :  { %1072 = vmatpush.bf16.msrb.mxu0 %v4851_v51  ;;  %v5935_v51 = vld [vmem:[%s9291_s2 + $0xac] sm:$0xf]  ;;  %v4787_v40 = vor.u32 %v5928_v30, %v4786_v29  ;;  %v5920_v29 = vld [vmem:[%s9291_s2 + $0x2c] sm:$0xf0]  ;;  %v154_v30 = vadd.f32 %v6769_v63, %v6778_v4 }
 0x101   :  { %v4831_v53 = vor.u32 %v5935_v51, %v4828_v52  ;;  %v4770_v52 = vld [vmem:[%s9291_s2 + $0x40] sm:$0xf] }
 0x103   :  { %1113 = vmatpush.bf16.msrb.mxu3 %v4831_v53  ;;  %v5924_v53 = vld [vmem:[%s9291_s2 + $0x4c] sm:$0xf0] }
 0x104   :  { %1073 = vmatpush.bf16.msrb.mxu0 %v4835_v19  ;;  %v5931_v19 = vld [vmem:[%s9291_s2 + $0x8c] sm:$0xf] }
 0x105   :  { %v6200_v44 = vpop.eup %6199  ;;  %v4815_v26 = vor.u32 %v5931_v19, %v4812_v20  ;;  %v4780_v20 = vld [vmem:[%s9291_s2 + $0x58] sm:$0xf0] }
 0x106   :  { %v549_v49 = vmul.f32 %v6200_v44, %v542_v48  ;;  %v5934_v44 = vld [vmem:[%s9291_s2 + $0xa4] sm:$0xf]  ;;  %v4819_v48 = vor.u32 %v5936_v43, %v4818_v42  ;;  %v4788_v42 = vld [vmem:[%s9291_s2 + $0x70] sm:$0xf0]  ;;  %v4794_v43 = vld [vmem:[%s9291_s2 + $0x68] sm:$0xf] }
 0x107   :  { %1114 = vmatpush.bf16.msrb.mxu3 %v4815_v26  ;;  %v4791_v61 = vor.u32 %v5926_v32, %v4788_v42  ;;  %v4754_v26 = vld [vmem:[%s9291_s2 + $0x20] sm:$0xf]  ;;  %v4762_v42 = vld [vmem:[%s9291_s2 + $0x28] sm:$0xf] }
 0x108   :  { %v550_v50 = vpack.c.bf16 %v549_v49, %v549_v49  ;;  %v4820_v49 = vld [vmem:[%s9291_s2 + $0xb0] sm:$0xf0]  ;;  %1074 = vmatpush.bf16.msrb.mxu0 %v4819_v48 }
 0x109   :  { %v4823_v45 = vor.u32 %v5934_v44, %v4820_v49  ;;  %v5929_v44 = vld [vmem:[%s9291_s2 + $0x74] sm:$0xf0] }
 0x10a   :  { %551 = vst [vmem:[#allocation3] sm:$0xf] %v550_v50  ;;  %759 = vmatmul.bf16.vlgmr.msra.gmra.mxu0 %v550_v50  ;;  %772 = vmatmul.bf16.vlgmr.msrb.gmra.mxu1 %v550_v50 }
 0x10b   :  { %785 = vmatmul.bf16.vlgmr.msra.gmra.mxu2 %v550_v50  ;;  %798 = vmatmul.bf16.vlgmr.msra.gmra.mxu3 %v550_v50  ;;  %v4826_v50 = vld [vmem:[%s9291_s2 + $0xa8] sm:$0xf] }
 0x10c   :  { %v4827_v41 = vor.u32 %v5937_v39, %v4826_v50  ;;  %1087 = vmatpush.bf16.msra.mxu1 %v4823_v45  ;;  %1075 = vmatpush.bf16.msrb.mxu0 %v4803_v58  ;;  %v4795_v50 = vor.u32 %v5929_v44, %v4794_v43  ;;  %v4796_v39 = vld [vmem:[%s9291_s2 + $0x78] sm:$0xf0]  ;;  %v4771_v58 = vor.u32 %v5924_v53, %v4770_v52  ;;  %v5916_v52 = vld [vmem:[%s9291_s2 + $0xc] sm:$0xf0]  ;;  %v5914_v53 = vld [vmem:[%s9291_s2 + $0x4] sm:$0xf] }
 0x10d   :  { %v4799_v51 = vor.u32 %v5927_v11, %v4796_v39 }
 0x10e   :  { %1100 = vmatpush.bf16.msrb.mxu2 %v4827_v41 }
 0x10f   :  { %1115 = vmatpush.bf16.msrb.mxu3 %v4799_v51  ;;  %v4738_v51 = vld [vmem:[%s9291_s2] sm:$0xf] }
 0x110   :  { %1088 = vmatpush.bf16.msra.mxu1 %v4807_v7  ;;  %1076 = vmatpush.bf16.msrb.mxu0 %v4787_v40  ;;  %v5925_v7 = vld [vmem:[%s9291_s2 + $0x54] sm:$0xf0]  ;;  %v4756_v40 = vld [vmem:[%s9291_s2 + $0x30] sm:$0xf0]  ;;  %v4739_v55 = vor.u32 %v5916_v52, %v4738_v51 }
 0x111   :  { %v4779_v19 = vor.u32 %v5925_v7, %v4778_v6  ;;  %v5915_v6 = vld [vmem:[%s9291_s2 + $0xc] sm:$0xf]  ;;  %v4748_v7 = vld [vmem:[%s9291_s2 + $0x18] sm:$0xf0] }
 0x112   :  { %1101 = vmatpush.bf16.msrb.mxu2 %v4811_v16  ;;  %v5923_v16 = vld [vmem:[%s9291_s2 + $0x4c] sm:$0xf] }
 0x113   :  { %v4783_v32 = vor.u32 %v5923_v16, %v4780_v20 }
 0x114   :  { %1089 = vmatpush.bf16.msra.mxu1 %v4791_v61  ;;  %1077 = vmatpush.bf16.msrb.mxu0 %v4771_v58  ;;  %v4764_v61 = vld [vmem:[%s9291_s2 + $0x38] sm:$0xf0]  ;;  %v5917_v58 = vld [vmem:[%s9291_s2 + $0x14] sm:$0xf0] }
 0x115   :  { %1116 = vmatpush.bf16.msrb.mxu3 %v4783_v32 }
 0x116   :  { %1102 = vmatpush.bf16.msrb.mxu2 %v4795_v50 }
 0x118   :  { %1090 = vmatpush.bf16.msra.mxu1 %v4775_v1 }
 0x11a   :  { %1103 = vmatpush.bf16.msrb.mxu2 %v4779_v19 }
 0x187   :  { %v760_v48 = vpop.f32.mrf.mxu0  ;;  %v773_v49 = vpop.f32.mrf.mxu1 }
 0x188   :  { %v803_v45 = vadd.f32 %v760_v48, %v96_v35  ;;  %v804_v41 = vadd.f32 %v773_v49, %v125_v2  ;;  %v4755_v35 = vor.u32 %v5920_v29, %v4754_v26  ;;  %v5918_v2 = vld [vmem:[%s9291_s2 + $0x24] sm:$0xf]  ;;  %v5921_v48 = vld [vmem:[%s9291_s2 + $0x34] sm:$0xf0]  ;;  %v5919_v49 = vld [vmem:[%s9291_s2 + $0x2c] sm:$0xf]  ;;  %v4751_v29 = vor.u32 %v5915_v6, %v4748_v7 }
 0x189   :  { %v4759_v63 = vor.u32 %v5918_v2, %v4756_v40  ;;  %v183_v40 = vadd.f32 %v6771_v0, %v6780_v5 }
 0x18a   :  { %v4733_v60 = vmul.f32 -1.442695, %v803_v45  ;;  %v4734_v21 = vmul.f32 -1.442695, %v804_v41  ;;  %v4763_v45 = vor.u32 %v5921_v48, %v4762_v42  ;;  %v4767_v41 = vor.u32 %v5919_v49, %v4764_v61  ;;  %1078 = vmatpush.bf16.msrb.mxu0 %v4755_v35 }
 0x18b   :  { %1091 = vmatpush.bf16.msra.mxu1 %v4759_v63 }
 0x18c   :  { %6201 = vpow2.f32 %v4733_v60  ;;  %v4740_v60 = vld [vmem:[%s9291_s2 + $0x10] sm:$0xf0]  ;;  %1104 = vmatpush.bf16.msrb.mxu2 %v4763_v45  ;;  %1117 = vmatpush.bf16.msrb.mxu3 %v4767_v41 }
 0x18d   :  { %6203 = vpow2.f32 %v4734_v21  ;;  %v4746_v21 = vld [vmem:[%s9291_s2 + $0x8] sm:$0xf]  ;;  %v4743_v1 = vor.u32 %v5914_v53, %v4740_v60 }
 0x18e   :  { %v786_v43 = vpop.f32.mrf.mxu2  ;;  %v799_v44 = vpop.f32.mrf.mxu3  ;;  %v4747_v19 = vor.u32 %v5917_v58, %v4746_v21  ;;  %1079 = vmatpush.bf16.msrb.mxu0 %v4739_v55 }
 0x18f   :  { %v805_v50 = vadd.f32 %v786_v43, %v154_v30  ;;  %v762_v11 = vpop.f32.mrf.mxu0  ;;  %v775_v39 = vpop.f32.mrf.mxu1  ;;  %1092 = vmatpush.bf16.msra.mxu1 %v4743_v1  ;;  %v806_v63 = vadd.f32 %v799_v44, %v183_v40 }
 0x190   :  { %1105 = vmatpush.bf16.msrb.mxu2 %v4747_v19  ;;  %1118 = vmatpush.bf16.msrb.mxu3 %v4751_v29 }
 0x191   :  { %v4735_v34 = vmul.f32 -1.442695, %v805_v50 }
 0x192   :  { %v6202_v16 = vpop.eup %6201 }
 0x193   :  { %v6204_v20 = vpop.eup %6203  ;;  %v816_v26 = vadd.f32 1.0, %v6202_v16  ;;  %6205 = vpow2.f32 %v4735_v34 }
 0x194   :  { %v817_v30 = vadd.f32 1.0, %v6204_v20 }
 0x195   :  { %6207 = vrcp.f32 %v816_v26  ;;  %v830_v39 = vand.u32 2147483648, %v816_v26  ;;  %v828_v51 = vand.u32 2147483647, %v816_v26  ;;  %vm824_vm0 = vweird.f32 %v816_v26 }
 0x196   :  { %6209 = vrcp.f32 %v817_v30  ;;  %v788_v32 = vpop.f32.mrf.mxu2  ;;  %v801_v35 = vpop.f32.mrf.mxu3  ;;  %v845_v45 = vand.u32 2147483648, %v817_v30  ;;  %v843_v53 = vand.u32 2147483647, %v817_v30  ;;  %vm839_vm1 = vweird.f32 %v817_v30 }
 0x197   :  { %v831_v60 = vor.u32 1.1754944e-38, %v830_v39  ;;  %vm829_vm4 = vcmp.eq.f32.partialorder %v828_v51, 8.507059e+37  ;;  %v4983_v39 = vld [vmem:[%s9291_s2 + $0xf0] sm:$0xf0] }
 0x198   :  { %v846_v58 = vor.u32 1.1754944e-38, %v845_v45  ;;  %vm844_vm5 = vcmp.eq.f32.partialorder %v843_v53, 8.507059e+37  ;;  %v4989_v45 = vld [vmem:[%s9291_s2 + $0xe8] sm:$0xf]  ;;  %v5975_v53 = vld [vmem:[%s9291_s2 + $0xec] sm:$0xf] }
 0x199   :  { %v6206_v2 = vpop.eup %6205 }
 0x19a   :  { %v818_v42 = vadd.f32 1.0, %v6206_v2 }
 0x19b   :  { %v6208_v43 = vpop.eup %6207 }
 0x19c   :  { %v6210_v48 = vpop.eup %6209  ;;  %v820_v49 = vmul.f32 %v6208_v43, %v816_v26  ;;  %6211 = vrcp.f32 %v818_v42  ;;  %vm825_vm14 = vweird.f32 %v6208_v43  ;;  %v860_v35 = vand.u32 2147483648, %v818_v42 }
 0x19d   :  { %v835_v61 = vmul.f32 %v6210_v48, %v817_v30  ;;  %6213 = vtanh.f32 %v806_v63  ;;  %vm840_vm15 = vweird.f32 %v6210_v48  ;;  %vm826_vm2 = vmor %vm824_vm0, %vm825_vm14  ;;  %vm854_vm7 = vweird.f32 %v818_v42 }
 0x19e   :  { %v821_v50 = vsub.f32 1.0, %v820_v49  ;;  %vm841_vm3 = vmor %vm839_vm1, %vm840_vm15  ;;  %v858_v2 = vand.u32 2147483647, %v818_v42 }
 0x19f   :  { %v836_v11 = vsub.f32 1.0, %v835_v61 }
 0x1a0   :  { %v822_v41 = vmul.f32 %v6208_v43, %v821_v50  ;;  %vm859_vm9 = vcmp.eq.f32.partialorder %v858_v2, 8.507059e+37  ;;  %v5974_v50 = vld [vmem:[%s9291_s2 + $0xe4] sm:$0xf] }
 0x1a1   :  { %v837_v52 = vmul.f32 %v6210_v48, %v836_v11  ;;  %v4986_v51 = vor.u32 %v5974_v50, %v4983_v39  ;;  %v4933_v50 = vld [vmem:[%s9291_s2 + $0x80] sm:$0xf]  ;;  %v5962_v39 = vld [vmem:[%s9291_s2 + $0x84] sm:$0xf] }
 0x1a2   :  { %v6212_v55 = vpop.eup %6211  ;;  %v823_v0 = vadd.f32 %v6208_v43, %v822_v41  ;;  %v5977_v41 = vld [vmem:[%s9291_s2 + $0xf4] sm:$0xf0] }
 0x1a3   :  { %v850_v44 = vmul.f32 %v6212_v55, %v818_v42  ;;  %v838_v21 = vadd.f32 %v6210_v48, %v837_v52  ;;  %v6214_v1 = vpop.eup %6213  ;;  %vm855_vm6 = vweird.f32 %v6212_v55  ;;  %v5976_v42 = vld [vmem:[%s9291_s2 + $0xec] sm:$0xf0]  ;;  %v4990_v52 = vor.u32 %v5977_v41, %v4989_v45  ;;  %1406 = vmatpush.bf16.msrb.mxu1 %v4986_v51  ;;  %v4935_v41 = vld [vmem:[%s9291_s2 + $0x90] sm:$0xf0]  ;;  %v4941_v51 = vld [vmem:[%s9291_s2 + $0x88] sm:$0xf] }
 0x1a4   :  { %v827_v34 = vsel %vm826_vm2, %v6208_v43, %v823_v0  ;;  %vm856_vm8 = vmor %vm854_vm7, %vm855_vm6  ;;  %v861_v43 = vor.u32 1.1754944e-38, %v860_v35  ;;  %v5966_v35 = vld [vmem:[%s9291_s2 + $0xa4] sm:$0xf] }
 0x1a5   :  { %v851_v6 = vsub.f32 1.0, %v850_v44  ;;  %v832_v7 = vsel %vm829_vm4, %v831_v60, %v827_v34  ;;  %v842_v16 = vsel %vm841_vm3, %v6210_v48, %v838_v21  ;;  %1419 = vmatpush.bf16.msra.mxu2 %v4990_v52  ;;  %v4965_v44 = vld [vmem:[%s9291_s2 + $0xc0] sm:$0xf]  ;;  %v5972_v60 = vld [vmem:[%s9291_s2 + $0xcc] sm:$0xf0] }
 0x1a6   :  { %v847_v19 = vsel %vm844_vm5, %v846_v58, %v842_v16  ;;  %v866_v20 = vmul.f32 %v6214_v1, %v832_v7  ;;  %v5970_v21 = vld [vmem:[%s9291_s2 + $0xc4] sm:$0xf]  ;;  %v4966_v58 = vor.u32 %v5972_v60, %v4965_v44  ;;  %v4967_v34 = vld [vmem:[%s9291_s2 + $0xd0] sm:$0xf0]  ;;  %v4973_v1 = vld [vmem:[%s9291_s2 + $0xc8] sm:$0xf] }
 0x1a7   :  { %v852_v29 = vmul.f32 %v6212_v55, %v851_v6  ;;  %v865_v32 = vmul.f32 %v847_v19, %v7054_v33  ;;  %v4981_v33 = vld [vmem:[%s9291_s2 + $0xe0] sm:$0xf]  ;;  %v5973_v6 = vld [vmem:[%s9291_s2 + $0xd4] sm:$0xf0]  ;;  %v4970_v7 = vor.u32 %v5970_v21, %v4967_v34  ;;  %v5971_v19 = vld [vmem:[%s9291_s2 + $0xcc] sm:$0xf] }
 0x1a8   :  { %v4982_v11 = vor.u32 %v5976_v42, %v4981_v33  ;;  %v4974_v16 = vor.u32 %v5973_v6, %v4973_v1  ;;  %v4959_v33 = vld [vmem:[%s9291_s2 + $0xb8] sm:$0xf0]  ;;  %v5965_v52 = vld [vmem:[%s9291_s2 + $0x94] sm:$0xf0]  ;;  %v4917_v21 = vld [vmem:[%s9291_s2 + $0x60] sm:$0xf] }
 0x1a9   :  { %v7258_v26 = vadd.f32 %v866_v20, %v865_v32  ;;  %v853_v30 = vadd.f32 %v6212_v55, %v852_v29  ;;  %v4975_v20 = vld [vmem:[%s9291_s2 + $0xd8] sm:$0xf0]  ;;  %1407 = vmatpush.bf16.msrb.mxu1 %v4970_v7  ;;  %v4949_v32 = vld [vmem:[%s9291_s2 + $0xa0] sm:$0xf]  ;;  %v5958_v34 = vld [vmem:[%s9291_s2 + $0x64] sm:$0xf] }
 0x1aa   :  { %1393 = vmatpush.bf16.msra.mxu0 %v4982_v11  ;;  %v4978_v29 = vor.u32 %v5971_v19, %v4975_v20  ;;  %1420 = vmatpush.bf16.msra.mxu2 %v4974_v16  ;;  %v5964_v11 = vld [vmem:[%s9291_s2 + $0x8c] sm:$0xf0]  ;;  %v4943_v44 = vld [vmem:[%s9291_s2 + $0x98] sm:$0xf0]  ;;  %v4919_v6 = vld [vmem:[%s9291_s2 + $0x70] sm:$0xf0] }
 0x1ab   :  { %6215 = vtanh.f32 %v7258_v26  ;;  %v857_v40 = vsel %vm856_vm8, %v6212_v55, %v853_v30  ;;  %v4991_v55 = vld [vmem:[%s9291_s2 + $0xf8] sm:$0xf0]  ;;  %v5968_v30 = vld [vmem:[%s9291_s2 + $0xac] sm:$0xf0]  ;;  %v4934_v45 = vor.u32 %v5964_v11, %v4933_v50  ;;  %v4925_v7 = vld [vmem:[%s9291_s2 + $0x68] sm:$0xf] }
 0x1ac   :  { %v862_v48 = vsel %vm859_vm9, %v861_v43, %v857_v40  ;;  %v4994_v0 = vor.u32 %v5975_v53, %v4991_v55  ;;  %v4950_v2 = vor.u32 %v5968_v30, %v4949_v32  ;;  %v4951_v40 = vld [vmem:[%s9291_s2 + $0xb0] sm:$0xf0]  ;;  %v4957_v43 = vld [vmem:[%s9291_s2 + $0xa8] sm:$0xf]  ;;  %v4938_v53 = vor.u32 %v5962_v39, %v4935_v41  ;;  %v5961_v16 = vld [vmem:[%s9291_s2 + $0x74] sm:$0xf0] }
 0x1ad   :  { %v4942_v55 = vor.u32 %v5965_v52, %v4941_v51  ;;  %v4926_v32 = vor.u32 %v5961_v16, %v4925_v7  ;;  %v5959_v30 = vld [vmem:[%s9291_s2 + $0x6c] sm:$0xf]  ;;  %v4909_v50 = vld [vmem:[%s9291_s2 + $0x48] sm:$0xf]  ;;  %v5957_v11 = vld [vmem:[%s9291_s2 + $0x54] sm:$0xf0] }
 0x1ae   :  { %1432 = vmatpush.bf16.msra.mxu3 %v4994_v0  ;;  %1394 = vmatpush.bf16.msra.mxu0 %v4966_v58  ;;  %v5963_v0 = vld [vmem:[%s9291_s2 + $0x8c] sm:$0xf]  ;;  %v5960_v58 = vld [vmem:[%s9291_s2 + $0x6c] sm:$0xf0]  ;;  %v4911_v41 = vld [vmem:[%s9291_s2 + $0x58] sm:$0xf0] }
 0x1af   :  { %v4946_v60 = vor.u32 %v5963_v0, %v4943_v44  ;;  %v4918_v1 = vor.u32 %v5960_v58, %v4917_v21  ;;  %v5955_v39 = vld [vmem:[%s9291_s2 + $0x4c] sm:$0xf]  ;;  %v4885_v51 = vld [vmem:[%s9291_s2 + $0x20] sm:$0xf]  ;;  %v5952_v52 = vld [vmem:[%s9291_s2 + $0x2c] sm:$0xf0] }
 0x1b0   :  { %v5950_v0 = vld [vmem:[%s9291_s2 + $0x24] sm:$0xf]  ;;  %v4887_v44 = vld [vmem:[%s9291_s2 + $0x30] sm:$0xf0]  ;;  %v4895_v7 = vld [vmem:[%s9291_s2 + $0x38] sm:$0xf0] }
 0x1b1   :  { %v6216_v63 = vpop.eup %6215 }
 0x1b2   :  { %v869_v49 = vmul.f32 %v6216_v63, %v862_v48  ;;  %1433 = vmatpush.bf16.msra.mxu3 %v4978_v29  ;;  %v5969_v63 = vld [vmem:[%s9291_s2 + $0xb4] sm:$0xf0]  ;;  %v4954_v48 = vor.u32 %v5966_v35, %v4951_v40  ;;  %1395 = vmatpush.bf16.msra.mxu0 %v4950_v2  ;;  %v4922_v29 = vor.u32 %v5958_v34, %v4919_v6  ;;  %v4927_v35 = vld [vmem:[%s9291_s2 + $0x78] sm:$0xf0]  ;;  %v5951_v6 = vld [vmem:[%s9291_s2 + $0x2c] sm:$0xf] }
 0x1b3   :  { %v4890_v34 = vor.u32 %v5950_v0, %v4887_v44 }
 0x1b4   :  { %v870_v61 = vpack.c.bf16 %v869_v49, %v869_v49  ;;  %v4958_v49 = vor.u32 %v5969_v63, %v4957_v43  ;;  %1408 = vmatpush.bf16.msrb.mxu1 %v4954_v48  ;;  %v4930_v43 = vor.u32 %v5959_v30, %v4927_v35  ;;  %v4901_v63 = vld [vmem:[%s9291_s2 + $0x40] sm:$0xf]  ;;  %v5956_v48 = vld [vmem:[%s9291_s2 + $0x4c] sm:$0xf0] }
 0x1b5   :  { %v4869_v30 = vld [vmem:[%s9291_s2] sm:$0xf]  ;;  %v5948_v35 = vld [vmem:[%s9291_s2 + $0xc] sm:$0xf0] }
 0x1b6   :  { %872 = vst [vmem:[#allocation3 + $0x4] sm:$0xf] %v870_v61  ;;  %1080 = vmatmul.bf16.vlgmr.msrb.gmra.mxu0 %v870_v61  ;;  %1093 = vmatmul.bf16.vlgmr.msra.gmra.mxu1 %v870_v61 }
 0x1b7   :  { %1106 = vmatmul.bf16.vlgmr.msrb.gmra.mxu2 %v870_v61  ;;  %1119 = vmatmul.bf16.vlgmr.msrb.gmra.mxu3 %v870_v61  ;;  %v5967_v61 = vld [vmem:[%s9291_s2 + $0xac] sm:$0xf] }
 0x1b8   :  { %v4962_v42 = vor.u32 %v5967_v61, %v4959_v33  ;;  %1421 = vmatpush.bf16.msra.mxu2 %v4958_v49  ;;  %1396 = vmatpush.bf16.msra.mxu0 %v4934_v45  ;;  %v5954_v49 = vld [vmem:[%s9291_s2 + $0x44] sm:$0xf]  ;;  %v4903_v33 = vld [vmem:[%s9291_s2 + $0x50] sm:$0xf0]  ;;  %v4910_v45 = vor.u32 %v5957_v11, %v4909_v50 }
 0x1b9   :  { %1409 = vmatpush.bf16.msrb.mxu1 %v4938_v53  ;;  %v4914_v53 = vor.u32 %v5955_v39, %v4911_v41 }
 0x1ba   :  { %1434 = vmatpush.bf16.msra.mxu3 %v4962_v42  ;;  %v4906_v42 = vor.u32 %v5954_v49, %v4903_v33 }
 0x1bc   :  { %1422 = vmatpush.bf16.msra.mxu2 %v4942_v55  ;;  %1397 = vmatpush.bf16.msra.mxu0 %v4918_v1  ;;  %v4886_v55 = vor.u32 %v5952_v52, %v4885_v51  ;;  %v5953_v1 = vld [vmem:[%s9291_s2 + $0x34] sm:$0xf0] }
 0x1bd   :  { %1410 = vmatpush.bf16.msrb.mxu1 %v4922_v29 }
 0x1be   :  { %1435 = vmatpush.bf16.msra.mxu3 %v4946_v60  ;;  %v4893_v60 = vld [vmem:[%s9291_s2 + $0x28] sm:$0xf] }
 0x1bf   :  { %v4894_v29 = vor.u32 %v5953_v1, %v4893_v60 }
 0x1c0   :  { %1423 = vmatpush.bf16.msra.mxu2 %v4926_v32  ;;  %v4898_v32 = vor.u32 %v5951_v6, %v4895_v7 }
 0x1c1   :  { %1411 = vmatpush.bf16.msrb.mxu1 %v4906_v42 }
 0x1c2   :  { %1436 = vmatpush.bf16.msra.mxu3 %v4930_v43  ;;  %v4877_v43 = vld [vmem:[%s9291_s2 + $0x8] sm:$0xf] }
 0x1c4   :  { %1424 = vmatpush.bf16.msra.mxu2 %v4910_v45 }
 0x1c5   :  { %1412 = vmatpush.bf16.msrb.mxu1 %v4890_v34 }
 0x1c6   :  { %1437 = vmatpush.bf16.msra.mxu3 %v4914_v53 }
 0x1c8   :  { %1425 = vmatpush.bf16.msra.mxu2 %v4894_v29 }
 0x1ca   :  { %1438 = vmatpush.bf16.msra.mxu3 %v4898_v32 }
 0x233   :  { %v1081_v19 = vpop.f32.mrf.mxu0  ;;  %v1094_v20 = vpop.f32.mrf.mxu1 }
 0x234   :  { %v1124_v2 = vadd.f32 %v1081_v19, %v6776_v3  ;;  %v1125_v40 = vadd.f32 %v1094_v20, %v6802_v18  ;;  %v4902_v18 = vor.u32 %v5956_v48, %v4901_v63  ;;  %v5949_v63 = vld [vmem:[%s9291_s2 + $0x14] sm:$0xf0] }
 0x235   :  { %v4878_v33 = vor.u32 %v5949_v63, %v4877_v43 }
 0x236   :  { %v4864_v61 = vmul.f32 -1.442695, %v1124_v2  ;;  %v4865_v3 = vmul.f32 -1.442695, %v1125_v40  ;;  %1398 = vmatpush.bf16.msra.mxu0 %v4902_v18  ;;  %v5946_v2 = vld [vmem:[%s9291_s2 + $0x4] sm:$0xf]  ;;  %v4870_v40 = vor.u32 %v5948_v35, %v4869_v30 }
 0x237   :  { %1426 = vmatpush.bf16.msra.mxu2 %v4878_v33 }
 0x238   :  { %6217 = vpow2.f32 %v4864_v61  ;;  %v5947_v61 = vld [vmem:[%s9291_s2 + $0xc] sm:$0xf] }
 0x239   :  { %6219 = vpow2.f32 %v4865_v3  ;;  %v4879_v3 = vld [vmem:[%s9291_s2 + $0x18] sm:$0xf0] }
 0x23a   :  { %v1107_v21 = vpop.f32.mrf.mxu2  ;;  %v1120_v58 = vpop.f32.mrf.mxu3  ;;  %1399 = vmatpush.bf16.msra.mxu0 %v4886_v55  ;;  %v4882_v11 = vor.u32 %v5947_v61, %v4879_v3 }
 0x23b   :  { %v1126_v16 = vadd.f32 %v1107_v21, %v6783_v8  ;;  %v1083_v19 = vpop.f32.mrf.mxu0  ;;  %v1096_v20 = vpop.f32.mrf.mxu1  ;;  %v4871_v8 = vld [vmem:[%s9291_s2 + $0x10] sm:$0xf0]  ;;  %v1127_v55 = vadd.f32 %v1120_v58, %v6786_v9 }
 0x23c   :  { %v4874_v49 = vor.u32 %v5946_v2, %v4871_v8  ;;  %1439 = vmatpush.bf16.msra.mxu3 %v4882_v11 }
 0x23d   :  { %v4866_v48 = vmul.f32 -1.442695, %v1126_v16 }
 0x23e   :  { %v6218_v18 = vpop.eup %6217  ;;  %1400 = vmatpush.bf16.msra.mxu0 %v4870_v40  ;;  %1413 = vmatpush.bf16.msrb.mxu1 %v4874_v49 }
 0x23f   :  { %v6220_v42 = vpop.eup %6219  ;;  %v1137_v50 = vadd.f32 1.0, %v6218_v18  ;;  %6221 = vpow2.f32 %v4866_v48 }
 0x240   :  { %v1138_v39 = vadd.f32 1.0, %v6220_v42 }
 0x241   :  { %6223 = vrcp.f32 %v1137_v50  ;;  %v1151_v1 = vand.u32 2147483648, %v1137_v50  ;;  %v1149_v16 = vand.u32 2147483647, %v1137_v50  ;;  %vm1145_vm12 = vweird.f32 %v1137_v50 }
 0x242   :  { %6225 = vrcp.f32 %v1138_v39  ;;  %v1109_v45 = vpop.f32.mrf.mxu2  ;;  %v1122_v41 = vpop.f32.mrf.mxu3  ;;  %v1166_v6 = vand.u32 2147483648, %v1138_v39  ;;  %v1164_v20 = vand.u32 2147483647, %v1138_v39  ;;  %vm1160_vm13 = vweird.f32 %v1138_v39 }
 0x243   :  { %v1152_v58 = vor.u32 1.1754944e-38, %v1151_v1  ;;  %vm1150_vm0 = vcmp.eq.f32.partialorder %v1149_v16, 8.507059e+37 }
 0x244   :  { %v1167_v35 = vor.u32 1.1754944e-38, %v1166_v6  ;;  %vm1165_vm1 = vcmp.eq.f32.partialorder %v1164_v20, 8.507059e+37  ;;  %v6007_v6 = vld [vmem:[%s9291_s2 + $0xec] sm:$0xf]  ;;  %v6004_v20 = vld [vmem:[%s9291_s2 + $0xcc] sm:$0xf0] }
 0x245   :  { %v6222_v51 = vpop.eup %6221 }
 0x246   :  { %v1139_v52 = vadd.f32 1.0, %v6222_v51 }
 0x247   :  { %v6224_v53 = vpop.eup %6223 }
 0x248   :  { %v6226_v0 = vpop.eup %6225  ;;  %v1141_v44 = vmul.f32 %v6224_v53, %v1137_v50  ;;  %6227 = vrcp.f32 %v1139_v52  ;;  %vm1146_vm10 = vweird.f32 %v6224_v53  ;;  %v1181_v42 = vand.u32 2147483648, %v1139_v52 }
 0x249   :  { %v1156_v60 = vmul.f32 %v6226_v0, %v1138_v39  ;;  %6229 = vtanh.f32 %v1127_v55  ;;  %vm1161_vm11 = vweird.f32 %v6226_v0  ;;  %vm1147_vm14 = vmor %vm1145_vm12, %vm1146_vm10  ;;  %vm1175_vm3 = vweird.f32 %v1139_v52  ;;  %v6006_v55 = vld [vmem:[%s9291_s2 + $0xe4] sm:$0xf] }
 0x24a   :  { %v1142_v21 = vsub.f32 1.0, %v1141_v44  ;;  %vm1162_vm15 = vmor %vm1160_vm13, %vm1161_vm11  ;;  %v1179_v50 = vand.u32 2147483647, %v1139_v52  ;;  %v1182_v39 = vor.u32 1.1754944e-38, %v1181_v42  ;;  %v5114_v44 = vld [vmem:[%s9291_s2 + $0xf0] sm:$0xf0] }
 0x24b   :  { %v1157_v34 = vsub.f32 1.0, %v1156_v60  ;;  %v5120_v60 = vld [vmem:[%s9291_s2 + $0xe8] sm:$0xf]  ;;  %v6001_v42 = vld [vmem:[%s9291_s2 + $0xb4] sm:$0xf0] }
 0x24c   :  { %v1143_v7 = vmul.f32 %v6224_v53, %v1142_v21  ;;  %vm1180_vm5 = vcmp.eq.f32.partialorder %v1179_v50, 8.507059e+37  ;;  %v6009_v21 = vld [vmem:[%s9291_s2 + $0xf4] sm:$0xf0] }
 0x24d   :  { %v1158_v19 = vmul.f32 %v6226_v0, %v1157_v34  ;;  %v5117_v34 = vor.u32 %v6006_v55, %v5114_v44  ;;  %v5121_v1 = vor.u32 %v6009_v21, %v5120_v60  ;;  %v5066_v55 = vld [vmem:[%s9291_s2 + $0x90] sm:$0xf0]  ;;  %v5997_v44 = vld [vmem:[%s9291_s2 + $0x94] sm:$0xf0] }
 0x24e   :  { %v6228_v29 = vpop.eup %6227  ;;  %v1144_v32 = vadd.f32 %v6224_v53, %v1143_v7  ;;  %v5122_v7 = vld [vmem:[%s9291_s2 + $0xf8] sm:$0xf0] }
 0x24f   :  { %v1171_v9 = vmul.f32 %v6228_v29, %v1139_v52  ;;  %v1159_v30 = vadd.f32 %v6226_v0, %v1158_v19  ;;  %v6230_v40 = vpop.eup %6229  ;;  %vm1176_vm2 = vweird.f32 %v6228_v29  ;;  %v6008_v52 = vld [vmem:[%s9291_s2 + $0xec] sm:$0xf0]  ;;  %v5125_v16 = vor.u32 %v6007_v6, %v5122_v7  ;;  %1727 = vmatpush.bf16.msra.mxu1 %v5117_v34  ;;  %1740 = vmatpush.bf16.msrb.mxu2 %v5121_v1  ;;  %v5096_v19 = vld [vmem:[%s9291_s2 + $0xc0] sm:$0xf]  ;;  %v5995_v34 = vld [vmem:[%s9291_s2 + $0x8c] sm:$0xf] }
 0x250   :  { %v1148_v2 = vsel %vm1147_vm14, %v6224_v53, %v1144_v32  ;;  %vm1177_vm4 = vmor %vm1175_vm3, %vm1176_vm2  ;;  %v5097_v32 = vor.u32 %v6004_v20, %v5096_v19  ;;  %v5074_v1 = vld [vmem:[%s9291_s2 + $0x98] sm:$0xf0]  ;;  %v5048_v7 = vld [vmem:[%s9291_s2 + $0x60] sm:$0xf]  ;;  %v101_v20 = vadd.f32 %v6788_v10, %v6756_v56 }
 0x251   :  { %v1172_v8 = vsub.f32 1.0, %v1171_v9  ;;  %v1153_v43 = vsel %vm1150_vm0, %v1152_v58, %v1148_v2  ;;  %v1163_v63 = vsel %vm1162_vm15, %v6226_v0, %v1159_v30  ;;  %1753 = vmatpush.bf16.msrb.mxu3 %v5125_v16  ;;  %v5098_v9 = vld [vmem:[%s9291_s2 + $0xd0] sm:$0xf0]  ;;  %v5104_v58 = vld [vmem:[%s9291_s2 + $0xc8] sm:$0xf]  ;;  %v5077_v6 = vor.u32 %v5995_v34, %v5074_v1 }
 0x252   :  { %v1168_v48 = vsel %vm1165_vm1, %v1167_v35, %v1163_v63  ;;  %v1187_v49 = vmul.f32 %v6230_v40, %v1153_v43  ;;  %v6005_v30 = vld [vmem:[%s9291_s2 + $0xd4] sm:$0xf0]  ;;  %v6003_v40 = vld [vmem:[%s9291_s2 + $0xcc] sm:$0xf]  ;;  %v5080_v63 = vld [vmem:[%s9291_s2 + $0xa0] sm:$0xf] }
 0x253   :  { %v1173_v61 = vmul.f32 %v6228_v29, %v1172_v8  ;;  %v1186_v3 = vmul.f32 %v1168_v48, %v7258_v26  ;;  %v5112_v26 = vld [vmem:[%s9291_s2 + $0xe0] sm:$0xf]  ;;  %v5105_v2 = vor.u32 %v6005_v30, %v5104_v58  ;;  %v5106_v8 = vld [vmem:[%s9291_s2 + $0xd8] sm:$0xf0]  ;;  %v6000_v48 = vld [vmem:[%s9291_s2 + $0xac] sm:$0xf0] }
 0x254   :  { %v5113_v0 = vor.u32 %v6008_v52, %v5112_v26  ;;  %v5109_v43 = vor.u32 %v6003_v40, %v5106_v8  ;;  %v5994_v26 = vld [vmem:[%s9291_s2 + $0x84] sm:$0xf]  ;;  %v5992_v16 = vld [vmem:[%s9291_s2 + $0x6c] sm:$0xf0]  ;;  %v5056_v58 = vld [vmem:[%s9291_s2 + $0x68] sm:$0xf] }
 0x255   :  { %v7458_v18 = vadd.f32 %v1187_v49, %v1186_v3  ;;  %v1174_v33 = vadd.f32 %v6228_v29, %v1173_v61  ;;  %1741 = vmatpush.bf16.msrb.mxu2 %v5105_v2  ;;  %v5998_v49 = vld [vmem:[%s9291_s2 + $0xa4] sm:$0xf]  ;;  %v5081_v61 = vor.u32 %v6000_v48, %v5080_v63  ;;  %v5082_v3 = vld [vmem:[%s9291_s2 + $0xb0] sm:$0xf0]  ;;  %v5069_v60 = vor.u32 %v5994_v26, %v5066_v55  ;;  %v5993_v30 = vld [vmem:[%s9291_s2 + $0x74] sm:$0xf0] }
 0x256   :  { %1714 = vmatpush.bf16.msrb.mxu0 %v5113_v0  ;;  %1754 = vmatpush.bf16.msrb.mxu3 %v5109_v43  ;;  %v5085_v50 = vor.u32 %v5998_v49, %v5082_v3  ;;  %v5072_v0 = vld [vmem:[%s9291_s2 + $0x88] sm:$0xf]  ;;  %v5990_v19 = vld [vmem:[%s9291_s2 + $0x64] sm:$0xf]  ;;  %v5057_v40 = vor.u32 %v5993_v30, %v5056_v58  ;;  %v5058_v8 = vld [vmem:[%s9291_s2 + $0x78] sm:$0xf0] }
 0x257   :  { %6231 = vtanh.f32 %v7458_v18  ;;  %v1178_v11 = vsel %vm1177_vm4, %v6228_v29, %v1174_v33  ;;  %v6002_v29 = vld [vmem:[%s9291_s2 + $0xc4] sm:$0xf]  ;;  %v5088_v33 = vld [vmem:[%s9291_s2 + $0xa8] sm:$0xf]  ;;  %v5073_v21 = vor.u32 %v5997_v44, %v5072_v0  ;;  %v5032_v49 = vld [vmem:[%s9291_s2 + $0x40] sm:$0xf]  ;;  %v159_v0 = vadd.f32 %v6794_v13, %v6778_v4 }
 0x258   :  { %v1183_v41 = vsel %vm1180_vm5, %v1182_v39, %v1178_v11  ;;  %v5101_v35 = vor.u32 %v6002_v29, %v5098_v9  ;;  %v5089_v11 = vor.u32 %v6001_v42, %v5088_v33  ;;  %v5999_v39 = vld [vmem:[%s9291_s2 + $0xac] sm:$0xf]  ;;  %v130_v29 = vadd.f32 %v6812_v25, %v6792_v12  ;;  %v5050_v9 = vld [vmem:[%s9291_s2 + $0x70] sm:$0xf0]  ;;  %v5986_v3 = vld [vmem:[%s9291_s2 + $0x44] sm:$0xf] }
 0x259   :  { %v5053_v10 = vor.u32 %v5990_v19, %v5050_v9  ;;  %v5991_v25 = vld [vmem:[%s9291_s2 + $0x6c] sm:$0xf]  ;;  %v5042_v26 = vld [vmem:[%s9291_s2 + $0x58] sm:$0xf0]  ;;  %v5984_v55 = vld [vmem:[%s9291_s2 + $0x2c] sm:$0xf0] }
 0x25a   :  { %1715 = vmatpush.bf16.msrb.mxu0 %v5097_v32  ;;  %1728 = vmatpush.bf16.msra.mxu1 %v5101_v35  ;;  %v5049_v32 = vor.u32 %v5992_v16, %v5048_v7  ;;  %v5061_v48 = vor.u32 %v5991_v25, %v5058_v8  ;;  %v5018_v34 = vld [vmem:[%s9291_s2 + $0x30] sm:$0xf0]  ;;  %v5024_v1 = vld [vmem:[%s9291_s2 + $0x28] sm:$0xf]  ;;  %v5985_v16 = vld [vmem:[%s9291_s2 + $0x34] sm:$0xf0] }
 0x25b   :  { %1742 = vmatpush.bf16.msrb.mxu2 %v5089_v11  ;;  %v5034_v11 = vld [vmem:[%s9291_s2 + $0x50] sm:$0xf0]  ;;  %v5983_v19 = vld [vmem:[%s9291_s2 + $0x2c] sm:$0xf]  ;;  %v5025_v58 = vor.u32 %v5985_v16, %v5024_v1  ;;  %v5008_v8 = vld [vmem:[%s9291_s2 + $0x8] sm:$0xf] }
 0x25c   :  { %v5002_v25 = vld [vmem:[%s9291_s2 + $0x10] sm:$0xf0] }
 0x25d   :  { %v6232_v45 = vpop.eup %6231 }
 0x25e   :  { %v1190_v51 = vmul.f32 %v6232_v45, %v1183_v41  ;;  %v5090_v45 = vld [vmem:[%s9291_s2 + $0xb8] sm:$0xf0]  ;;  %1716 = vmatpush.bf16.msrb.mxu0 %v5081_v61  ;;  %1729 = vmatpush.bf16.msra.mxu1 %v5085_v50  ;;  %v5988_v61 = vld [vmem:[%s9291_s2 + $0x4c] sm:$0xf0] }
 0x25f   :  { %v5093_v41 = vor.u32 %v5999_v39, %v5090_v45  ;;  %1743 = vmatpush.bf16.msrb.mxu2 %v5073_v21  ;;  %v5033_v50 = vor.u32 %v5988_v61, %v5032_v49  ;;  %v5037_v39 = vor.u32 %v5986_v3, %v5034_v11  ;;  %v5040_v45 = vld [vmem:[%s9291_s2 + $0x48] sm:$0xf]  ;;  %v5982_v21 = vld [vmem:[%s9291_s2 + $0x24] sm:$0xf]  ;;  %v5979_v49 = vld [vmem:[%s9291_s2 + $0xc] sm:$0xf] }
 0x260   :  { %v1191_v53 = vpack.c.bf16 %v1190_v51, %v1190_v51  ;;  %v5064_v51 = vld [vmem:[%s9291_s2 + $0x80] sm:$0xf]  ;;  %v5021_v13 = vor.u32 %v5982_v21, %v5018_v34  ;;  %v5010_v61 = vld [vmem:[%s9291_s2 + $0x18] sm:$0xf0] }
 0x261   :  { %1755 = vmatpush.bf16.msrb.mxu3 %v5093_v41  ;;  %v5989_v41 = vld [vmem:[%s9291_s2 + $0x54] sm:$0xf0]  ;;  %v5013_v11 = vor.u32 %v5979_v49, %v5010_v61 }
 0x262   :  { %1193 = vst [vmem:[#allocation3 + $0x8] sm:$0xf] %v1191_v53  ;;  %1401 = vmatmul.bf16.vlgmr.msra.gmra.mxu0 %v1191_v53  ;;  %1414 = vmatmul.bf16.vlgmr.msrb.gmra.mxu1 %v1191_v53 }
 0x263   :  { %1427 = vmatmul.bf16.vlgmr.msra.gmra.mxu2 %v1191_v53  ;;  %1440 = vmatmul.bf16.vlgmr.msra.gmra.mxu3 %v1191_v53  ;;  %v5996_v53 = vld [vmem:[%s9291_s2 + $0x8c] sm:$0xf0] }
 0x264   :  { %v5065_v52 = vor.u32 %v5996_v53, %v5064_v51  ;;  %1730 = vmatpush.bf16.msra.mxu1 %v5069_v60  ;;  %1744 = vmatpush.bf16.msrb.mxu2 %v5057_v40  ;;  %v5987_v51 = vld [vmem:[%s9291_s2 + $0x4c] sm:$0xf]  ;;  %v5041_v53 = vor.u32 %v5989_v41, %v5040_v45 }
 0x265   :  { %1756 = vmatpush.bf16.msrb.mxu3 %v5077_v6  ;;  %v5045_v44 = vor.u32 %v5987_v51, %v5042_v26 }
 0x266   :  { %1717 = vmatpush.bf16.msrb.mxu0 %v5065_v52  ;;  %v5016_v52 = vld [vmem:[%s9291_s2 + $0x20] sm:$0xf] }
 0x267   :  { %v5017_v60 = vor.u32 %v5984_v55, %v5016_v52 }
 0x268   :  { %1731 = vmatpush.bf16.msra.mxu1 %v5053_v10  ;;  %1745 = vmatpush.bf16.msrb.mxu2 %v5041_v53  ;;  %v5978_v10 = vld [vmem:[%s9291_s2 + $0x4] sm:$0xf]  ;;  %v188_v53 = vadd.f32 %v6796_v14, %v6780_v5 }
 0x269   :  { %1757 = vmatpush.bf16.msrb.mxu3 %v5061_v48  ;;  %v5005_v48 = vor.u32 %v5978_v10, %v5002_v25 }
 0x26a   :  { %1718 = vmatpush.bf16.msrb.mxu0 %v5049_v32 }
 0x26c   :  { %1732 = vmatpush.bf16.msra.mxu1 %v5037_v39  ;;  %1746 = vmatpush.bf16.msrb.mxu2 %v5025_v58 }
 0x26d   :  { %1758 = vmatpush.bf16.msrb.mxu3 %v5045_v44 }
 0x26e   :  { %1719 = vmatpush.bf16.msrb.mxu0 %v5033_v50 }
 0x270   :  { %1733 = vmatpush.bf16.msra.mxu1 %v5021_v13 }
 0x272   :  { %1720 = vmatpush.bf16.msrb.mxu0 %v5017_v60 }
 0x274   :  { %1734 = vmatpush.bf16.msra.mxu1 %v5005_v48 }
 0x2df   :  { %v1402_v35 = vpop.f32.mrf.mxu0  ;;  %v1415_v2 = vpop.f32.mrf.mxu1 }
 0x2e0   :  { %v1445_v43 = vadd.f32 %v1402_v35, %v101_v20  ;;  %v1446_v63 = vadd.f32 %v1415_v2, %v130_v29  ;;  %v5026_v20 = vld [vmem:[%s9291_s2 + $0x38] sm:$0xf0]  ;;  %v5000_v35 = vld [vmem:[%s9291_s2] sm:$0xf]  ;;  %v5980_v2 = vld [vmem:[%s9291_s2 + $0xc] sm:$0xf0] }
 0x2e1   :  { %v5029_v30 = vor.u32 %v5983_v19, %v5026_v20  ;;  %v5001_v40 = vor.u32 %v5980_v2, %v5000_v35 }
 0x2e2   :  { %v4995_v33 = vmul.f32 -1.442695, %v1445_v43  ;;  %v4996_v42 = vmul.f32 -1.442695, %v1446_v63  ;;  %v5981_v43 = vld [vmem:[%s9291_s2 + $0x14] sm:$0xf0] }
 0x2e3   :  { %1759 = vmatpush.bf16.msrb.mxu3 %v5029_v30  ;;  %1721 = vmatpush.bf16.msrb.mxu0 %v5001_v40 }
 0x2e4   :  { %6233 = vpow2.f32 %v4995_v33  ;;  %v5009_v33 = vor.u32 %v5981_v43, %v5008_v8 }
 0x2e5   :  { %6235 = vpow2.f32 %v4996_v42 }
 0x2e6   :  { %v1428_v6 = vpop.f32.mrf.mxu2  ;;  %v1441_v7 = vpop.f32.mrf.mxu3  ;;  %1747 = vmatpush.bf16.msrb.mxu2 %v5009_v33 }
 0x2e7   :  { %v1447_v29 = vadd.f32 %v1428_v6, %v159_v0  ;;  %v1404_v32 = vpop.f32.mrf.mxu0  ;;  %v1417_v9 = vpop.f32.mrf.mxu1  ;;  %1760 = vmatpush.bf16.msrb.mxu3 %v5013_v11  ;;  %v1448_v55 = vadd.f32 %v1441_v7, %v188_v53 }
 0x2e9   :  { %v4997_v63 = vmul.f32 -1.442695, %v1447_v29 }
 0x2ea   :  { %v6234_v3 = vpop.eup %6233 }
 0x2eb   :  { %v6236_v42 = vpop.eup %6235  ;;  %v1458_v50 = vadd.f32 1.0, %v6234_v3  ;;  %6237 = vpow2.f32 %v4997_v63 }
 0x2ec   :  { %v1459_v39 = vadd.f32 1.0, %v6236_v42 }
 0x2ed   :  { %6239 = vrcp.f32 %v1458_v50  ;;  %v1472_v1 = vand.u32 2147483648, %v1458_v50  ;;  %v1470_v16 = vand.u32 2147483647, %v1458_v50  ;;  %vm1466_vm8 = vweird.f32 %v1458_v50 }
 0x2ee   :  { %6241 = vrcp.f32 %v1459_v39  ;;  %v1430_v45 = vpop.f32.mrf.mxu2  ;;  %v1443_v41 = vpop.f32.mrf.mxu3  ;;  %v1487_v6 = vand.u32 2147483648, %v1459_v39  ;;  %v1485_v20 = vand.u32 2147483647, %v1459_v39  ;;  %vm1481_vm9 = vweird.f32 %v1459_v39 }
 0x2ef   :  { %v1473_v32 = vor.u32 1.1754944e-38, %v1472_v1  ;;  %vm1471_vm12 = vcmp.eq.f32.partialorder %v1470_v16, 8.507059e+37  ;;  %v6040_v41 = vld [vmem:[%s9291_s2 + $0xec] sm:$0xf0]  ;;  %v5227_v1 = vld [vmem:[%s9291_s2 + $0xc0] sm:$0xf] }
 0x2f0   :  { %v1488_v58 = vor.u32 1.1754944e-38, %v1487_v6  ;;  %vm1486_vm13 = vcmp.eq.f32.partialorder %v1485_v20, 8.507059e+37  ;;  %v6036_v6 = vld [vmem:[%s9291_s2 + $0xcc] sm:$0xf0]  ;;  %v5235_v20 = vld [vmem:[%s9291_s2 + $0xc8] sm:$0xf] }
 0x2f1   :  { %v6238_v51 = vpop.eup %6237  ;;  %v5228_v16 = vor.u32 %v6036_v6, %v5227_v1  ;;  %v6025_v1 = vld [vmem:[%s9291_s2 + $0x74] sm:$0xf0] }
 0x2f2   :  { %v1460_v26 = vadd.f32 1.0, %v6238_v51  ;;  %v6038_v51 = vld [vmem:[%s9291_s2 + $0xe4] sm:$0xf] }
 0x2f3   :  { %v6240_v52 = vpop.eup %6239 }
 0x2f4   :  { %v6242_v0 = vpop.eup %6241  ;;  %v1462_v44 = vmul.f32 %v6240_v52, %v1458_v50  ;;  %6243 = vrcp.f32 %v1460_v26  ;;  %vm1467_vm6 = vweird.f32 %v6240_v52  ;;  %v1502_v61 = vand.u32 2147483648, %v1460_v26 }
 0x2f5   :  { %v1477_v60 = vmul.f32 %v6242_v0, %v1459_v39  ;;  %6245 = vtanh.f32 %v1448_v55  ;;  %vm1482_vm7 = vweird.f32 %v6242_v0  ;;  %vm1468_vm10 = vmor %vm1466_vm8, %vm1467_vm6  ;;  %vm1496_vm15 = vweird.f32 %v1460_v26  ;;  %v6041_v55 = vld [vmem:[%s9291_s2 + $0xf4] sm:$0xf0] }
 0x2f6   :  { %v1463_v21 = vsub.f32 1.0, %v1462_v44  ;;  %vm1483_vm11 = vmor %vm1481_vm9, %vm1482_vm7  ;;  %v1500_v3 = vand.u32 2147483647, %v1460_v26  ;;  %v1503_v42 = vor.u32 1.1754944e-38, %v1502_v61  ;;  %v5221_v61 = vld [vmem:[%s9291_s2 + $0xb8] sm:$0xf0] }
 0x2f7   :  { %v1478_v34 = vsub.f32 1.0, %v1477_v60  ;;  %v6039_v60 = vld [vmem:[%s9291_s2 + $0xec] sm:$0xf] }
 0x2f8   :  { %v1464_v13 = vmul.f32 %v6240_v52, %v1463_v21  ;;  %vm1501_vm1 = vcmp.eq.f32.partialorder %v1500_v3, 8.507059e+37  ;;  %v5253_v21 = vld [vmem:[%s9291_s2 + $0xf8] sm:$0xf0] }
 0x2f9   :  { %v1479_v19 = vmul.f32 %v6242_v0, %v1478_v34  ;;  %v5256_v34 = vor.u32 %v6039_v60, %v5253_v21  ;;  %v5181_v21 = vld [vmem:[%s9291_s2 + $0x70] sm:$0xf0] }
 0x2fa   :  { %v6244_v29 = vpop.eup %6243  ;;  %v1465_v14 = vadd.f32 %v6240_v52, %v1464_v13  ;;  %v6034_v13 = vld [vmem:[%s9291_s2 + $0xc4] sm:$0xf] }
 0x2fb   :  { %v1492_v7 = vmul.f32 %v6244_v29, %v1460_v26  ;;  %v1480_v9 = vadd.f32 %v6242_v0, %v1479_v19  ;;  %v6246_v35 = vpop.eup %6245  ;;  %vm1497_vm14 = vweird.f32 %v6244_v29  ;;  %v5245_v26 = vld [vmem:[%s9291_s2 + $0xf0] sm:$0xf0]  ;;  %2074 = vmatpush.bf16.msra.mxu3 %v5256_v34  ;;  %v5187_v34 = vld [vmem:[%s9291_s2 + $0x68] sm:$0xf] }
 0x2fc   :  { %v1469_v30 = vsel %vm1468_vm10, %v6240_v52, %v1465_v14  ;;  %vm1498_vm0 = vmor %vm1496_vm15, %vm1497_vm14  ;;  %v5251_v52 = vld [vmem:[%s9291_s2 + $0xe8] sm:$0xf]  ;;  %v5229_v19 = vld [vmem:[%s9291_s2 + $0xd0] sm:$0xf0] }
 0x2fd   :  { %v1493_v2 = vsub.f32 1.0, %v1492_v7  ;;  %v1474_v10 = vsel %vm1471_vm12, %v1473_v32, %v1469_v30  ;;  %v1484_v40 = vsel %vm1483_vm11, %v6242_v0, %v1480_v9  ;;  %v5248_v0 = vor.u32 %v6038_v51, %v5245_v26  ;;  %v6035_v32 = vld [vmem:[%s9291_s2 + $0xcc] sm:$0xf]  ;;  %v5237_v9 = vld [vmem:[%s9291_s2 + $0xd8] sm:$0xf0] }
 0x2fe   :  { %v1489_v25 = vsel %vm1486_vm13, %v1488_v58, %v1484_v40  ;;  %v1508_v8 = vmul.f32 %v6246_v35, %v1474_v10  ;;  %v5252_v44 = vor.u32 %v6041_v55, %v5251_v52  ;;  %v5232_v14 = vor.u32 %v6034_v13, %v5229_v19  ;;  %v5211_v30 = vld [vmem:[%s9291_s2 + $0xa0] sm:$0xf]  ;;  %v6032_v35 = vld [vmem:[%s9291_s2 + $0xac] sm:$0xf0]  ;;  %v5213_v40 = vld [vmem:[%s9291_s2 + $0xb0] sm:$0xf0] }
 0x2ff   :  { %v1494_v43 = vmul.f32 %v6244_v29, %v1493_v2  ;;  %v1507_v63 = vmul.f32 %v1489_v25, %v7458_v18  ;;  %v5243_v18 = vld [vmem:[%s9291_s2 + $0xe0] sm:$0xf]  ;;  %2048 = vmatpush.bf16.msrb.mxu1 %v5248_v0  ;;  %v5240_v58 = vor.u32 %v6035_v32, %v5237_v9  ;;  %v6030_v2 = vld [vmem:[%s9291_s2 + $0xa4] sm:$0xf]  ;;  %v5212_v10 = vor.u32 %v6032_v35, %v5211_v30  ;;  %v5219_v25 = vld [vmem:[%s9291_s2 + $0xa8] sm:$0xf] }
 0x300   :  { %v5244_v53 = vor.u32 %v6040_v41, %v5243_v18  ;;  %2061 = vmatpush.bf16.msra.mxu2 %v5252_v44  ;;  %v6029_v18 = vld [vmem:[%s9291_s2 + $0x94] sm:$0xf0]  ;;  %v5205_v26 = vld [vmem:[%s9291_s2 + $0x98] sm:$0xf0]  ;;  %v5179_v55 = vld [vmem:[%s9291_s2 + $0x60] sm:$0xf]  ;;  %v5188_v19 = vor.u32 %v6025_v1, %v5187_v34 }
 0x301   :  { %v7662_v48 = vadd.f32 %v1508_v8, %v1507_v63  ;;  %v1495_v49 = vadd.f32 %v6244_v29, %v1494_v43  ;;  %2075 = vmatpush.bf16.msra.mxu3 %v5240_v58  ;;  %v6033_v8 = vld [vmem:[%s9291_s2 + $0xb4] sm:$0xf0]  ;;  %v5216_v43 = vor.u32 %v6030_v2, %v5213_v40  ;;  %v6024_v0 = vld [vmem:[%s9291_s2 + $0x6c] sm:$0xf0]  ;;  %v6022_v44 = vld [vmem:[%s9291_s2 + $0x64] sm:$0xf] }
 0x302   :  { %2035 = vmatpush.bf16.msra.mxu0 %v5244_v53  ;;  %v5220_v63 = vor.u32 %v6033_v8, %v5219_v25  ;;  %v6027_v53 = vld [vmem:[%s9291_s2 + $0x8c] sm:$0xf]  ;;  %v5180_v60 = vor.u32 %v6024_v0, %v5179_v55  ;;  %v5163_v9 = vld [vmem:[%s9291_s2 + $0x40] sm:$0xf]  ;;  %v6020_v58 = vld [vmem:[%s9291_s2 + $0x4c] sm:$0xf0] }
 0x303   :  { %6247 = vtanh.f32 %v7662_v48  ;;  %v1499_v33 = vsel %vm1498_vm0, %v6244_v29, %v1495_v49  ;;  %v6037_v29 = vld [vmem:[%s9291_s2 + $0xd4] sm:$0xf0]  ;;  %2049 = vmatpush.bf16.msrb.mxu1 %v5232_v14  ;;  %v6031_v49 = vld [vmem:[%s9291_s2 + $0xac] sm:$0xf]  ;;  %v5208_v52 = vor.u32 %v6027_v53, %v5205_v26  ;;  %v6018_v30 = vld [vmem:[%s9291_s2 + $0x44] sm:$0xf] }
 0x304   :  { %v1504_v11 = vsel %vm1501_vm1, %v1503_v42, %v1499_v33  ;;  %v5236_v7 = vor.u32 %v6037_v29, %v5235_v20  ;;  %v5224_v3 = vor.u32 %v6031_v49, %v5221_v61  ;;  %v5195_v33 = vld [vmem:[%s9291_s2 + $0x80] sm:$0xf]  ;;  %v6028_v42 = vld [vmem:[%s9291_s2 + $0x8c] sm:$0xf0]  ;;  %v6023_v20 = vld [vmem:[%s9291_s2 + $0x6c] sm:$0xf] }
 0x305   :  { %v5189_v29 = vld [vmem:[%s9291_s2 + $0x78] sm:$0xf0]  ;;  %v5165_v2 = vld [vmem:[%s9291_s2 + $0x50] sm:$0xf0]  ;;  %v5171_v40 = vld [vmem:[%s9291_s2 + $0x48] sm:$0xf] }
 0x306   :  { %2036 = vmatpush.bf16.msra.mxu0 %v5228_v16  ;;  %2062 = vmatpush.bf16.msra.mxu2 %v5236_v7  ;;  %v5184_v16 = vor.u32 %v6022_v44, %v5181_v21  ;;  %v5192_v32 = vor.u32 %v6023_v20, %v5189_v29  ;;  %v6021_v25 = vld [vmem:[%s9291_s2 + $0x54] sm:$0xf0]  ;;  %v6019_v8 = vld [vmem:[%s9291_s2 + $0x4c] sm:$0xf]  ;;  %v5147_v49 = vld [vmem:[%s9291_s2 + $0x20] sm:$0xf] }
 0x307   :  { %2050 = vmatpush.bf16.msrb.mxu1 %v5216_v43  ;;  %2076 = vmatpush.bf16.msra.mxu3 %v5224_v3  ;;  %v5172_v43 = vor.u32 %v6021_v25, %v5171_v40  ;;  %v6016_v61 = vld [vmem:[%s9291_s2 + $0x2c] sm:$0xf0]  ;;  %v5157_v53 = vld [vmem:[%s9291_s2 + $0x38] sm:$0xf0]  ;;  %v6010_v34 = vld [vmem:[%s9291_s2 + $0x4] sm:$0xf] }
 0x308   :  { %v6012_v21 = vld [vmem:[%s9291_s2 + $0xc] sm:$0xf0]  ;;  %v6011_v20 = vld [vmem:[%s9291_s2 + $0xc] sm:$0xf]  ;;  %v5141_v29 = vld [vmem:[%s9291_s2 + $0x18] sm:$0xf0] }
 0x309   :  { %v6248_v50 = vpop.eup %6247 }
 0x30a   :  { %v1511_v39 = vmul.f32 %v6248_v50, %v1504_v11  ;;  %2037 = vmatpush.bf16.msra.mxu0 %v5212_v10  ;;  %2063 = vmatpush.bf16.msra.mxu2 %v5220_v63  ;;  %v6026_v50 = vld [vmem:[%s9291_s2 + $0x84] sm:$0xf]  ;;  %v5196_v11 = vor.u32 %v6028_v42, %v5195_v33  ;;  %v5168_v10 = vor.u32 %v6018_v30, %v5165_v2  ;;  %v5173_v63 = vld [vmem:[%s9291_s2 + $0x58] sm:$0xf0] }
 0x30b   :  { %2077 = vmatpush.bf16.msra.mxu3 %v5208_v52  ;;  %v5176_v3 = vor.u32 %v6019_v8, %v5173_v63  ;;  %v5148_v33 = vor.u32 %v6016_v61, %v5147_v49  ;;  %v6014_v42 = vld [vmem:[%s9291_s2 + $0x24] sm:$0xf] }
 0x30c   :  { %v1512_v45 = vpack.c.bf16 %v1511_v39, %v1511_v39  ;;  %v5197_v39 = vld [vmem:[%s9291_s2 + $0x90] sm:$0xf0] }
 0x30d   :  { %v5200_v41 = vor.u32 %v6026_v50, %v5197_v39  ;;  %v5149_v50 = vld [vmem:[%s9291_s2 + $0x30] sm:$0xf0] }
 0x30e   :  { %1514 = vst [vmem:[#allocation3 + $0xc] sm:$0xf] %v1512_v45  ;;  %1722 = vmatmul.bf16.vlgmr.msrb.gmra.mxu0 %v1512_v45  ;;  %1735 = vmatmul.bf16.vlgmr.msra.gmra.mxu1 %v1512_v45 }
 0x30f   :  { %1748 = vmatmul.bf16.vlgmr.msrb.gmra.mxu2 %v1512_v45  ;;  %1761 = vmatmul.bf16.vlgmr.msrb.gmra.mxu3 %v1512_v45  ;;  %v5203_v45 = vld [vmem:[%s9291_s2 + $0x88] sm:$0xf] }
 0x310   :  { %v5204_v51 = vor.u32 %v6029_v18, %v5203_v45  ;;  %2038 = vmatpush.bf16.msra.mxu0 %v5196_v11  ;;  %2051 = vmatpush.bf16.msrb.mxu1 %v5200_v41  ;;  %v5155_v11 = vld [vmem:[%s9291_s2 + $0x28] sm:$0xf]  ;;  %v5152_v18 = vor.u32 %v6014_v42, %v5149_v50  ;;  %v6017_v41 = vld [vmem:[%s9291_s2 + $0x34] sm:$0xf0] }
 0x311   :  { %2078 = vmatpush.bf16.msra.mxu3 %v5192_v32  ;;  %v5156_v0 = vor.u32 %v6017_v41, %v5155_v11 }
 0x312   :  { %2064 = vmatpush.bf16.msra.mxu2 %v5204_v51  ;;  %v6015_v51 = vld [vmem:[%s9291_s2 + $0x2c] sm:$0xf] }
 0x313   :  { %v5160_v44 = vor.u32 %v6015_v51, %v5157_v53 }
 0x314   :  { %2039 = vmatpush.bf16.msra.mxu0 %v5180_v60  ;;  %2052 = vmatpush.bf16.msrb.mxu1 %v5184_v16  ;;  %v5131_v60 = vld [vmem:[%s9291_s2] sm:$0xf] }
 0x315   :  { %2079 = vmatpush.bf16.msra.mxu3 %v5176_v3  ;;  %v5132_v1 = vor.u32 %v6012_v21, %v5131_v60 }
 0x316   :  { %2065 = vmatpush.bf16.msra.mxu2 %v5188_v19 }
 0x318   :  { %2053 = vmatpush.bf16.msrb.mxu1 %v5168_v10 }
 0x319   :  { %2080 = vmatpush.bf16.msra.mxu3 %v5160_v44 }
 0x31a   :  { %2066 = vmatpush.bf16.msra.mxu2 %v5172_v43 }
 0x31c   :  { %2054 = vmatpush.bf16.msrb.mxu1 %v5152_v18 }
 0x31e   :  { %2067 = vmatpush.bf16.msra.mxu2 %v5156_v0 }
 0x38b   :  { %v1723_v6 = vpop.f32.mrf.mxu0  ;;  %v1736_v13 = vpop.f32.mrf.mxu1 }
 0x38c   :  { %v1766_v14 = vadd.f32 %v1723_v6, %v6799_v17  ;;  %v1767_v7 = vadd.f32 %v1736_v13, %v6820_v31  ;;  %v5164_v31 = vor.u32 %v6020_v58, %v5163_v9  ;;  %v5139_v6 = vld [vmem:[%s9291_s2 + $0x8] sm:$0xf]  ;;  %v6013_v13 = vld [vmem:[%s9291_s2 + $0x14] sm:$0xf0]  ;;  %v5144_v58 = vor.u32 %v6011_v20, %v5141_v29 }
 0x38e   :  { %v5126_v35 = vmul.f32 -1.442695, %v1766_v14  ;;  %v5127_v17 = vmul.f32 -1.442695, %v1767_v7  ;;  %2040 = vmatpush.bf16.msra.mxu0 %v5164_v31  ;;  %v5140_v7 = vor.u32 %v6013_v13, %v5139_v6  ;;  %2081 = vmatpush.bf16.msra.mxu3 %v5144_v58 }
 0x390   :  { %6249 = vpow2.f32 %v5126_v35  ;;  %2068 = vmatpush.bf16.msra.mxu2 %v5140_v7 }
 0x391   :  { %6251 = vpow2.f32 %v5127_v17 }
 0x392   :  { %v1749_v39 = vpop.f32.mrf.mxu2  ;;  %v1762_v45 = vpop.f32.mrf.mxu3  ;;  %2041 = vmatpush.bf16.msra.mxu0 %v5148_v33 }
 0x393   :  { %v1768_v26 = vadd.f32 %v1749_v39, %v6805_v22  ;;  %v1725_v52 = vpop.f32.mrf.mxu0  ;;  %v1738_v55 = vpop.f32.mrf.mxu1  ;;  %v5133_v22 = vld [vmem:[%s9291_s2 + $0x10] sm:$0xf0]  ;;  %v1769_v40 = vadd.f32 %v1762_v45, %v6808_v23 }
 0x394   :  { %v5136_v19 = vor.u32 %v6010_v34, %v5133_v22 }
 0x395   :  { %v5128_v16 = vmul.f32 -1.442695, %v1768_v26 }
 0x396   :  { %v6250_v14 = vpop.eup %6249  ;;  %2042 = vmatpush.bf16.msra.mxu0 %v5132_v1  ;;  %2055 = vmatpush.bf16.msrb.mxu1 %v5136_v19 }
 0x397   :  { %v6252_v32 = vpop.eup %6251  ;;  %v1779_v9 = vadd.f32 1.0, %v6250_v14  ;;  %6253 = vpow2.f32 %v5128_v16 }
 0x398   :  { %v1780_v30 = vadd.f32 1.0, %v6252_v32  ;;  %v6072_v32 = vld [vmem:[%s9291_s2 + $0xec] sm:$0xf0] }
 0x399   :  { %6255 = vrcp.f32 %v1779_v9  ;;  %v1793_v61 = vand.u32 2147483648, %v1779_v9  ;;  %v1791_v42 = vand.u32 2147483647, %v1779_v9  ;;  %vm1787_vm4 = vweird.f32 %v1779_v9 }
 0x39a   :  { %6257 = vrcp.f32 %v1780_v30  ;;  %v1751_v35 = vpop.f32.mrf.mxu2  ;;  %v1764_v17 = vpop.f32.mrf.mxu3  ;;  %v1808_v3 = vand.u32 2147483648, %v1780_v30  ;;  %v1806_v11 = vand.u32 2147483647, %v1780_v30  ;;  %vm1802_vm5 = vweird.f32 %v1780_v30 }
 0x39b   :  { %v1794_v45 = vor.u32 1.1754944e-38, %v1793_v61  ;;  %vm1792_vm8 = vcmp.eq.f32.partialorder %v1791_v42, 8.507059e+37  ;;  %v5382_v35 = vld [vmem:[%s9291_s2 + $0xe8] sm:$0xf]  ;;  %v6073_v17 = vld [vmem:[%s9291_s2 + $0xf4] sm:$0xf0] }
 0x39c   :  { %v1809_v51 = vor.u32 1.1754944e-38, %v1808_v3  ;;  %vm1807_vm9 = vcmp.eq.f32.partialorder %v1806_v11, 8.507059e+37  ;;  %v5360_v61 = vld [vmem:[%s9291_s2 + $0xd0] sm:$0xf0]  ;;  %v5366_v3 = vld [vmem:[%s9291_s2 + $0xc8] sm:$0xf] }
 0x39d   :  { %v6254_v31 = vpop.eup %6253  ;;  %v6067_v11 = vld [vmem:[%s9291_s2 + $0xcc] sm:$0xf] }
 0x39e   :  { %v1781_v2 = vadd.f32 1.0, %v6254_v31 }
 0x39f   :  { %v6256_v10 = vpop.eup %6255 }
 0x3a0   :  { %v6258_v25 = vpop.eup %6257  ;;  %v1783_v8 = vmul.f32 %v6256_v10, %v1779_v9  ;;  %6259 = vrcp.f32 %v1781_v2  ;;  %vm1788_vm2 = vweird.f32 %v6256_v10  ;;  %v1823_v6 = vand.u32 2147483648, %v1781_v2  ;;  %v6070_v9 = vld [vmem:[%s9291_s2 + $0xe4] sm:$0xf] }
 0x3a1   :  { %v1798_v43 = vmul.f32 %v6258_v25, %v1780_v30  ;;  %6261 = vtanh.f32 %v1769_v40  ;;  %vm1803_vm3 = vweird.f32 %v6258_v25  ;;  %vm1789_vm6 = vmor %vm1787_vm4, %vm1788_vm2  ;;  %vm1817_vm11 = vweird.f32 %v1781_v2  ;;  %v5376_v30 = vld [vmem:[%s9291_s2 + $0xf0] sm:$0xf0]  ;;  %v5384_v40 = vld [vmem:[%s9291_s2 + $0xf8] sm:$0xf0] }
 0x3a2   :  { %v1784_v63 = vsub.f32 1.0, %v1783_v8  ;;  %vm1804_vm7 = vmor %vm1802_vm5, %vm1803_vm3  ;;  %v1821_v13 = vand.u32 2147483647, %v1781_v2  ;;  %v1824_v19 = vor.u32 1.1754944e-38, %v1823_v6  ;;  %v5379_v31 = vor.u32 %v6070_v9, %v5376_v30  ;;  %v5358_v8 = vld [vmem:[%s9291_s2 + $0xc0] sm:$0xf] }
 0x3a3   :  { %v1799_v49 = vsub.f32 1.0, %v1798_v43  ;;  %v6068_v43 = vld [vmem:[%s9291_s2 + $0xcc] sm:$0xf0]  ;;  %v6058_v6 = vld [vmem:[%s9291_s2 + $0x84] sm:$0xf] }
 0x3a4   :  { %v1785_v33 = vmul.f32 %v6256_v10, %v1784_v63  ;;  %vm1822_vm13 = vcmp.eq.f32.partialorder %v1821_v13, 8.507059e+37  ;;  %2369 = vmatpush.bf16.msra.mxu1 %v5379_v31  ;;  %v6066_v63 = vld [vmem:[%s9291_s2 + $0xc4] sm:$0xf]  ;;  %v5310_v9 = vld [vmem:[%s9291_s2 + $0x60] sm:$0xf] }
 0x3a5   :  { %v1800_v50 = vmul.f32 %v6258_v25, %v1799_v49  ;;  %v5359_v49 = vor.u32 %v6068_v43, %v5358_v8  ;;  %v5363_v42 = vor.u32 %v6066_v63, %v5360_v61  ;;  %v6054_v30 = vld [vmem:[%s9291_s2 + $0x64] sm:$0xf]  ;;  %v5320_v63 = vld [vmem:[%s9291_s2 + $0x78] sm:$0xf0] }
 0x3a6   :  { %v6260_v39 = vpop.eup %6259  ;;  %v1786_v18 = vadd.f32 %v6256_v10, %v1785_v33  ;;  %v6069_v33 = vld [vmem:[%s9291_s2 + $0xd4] sm:$0xf0] }
 0x3a7   :  { %v1813_v23 = vmul.f32 %v6260_v39, %v1781_v2  ;;  %v1801_v41 = vadd.f32 %v6258_v25, %v1800_v50  ;;  %v6262_v26 = vpop.eup %6261  ;;  %vm1818_vm10 = vweird.f32 %v6260_v39  ;;  %v5383_v2 = vor.u32 %v6073_v17, %v5382_v35 }
 0x3a8   :  { %v1790_v53 = vsel %vm1789_vm6, %v6256_v10, %v1786_v18  ;;  %vm1819_vm12 = vmor %vm1817_vm11, %vm1818_vm10  ;;  %v6071_v10 = vld [vmem:[%s9291_s2 + $0xec] sm:$0xf]  ;;  %v5367_v50 = vor.u32 %v6069_v33, %v5366_v3  ;;  %2370 = vmatpush.bf16.msra.mxu1 %v5363_v42  ;;  %v106_v35 = vadd.f32 %v6810_v24, %v6756_v56  ;;  %v135_v17 = vadd.f32 %v6828_v38, %v6792_v12  ;;  %v5294_v33 = vld [vmem:[%s9291_s2 + $0x40] sm:$0xf] }
 0x3a9   :  { %v1814_v52 = vsub.f32 1.0, %v1813_v23  ;;  %v1795_v55 = vsel %vm1792_vm8, %v1794_v45, %v1790_v53  ;;  %v1805_v0 = vsel %vm1804_vm7, %v6258_v25, %v1801_v41  ;;  %v5387_v25 = vor.u32 %v6071_v10, %v5384_v40  ;;  %2382 = vmatpush.bf16.msrb.mxu2 %v5383_v2  ;;  %v5342_v23 = vld [vmem:[%s9291_s2 + $0xa0] sm:$0xf]  ;;  %v6064_v45 = vld [vmem:[%s9291_s2 + $0xac] sm:$0xf0] }
 0x3aa   :  { %v1810_v44 = vsel %vm1807_vm9, %v1809_v51, %v1805_v0  ;;  %v1829_v60 = vmul.f32 %v6262_v26, %v1795_v55  ;;  %v6062_v41 = vld [vmem:[%s9291_s2 + $0xa4] sm:$0xf]  ;;  %v5343_v51 = vor.u32 %v6064_v45, %v5342_v23  ;;  %v5344_v53 = vld [vmem:[%s9291_s2 + $0xb0] sm:$0xf0]  ;;  %v5350_v26 = vld [vmem:[%s9291_s2 + $0xa8] sm:$0xf] }
 0x3ab   :  { %v1815_v21 = vmul.f32 %v6260_v39, %v1814_v52  ;;  %v1828_v34 = vmul.f32 %v1810_v44, %v7662_v48  ;;  %v5374_v48 = vld [vmem:[%s9291_s2 + $0xe0] sm:$0xf]  ;;  %2395 = vmatpush.bf16.msrb.mxu3 %v5387_v25  ;;  %v6065_v52 = vld [vmem:[%s9291_s2 + $0xb4] sm:$0xf0]  ;;  %v5347_v55 = vor.u32 %v6062_v41, %v5344_v53  ;;  %v6063_v44 = vld [vmem:[%s9291_s2 + $0xac] sm:$0xf] }
 0x3ac   :  { %v5375_v58 = vor.u32 %v6072_v32, %v5374_v48  ;;  %v5351_v0 = vor.u32 %v6065_v52, %v5350_v26  ;;  %v5336_v48 = vld [vmem:[%s9291_s2 + $0x98] sm:$0xf0]  ;;  %v5312_v2 = vld [vmem:[%s9291_s2 + $0x70] sm:$0xf0]  ;;  %v5318_v10 = vld [vmem:[%s9291_s2 + $0x68] sm:$0xf] }
 0x3ad   :  { %v7862_v1 = vadd.f32 %v1829_v60, %v1828_v34  ;;  %v1816_v22 = vadd.f32 %v6260_v39, %v1815_v21  ;;  %2383 = vmatpush.bf16.msrb.mxu2 %v5367_v50  ;;  %v5352_v60 = vld [vmem:[%s9291_s2 + $0xb8] sm:$0xf0]  ;;  %2371 = vmatpush.bf16.msra.mxu1 %v5347_v55  ;;  %v5326_v34 = vld [vmem:[%s9291_s2 + $0x80] sm:$0xf]  ;;  %v6057_v40 = vld [vmem:[%s9291_s2 + $0x74] sm:$0xf0]  ;;  %v5315_v24 = vor.u32 %v6054_v30, %v5312_v2 }
 0x3ae   :  { %2356 = vmatpush.bf16.msrb.mxu0 %v5375_v58  ;;  %v5355_v21 = vor.u32 %v6063_v44, %v5352_v60  ;;  %v6056_v58 = vld [vmem:[%s9291_s2 + $0x6c] sm:$0xf0]  ;;  %v5319_v43 = vor.u32 %v6057_v40, %v5318_v10  ;;  %v6055_v38 = vld [vmem:[%s9291_s2 + $0x6c] sm:$0xf]  ;;  %v6050_v50 = vld [vmem:[%s9291_s2 + $0x44] sm:$0xf]  ;;  %v164_v44 = vadd.f32 %v6815_v27, %v6778_v4 }
 0x3af   :  { %6263 = vtanh.f32 %v7862_v1  ;;  %v1820_v16 = vsel %vm1819_vm12, %v6260_v39, %v1816_v22  ;;  %v5368_v39 = vld [vmem:[%s9291_s2 + $0xd8] sm:$0xf0]  ;;  %v6060_v22 = vld [vmem:[%s9291_s2 + $0x8c] sm:$0xf0]  ;;  %v5311_v31 = vor.u32 %v6056_v58, %v5310_v9  ;;  %v5323_v3 = vor.u32 %v6055_v38, %v5320_v63  ;;  %v5296_v23 = vld [vmem:[%s9291_s2 + $0x50] sm:$0xf0] }
 0x3b0   :  { %v1825_v29 = vsel %vm1822_vm13, %v1824_v19, %v1820_v16  ;;  %v5371_v18 = vor.u32 %v6067_v11, %v5368_v39  ;;  %v5327_v13 = vor.u32 %v6060_v22, %v5326_v34  ;;  %v5328_v16 = vld [vmem:[%s9291_s2 + $0x90] sm:$0xf0]  ;;  %v5334_v19 = vld [vmem:[%s9291_s2 + $0x88] sm:$0xf]  ;;  %v6052_v42 = vld [vmem:[%s9291_s2 + $0x4c] sm:$0xf0]  ;;  %v5299_v45 = vor.u32 %v6050_v50, %v5296_v23 }
 0x3b1   :  { %2384 = vmatpush.bf16.msrb.mxu2 %v5351_v0  ;;  %v5302_v41 = vld [vmem:[%s9291_s2 + $0x48] sm:$0xf]  ;;  %v6051_v53 = vld [vmem:[%s9291_s2 + $0x4c] sm:$0xf]  ;;  %v5304_v52 = vld [vmem:[%s9291_s2 + $0x58] sm:$0xf0] }
 0x3b2   :  { %2357 = vmatpush.bf16.msrb.mxu0 %v5359_v49  ;;  %2396 = vmatpush.bf16.msrb.mxu3 %v5371_v18  ;;  %v5295_v18 = vor.u32 %v6052_v42, %v5294_v33  ;;  %v5278_v55 = vld [vmem:[%s9291_s2 + $0x20] sm:$0xf]  ;;  %v6048_v0 = vld [vmem:[%s9291_s2 + $0x2c] sm:$0xf0]  ;;  %v5307_v60 = vor.u32 %v6051_v53, %v5304_v52  ;;  %v6046_v34 = vld [vmem:[%s9291_s2 + $0x24] sm:$0xf] }
 0x3b3   :  { %v5280_v22 = vld [vmem:[%s9291_s2 + $0x30] sm:$0xf0]  ;;  %v5262_v58 = vld [vmem:[%s9291_s2] sm:$0xf]  ;;  %v6044_v30 = vld [vmem:[%s9291_s2 + $0xc] sm:$0xf0] }
 0x3b4   :  { %v5283_v27 = vor.u32 %v6046_v34, %v5280_v22  ;;  %v5270_v2 = vld [vmem:[%s9291_s2 + $0x8] sm:$0xf]  ;;  %v6045_v10 = vld [vmem:[%s9291_s2 + $0x14] sm:$0xf0] }
 0x3b5   :  { %v6264_v20 = vpop.eup %6263  ;;  %v5271_v38 = vor.u32 %v6045_v10, %v5270_v2 }
 0x3b6   :  { %v1832_v14 = vmul.f32 %v6264_v20, %v1825_v29  ;;  %2358 = vmatpush.bf16.msrb.mxu0 %v5343_v51  ;;  %2397 = vmatpush.bf16.msrb.mxu3 %v5355_v21  ;;  %v6061_v20 = vld [vmem:[%s9291_s2 + $0x94] sm:$0xf0]  ;;  %v5331_v29 = vor.u32 %v6058_v6, %v5328_v16  ;;  %v5279_v21 = vor.u32 %v6048_v0, %v5278_v55  ;;  %v5286_v6 = vld [vmem:[%s9291_s2 + $0x28] sm:$0xf] }
 0x3b7   :  { %v6053_v51 = vld [vmem:[%s9291_s2 + $0x54] sm:$0xf0] }
 0x3b8   :  { %v1833_v7 = vpack.c.bf16 %v1832_v14, %v1832_v14  ;;  %v5335_v14 = vor.u32 %v6061_v20, %v5334_v19  ;;  %2372 = vmatpush.bf16.msra.mxu1 %v5331_v29  ;;  %v5303_v26 = vor.u32 %v6053_v51, %v5302_v41  ;;  %v6049_v19 = vld [vmem:[%s9291_s2 + $0x34] sm:$0xf0]  ;;  %v6047_v20 = vld [vmem:[%s9291_s2 + $0x2c] sm:$0xf]  ;;  %v5288_v29 = vld [vmem:[%s9291_s2 + $0x38] sm:$0xf0] }
 0x3b9   :  { %v5291_v9 = vor.u32 %v6047_v20, %v5288_v29 }
 0x3ba   :  { %1835 = vst [vmem:[#allocation3 + $0x10] sm:$0xf] %v1833_v7  ;;  %2043 = vmatmul.bf16.vlgmr.msra.gmra.mxu0 %v1833_v7  ;;  %2056 = vmatmul.bf16.vlgmr.msrb.gmra.mxu1 %v1833_v7 }
 0x3bb   :  { %2069 = vmatmul.bf16.vlgmr.msra.gmra.mxu2 %v1833_v7  ;;  %2082 = vmatmul.bf16.vlgmr.msra.gmra.mxu3 %v1833_v7  ;;  %v6059_v7 = vld [vmem:[%s9291_s2 + $0x8c] sm:$0xf] }
 0x3bc   :  { %2359 = vmatpush.bf16.msrb.mxu0 %v5327_v13  ;;  %v5339_v32 = vor.u32 %v6059_v7, %v5336_v48  ;;  %2385 = vmatpush.bf16.msrb.mxu2 %v5335_v14 }
 0x3bd   :  { %2373 = vmatpush.bf16.msra.mxu1 %v5315_v24  ;;  %v5272_v24 = vld [vmem:[%s9291_s2 + $0x18] sm:$0xf0] }
 0x3be   :  { %2398 = vmatpush.bf16.msrb.mxu3 %v5339_v32  ;;  %v5287_v32 = vor.u32 %v6049_v19, %v5286_v6 }
 0x3c0   :  { %2360 = vmatpush.bf16.msrb.mxu0 %v5311_v31  ;;  %2386 = vmatpush.bf16.msrb.mxu2 %v5319_v43  ;;  %v5264_v31 = vld [vmem:[%s9291_s2 + $0x10] sm:$0xf0] }
 0x3c1   :  { %2374 = vmatpush.bf16.msra.mxu1 %v5299_v45 }
 0x3c2   :  { %2399 = vmatpush.bf16.msrb.mxu3 %v5323_v3 }
 0x3c4   :  { %2361 = vmatpush.bf16.msrb.mxu0 %v5295_v18  ;;  %2387 = vmatpush.bf16.msrb.mxu2 %v5303_v26 }
 0x3c5   :  { %2375 = vmatpush.bf16.msra.mxu1 %v5283_v27 }
 0x3c6   :  { %2400 = vmatpush.bf16.msrb.mxu3 %v5307_v60 }
 0x3c8   :  { %2362 = vmatpush.bf16.msrb.mxu0 %v5279_v21  ;;  %2388 = vmatpush.bf16.msrb.mxu2 %v5287_v32 }
 0x3ca   :  { %2401 = vmatpush.bf16.msrb.mxu3 %v5291_v9 }
 0x3cc   :  { %2389 = vmatpush.bf16.msrb.mxu2 %v5271_v38 }
 0x437   :  { %v2044_v25 = vpop.f32.mrf.mxu0  ;;  %v2057_v8 = vpop.f32.mrf.mxu1 }
 0x438   :  { %v2087_v49 = vadd.f32 %v2044_v25, %v106_v35  ;;  %v2088_v61 = vadd.f32 %v2057_v8, %v135_v17  ;;  %v6042_v35 = vld [vmem:[%s9291_s2 + $0x4] sm:$0xf]  ;;  %v5263_v17 = vor.u32 %v6044_v30, %v5262_v58  ;;  %v6043_v8 = vld [vmem:[%s9291_s2 + $0xc] sm:$0xf] }
 0x439   :  { %v5267_v25 = vor.u32 %v6042_v35, %v5264_v31 }
 0x43a   :  { %v5257_v11 = vmul.f32 -1.442695, %v2087_v49  ;;  %v5258_v39 = vmul.f32 -1.442695, %v2088_v61  ;;  %v5275_v61 = vor.u32 %v6043_v8, %v5272_v24  ;;  %2363 = vmatpush.bf16.msrb.mxu0 %v5263_v17  ;;  %v6104_v24 = vld [vmem:[%s9291_s2 + $0xec] sm:$0xf0] }
 0x43b   :  { %2376 = vmatpush.bf16.msra.mxu1 %v5267_v25 }
 0x43c   :  { %6265 = vpow2.f32 %v5257_v11  ;;  %2402 = vmatpush.bf16.msrb.mxu3 %v5275_v61  ;;  %v193_v11 = vadd.f32 %v6817_v28, %v6780_v5  ;;  %v6105_v61 = vld [vmem:[%s9291_s2 + $0xf4] sm:$0xf0] }
 0x43d   :  { %6267 = vpow2.f32 %v5258_v39 }
 0x43e   :  { %v2070_v13 = vpop.f32.mrf.mxu2  ;;  %v2083_v16 = vpop.f32.mrf.mxu3 }
 0x43f   :  { %v2089_v14 = vadd.f32 %v2070_v13, %v164_v44  ;;  %v2046_v7 = vpop.f32.mrf.mxu0  ;;  %v2059_v48 = vpop.f32.mrf.mxu1  ;;  %v2090_v23 = vadd.f32 %v2083_v16, %v193_v11 }
 0x441   :  { %v5259_v40 = vmul.f32 -1.442695, %v2089_v14 }
 0x442   :  { %v6266_v43 = vpop.eup %6265 }
 0x443   :  { %v6268_v63 = vpop.eup %6267  ;;  %v2100_v49 = vadd.f32 1.0, %v6266_v43  ;;  %6269 = vpow2.f32 %v5259_v40  ;;  %v6102_v43 = vld [vmem:[%s9291_s2 + $0xe4] sm:$0xf] }
 0x444   :  { %v2101_v3 = vadd.f32 1.0, %v6268_v63  ;;  %v5507_v63 = vld [vmem:[%s9291_s2 + $0xf0] sm:$0xf0] }
 0x445   :  { %6271 = vrcp.f32 %v2100_v49  ;;  %v2114_v52 = vand.u32 2147483648, %v2100_v49  ;;  %v2112_v44 = vand.u32 2147483647, %v2100_v49  ;;  %vm2108_vm0 = vweird.f32 %v2100_v49 }
 0x446   :  { %6273 = vrcp.f32 %v2101_v3  ;;  %v2072_v33 = vpop.f32.mrf.mxu2  ;;  %v2085_v42 = vpop.f32.mrf.mxu3  ;;  %v2129_v55 = vand.u32 2147483648, %v2101_v3  ;;  %v2127_v21 = vand.u32 2147483647, %v2101_v3  ;;  %vm2123_vm1 = vweird.f32 %v2101_v3 }
 0x447   :  { %v2115_v6 = vor.u32 1.1754944e-38, %v2114_v52  ;;  %vm2113_vm4 = vcmp.eq.f32.partialorder %v2112_v44, 8.507059e+37  ;;  %v6103_v42 = vld [vmem:[%s9291_s2 + $0xec] sm:$0xf] }
 0x448   :  { %v2130_v16 = vor.u32 1.1754944e-38, %v2129_v55  ;;  %vm2128_vm5 = vcmp.eq.f32.partialorder %v2127_v21, 8.507059e+37  ;;  %v6099_v55 = vld [vmem:[%s9291_s2 + $0xcc] sm:$0xf]  ;;  %v6096_v21 = vld [vmem:[%s9291_s2 + $0xac] sm:$0xf0] }
 0x449   :  { %v6270_v50 = vpop.eup %6269 }
 0x44a   :  { %v2102_v39 = vadd.f32 1.0, %v6270_v50  ;;  %v5515_v50 = vld [vmem:[%s9291_s2 + $0xf8] sm:$0xf0] }
 0x44b   :  { %v6272_v18 = vpop.eup %6271  ;;  %v5518_v11 = vor.u32 %v6103_v42, %v5515_v50  ;;  %v5425_v50 = vld [vmem:[%s9291_s2 + $0x40] sm:$0xf] }
 0x44c   :  { %v6274_v45 = vpop.eup %6273  ;;  %v2104_v41 = vmul.f32 %v6272_v18, %v2100_v49  ;;  %6275 = vrcp.f32 %v2102_v39  ;;  %vm2109_vm14 = vweird.f32 %v6272_v18  ;;  %v2144_v35 = vand.u32 2147483648, %v2102_v39  ;;  %v5513_v49 = vld [vmem:[%s9291_s2 + $0xe8] sm:$0xf] }
 0x44d   :  { %v2119_v51 = vmul.f32 %v6274_v45, %v2101_v3  ;;  %6277 = vtanh.f32 %v2090_v23  ;;  %vm2124_vm15 = vweird.f32 %v6274_v45  ;;  %vm2110_vm2 = vmor %vm2108_vm0, %vm2109_vm14  ;;  %vm2138_vm7 = vweird.f32 %v2102_v39  ;;  %2716 = vmatpush.bf16.msra.mxu3 %v5518_v11  ;;  %v6098_v23 = vld [vmem:[%s9291_s2 + $0xc4] sm:$0xf]  ;;  %v6084_v11 = vld [vmem:[%s9291_s2 + $0x4c] sm:$0xf0] }
 0x44e   :  { %v2105_v53 = vsub.f32 1.0, %v2104_v41  ;;  %vm2125_vm3 = vmor %vm2123_vm1, %vm2124_vm15  ;;  %v2142_v17 = vand.u32 2147483647, %v2102_v39  ;;  %v2145_v2 = vor.u32 1.1754944e-38, %v2144_v35  ;;  %v5510_v3 = vor.u32 %v6102_v43, %v5507_v63  ;;  %v5491_v41 = vld [vmem:[%s9291_s2 + $0xd0] sm:$0xf0] }
 0x44f   :  { %v2120_v26 = vsub.f32 1.0, %v2119_v51  ;;  %v5514_v33 = vor.u32 %v6105_v61, %v5513_v49  ;;  %v5497_v51 = vld [vmem:[%s9291_s2 + $0xc8] sm:$0xf]  ;;  %v6093_v35 = vld [vmem:[%s9291_s2 + $0x94] sm:$0xf0] }
 0x450   :  { %v2106_v0 = vmul.f32 %v6272_v18, %v2105_v53  ;;  %vm2143_vm9 = vcmp.eq.f32.partialorder %v2142_v17, 8.507059e+37  ;;  %2690 = vmatpush.bf16.msrb.mxu1 %v5510_v3  ;;  %v6101_v53 = vld [vmem:[%s9291_s2 + $0xd4] sm:$0xf0]  ;;  %v5443_v43 = vld [vmem:[%s9291_s2 + $0x70] sm:$0xf0] }
 0x451   :  { %v2121_v60 = vmul.f32 %v6274_v45, %v2120_v26  ;;  %2703 = vmatpush.bf16.msra.mxu2 %v5514_v33  ;;  %v5494_v26 = vor.u32 %v6098_v23, %v5491_v41  ;;  %v5498_v52 = vor.u32 %v6101_v53, %v5497_v51  ;;  %v6089_v63 = vld [vmem:[%s9291_s2 + $0x74] sm:$0xf0]  ;;  %v6087_v3 = vld [vmem:[%s9291_s2 + $0x6c] sm:$0xf]  ;;  %v5451_v33 = vld [vmem:[%s9291_s2 + $0x78] sm:$0xf0] }
 0x452   :  { %v6276_v34 = vpop.eup %6275  ;;  %v2107_v28 = vadd.f32 %v6272_v18, %v2106_v0  ;;  %v5499_v0 = vld [vmem:[%s9291_s2 + $0xd8] sm:$0xf0]  ;;  %v5454_v42 = vor.u32 %v6087_v3, %v5451_v33  ;;  %v5427_v23 = vld [vmem:[%s9291_s2 + $0x50] sm:$0xf0]  ;;  %v6085_v41 = vld [vmem:[%s9291_s2 + $0x54] sm:$0xf0] }
 0x453   :  { %v2134_v22 = vmul.f32 %v6276_v34, %v2102_v39  ;;  %v2122_v13 = vadd.f32 %v6274_v45, %v2121_v60  ;;  %v6278_v19 = vpop.eup %6277  ;;  %vm2139_vm6 = vweird.f32 %v6276_v34  ;;  %v5489_v39 = vld [vmem:[%s9291_s2 + $0xc0] sm:$0xf]  ;;  %v5502_v44 = vor.u32 %v6099_v55, %v5499_v0  ;;  %v6139_v3 = vld [vmem:[%s9293_s4 + $0xec] sm:$0xf] }
 0x454   :  { %v2111_v27 = vsel %vm2110_vm2, %v6272_v18, %v2107_v28  ;;  %vm2140_vm8 = vmor %vm2138_vm7, %vm2139_vm6  ;;  %v6100_v18 = vld [vmem:[%s9291_s2 + $0xcc] sm:$0xf0]  ;;  %2691 = vmatpush.bf16.msrb.mxu1 %v5494_v26  ;;  %v5473_v60 = vld [vmem:[%s9291_s2 + $0xa0] sm:$0xf] }
 0x455   :  { %v2135_v20 = vsub.f32 1.0, %v2134_v22  ;;  %v2116_v29 = vsel %vm2113_vm4, %v2115_v6, %v2111_v27  ;;  %v2126_v14 = vsel %vm2125_vm3, %v6274_v45, %v2122_v13  ;;  %v5490_v45 = vor.u32 %v6100_v18, %v5489_v39  ;;  %2704 = vmatpush.bf16.msra.mxu2 %v5498_v52  ;;  %2717 = vmatpush.bf16.msra.mxu3 %v5502_v44  ;;  %v5475_v22 = vld [vmem:[%s9291_s2 + $0xb0] sm:$0xf0]  ;;  %v5481_v6 = vld [vmem:[%s9291_s2 + $0xa8] sm:$0xf] }
 0x456   :  { %v2131_v7 = vsel %vm2128_vm5, %v2130_v16, %v2126_v14  ;;  %v2150_v48 = vmul.f32 %v6278_v19, %v2116_v29  ;;  %v5474_v28 = vor.u32 %v6096_v21, %v5473_v60  ;;  %v6097_v13 = vld [vmem:[%s9291_s2 + $0xb4] sm:$0xf0]  ;;  %v6095_v19 = vld [vmem:[%s9291_s2 + $0xac] sm:$0xf]  ;;  %v5457_v14 = vld [vmem:[%s9291_s2 + $0x80] sm:$0xf]  ;;  %v5426_v18 = vor.u32 %v6084_v11, %v5425_v50 }
 0x457   :  { %v2136_v32 = vmul.f32 %v6276_v34, %v2135_v20  ;;  %v2149_v9 = vmul.f32 %v2131_v7, %v7862_v1  ;;  %v5505_v1 = vld [vmem:[%s9291_s2 + $0xe0] sm:$0xf]  ;;  %v5482_v27 = vor.u32 %v6097_v13, %v5481_v6  ;;  %v5483_v20 = vld [vmem:[%s9291_s2 + $0xb8] sm:$0xf0]  ;;  %v6092_v7 = vld [vmem:[%s9291_s2 + $0x8c] sm:$0xf0] }
 0x458   :  { %v5506_v38 = vor.u32 %v6104_v24, %v5505_v1  ;;  %v5486_v29 = vor.u32 %v6095_v19, %v5483_v20  ;;  %v6086_v1 = vld [vmem:[%s9291_s2 + $0x64] sm:$0xf]  ;;  %v6083_v26 = vld [vmem:[%s9291_s2 + $0x4c] sm:$0xf]  ;;  %v5435_v52 = vld [vmem:[%s9291_s2 + $0x58] sm:$0xf0] }
 0x459   :  { %v8066_v58 = vadd.f32 %v2150_v48, %v2149_v9  ;;  %v2137_v30 = vadd.f32 %v6276_v34, %v2136_v32  ;;  %2705 = vmatpush.bf16.msra.mxu2 %v5482_v27  ;;  %v6090_v48 = vld [vmem:[%s9291_s2 + $0x84] sm:$0xf]  ;;  %v5458_v32 = vor.u32 %v6092_v7, %v5457_v14  ;;  %v5459_v9 = vld [vmem:[%s9291_s2 + $0x90] sm:$0xf0]  ;;  %v5446_v49 = vor.u32 %v6086_v1, %v5443_v43  ;;  %v5409_v0 = vld [vmem:[%s9291_s2 + $0x20] sm:$0xf] }
 0x45a   :  { %2677 = vmatpush.bf16.msra.mxu0 %v5506_v38  ;;  %2718 = vmatpush.bf16.msra.mxu3 %v5486_v29  ;;  %v5462_v17 = vor.u32 %v6090_v48, %v5459_v9  ;;  %v5449_v38 = vld [vmem:[%s9291_s2 + $0x68] sm:$0xf]  ;;  %v6082_v39 = vld [vmem:[%s9291_s2 + $0x44] sm:$0xf]  ;;  %v5438_v55 = vor.u32 %v6083_v26, %v5435_v52  ;;  %v6080_v44 = vld [vmem:[%s9291_s2 + $0x2c] sm:$0xf0] }
 0x45b   :  { %6279 = vtanh.f32 %v8066_v58  ;;  %v2141_v31 = vsel %vm2140_vm8, %v6276_v34, %v2137_v30  ;;  %v6094_v34 = vld [vmem:[%s9291_s2 + $0xa4] sm:$0xf]  ;;  %v5465_v30 = vld [vmem:[%s9291_s2 + $0x88] sm:$0xf]  ;;  %v5450_v61 = vor.u32 %v6089_v63, %v5449_v38  ;;  %v5430_v51 = vor.u32 %v6082_v39, %v5427_v23  ;;  %v5419_v27 = vld [vmem:[%s9291_s2 + $0x38] sm:$0xf0] }
 0x45c   :  { %v2146_v40 = vsel %vm2143_vm9, %v2145_v2, %v2141_v31  ;;  %v5478_v16 = vor.u32 %v6094_v34, %v5475_v22  ;;  %v5466_v31 = vor.u32 %v6093_v35, %v5465_v30  ;;  %v6091_v2 = vld [vmem:[%s9291_s2 + $0x8c] sm:$0xf]  ;;  %v6078_v60 = vld [vmem:[%s9291_s2 + $0x24] sm:$0xf]  ;;  %v5410_v21 = vor.u32 %v6080_v44, %v5409_v0  ;;  %v5411_v34 = vld [vmem:[%s9291_s2 + $0x30] sm:$0xf0] }
 0x45d   :  { %v6081_v22 = vld [vmem:[%s9291_s2 + $0x34] sm:$0xf0]  ;;  %v5414_v6 = vor.u32 %v6078_v60, %v5411_v34  ;;  %v5393_v20 = vld [vmem:[%s9291_s2] sm:$0xf]  ;;  %v6076_v29 = vld [vmem:[%s9291_s2 + $0xc] sm:$0xf0] }
 0x45e   :  { %2678 = vmatpush.bf16.msra.mxu0 %v5490_v45  ;;  %2692 = vmatpush.bf16.msrb.mxu1 %v5478_v16  ;;  %v5433_v45 = vld [vmem:[%s9291_s2 + $0x48] sm:$0xf]  ;;  %v6079_v16 = vld [vmem:[%s9291_s2 + $0x2c] sm:$0xf]  ;;  %v6074_v14 = vld [vmem:[%s9291_s2 + $0x4] sm:$0xf]  ;;  %v5394_v7 = vor.u32 %v6076_v29, %v5393_v20 }
 0x45f   :  { %2706 = vmatpush.bf16.msra.mxu2 %v5466_v31  ;;  %v5434_v53 = vor.u32 %v6085_v41, %v5433_v45  ;;  %v5422_v19 = vor.u32 %v6079_v16, %v5419_v27  ;;  %v5395_v48 = vld [vmem:[%s9291_s2 + $0x10] sm:$0xf0]  ;;  %v6077_v9 = vld [vmem:[%s9291_s2 + $0x14] sm:$0xf0]  ;;  %v5403_v31 = vld [vmem:[%s9291_s2 + $0x18] sm:$0xf0] }
 0x460   :  { %v5398_v30 = vor.u32 %v6074_v14, %v5395_v48  ;;  %v6138_v1 = vld [vmem:[%s9293_s4 + $0xe4] sm:$0xf]  ;;  %v6136_v50 = vld [vmem:[%s9293_s4 + $0xcc] sm:$0xf0]  ;;  %v5638_v41 = vld [vmem:[%s9293_s4 + $0xd0] sm:$0xf0] }
 0x461   :  { %v6280_v10 = vpop.eup %6279  ;;  %v6134_v45 = vld [vmem:[%s9293_s4 + $0xc4] sm:$0xf]  ;;  %v5646_v0 = vld [vmem:[%s9293_s4 + $0xd8] sm:$0xf0]  ;;  %v5620_v44 = vld [vmem:[%s9293_s4 + $0xa0] sm:$0xf] }
 0x462   :  { %v2153_v25 = vmul.f32 %v6280_v10, %v2146_v40  ;;  %2679 = vmatpush.bf16.msra.mxu0 %v5474_v28  ;;  %v5467_v10 = vld [vmem:[%s9291_s2 + $0x98] sm:$0xf0]  ;;  %2693 = vmatpush.bf16.msrb.mxu1 %v5462_v17  ;;  %v5417_v28 = vld [vmem:[%s9291_s2 + $0x28] sm:$0xf]  ;;  %v6075_v17 = vld [vmem:[%s9291_s2 + $0xc] sm:$0xf]  ;;  %v5641_v26 = vor.u32 %v6134_v45, %v5638_v41 }
 0x463   :  { %v5470_v40 = vor.u32 %v6091_v2, %v5467_v10  ;;  %2707 = vmatpush.bf16.msra.mxu2 %v5450_v61  ;;  %v5418_v13 = vor.u32 %v6081_v22, %v5417_v28  ;;  %v5652_v2 = vld [vmem:[%s9293_s4 + $0xe0] sm:$0xf]  ;;  %v6141_v61 = vld [vmem:[%s9293_s4 + $0xf4] sm:$0xf0]  ;;  %v6130_v34 = vld [vmem:[%s9293_s4 + $0xa4] sm:$0xf] }
 0x464   :  { %v2154_v8 = vpack.c.bf16 %v2153_v25, %v2153_v25  ;;  %v5441_v25 = vld [vmem:[%s9291_s2 + $0x60] sm:$0xf]  ;;  %v5622_v28 = vld [vmem:[%s9293_s4 + $0xb0] sm:$0xf0]  ;;  %v5628_v16 = vld [vmem:[%s9293_s4 + $0xa8] sm:$0xf] }
 0x465   :  { %2719 = vmatpush.bf16.msra.mxu3 %v5470_v40  ;;  %v6133_v27 = vld [vmem:[%s9293_s4 + $0xb4] sm:$0xf0] }
 0x466   :  { %2156 = vst [vmem:[#allocation3 + $0x14] sm:$0xf] %v2154_v8  ;;  %2364 = vmatmul.bf16.vlgmr.msrb.gmra.mxu0 %v2154_v8  ;;  %2377 = vmatmul.bf16.vlgmr.msra.gmra.mxu1 %v2154_v8  ;;  %v5629_v48 = vor.u32 %v6133_v27, %v5628_v16  ;;  %v6125_v45 = vld [vmem:[%s9293_s4 + $0x74] sm:$0xf0] }
 0x467   :  { %2390 = vmatmul.bf16.vlgmr.msrb.gmra.mxu2 %v2154_v8  ;;  %2403 = vmatmul.bf16.vlgmr.msrb.gmra.mxu3 %v2154_v8  ;;  %v6088_v8 = vld [vmem:[%s9291_s2 + $0x6c] sm:$0xf0] }
 0x468   :  { %2680 = vmatpush.bf16.msra.mxu0 %v5458_v32  ;;  %v5442_v24 = vor.u32 %v6088_v8, %v5441_v25  ;;  %2694 = vmatpush.bf16.msrb.mxu1 %v5446_v49  ;;  %v5401_v32 = vld [vmem:[%s9291_s2 + $0x8] sm:$0xf]  ;;  %v5406_v25 = vor.u32 %v6075_v17, %v5403_v31  ;;  %v6140_v8 = vld [vmem:[%s9293_s4 + $0xec] sm:$0xf0]  ;;  %v5606_v17 = vld [vmem:[%s9293_s4 + $0x90] sm:$0xf0] }
 0x469   :  { %2720 = vmatpush.bf16.msra.mxu3 %v5454_v42  ;;  %2708 = vmatpush.bf16.msra.mxu2 %v5434_v53  ;;  %v5402_v35 = vor.u32 %v6077_v9, %v5401_v32  ;;  %v5653_v63 = vor.u32 %v6140_v8, %v5652_v2  ;;  %v5660_v49 = vld [vmem:[%s9293_s4 + $0xe8] sm:$0xf]  ;;  %v5636_v42 = vld [vmem:[%s9293_s4 + $0xc0] sm:$0xf]  ;;  %v6137_v53 = vld [vmem:[%s9293_s4 + $0xd4] sm:$0xf0] }
 0x46a   :  { %v5637_v23 = vor.u32 %v6136_v50, %v5636_v42  ;;  %v5630_v32 = vld [vmem:[%s9293_s4 + $0xb8] sm:$0xf0]  ;;  %v5604_v9 = vld [vmem:[%s9293_s4 + $0x80] sm:$0xf]  ;;  %v5612_v31 = vld [vmem:[%s9293_s4 + $0x88] sm:$0xf] }
 0x46b   :  { %v6122_v50 = vld [vmem:[%s9293_s4 + $0x64] sm:$0xf] }
 0x46c   :  { %2681 = vmatpush.bf16.msra.mxu0 %v5442_v24  ;;  %2695 = vmatpush.bf16.msrb.mxu1 %v5430_v51  ;;  %v5654_v24 = vld [vmem:[%s9293_s4 + $0xf0] sm:$0xf0]  ;;  %v5644_v51 = vld [vmem:[%s9293_s4 + $0xc8] sm:$0xf] }
 0x46d   :  { %2721 = vmatpush.bf16.msra.mxu3 %v5438_v55  ;;  %2709 = vmatpush.bf16.msra.mxu2 %v5418_v13  ;;  %v5657_v33 = vor.u32 %v6138_v1, %v5654_v24  ;;  %v5645_v52 = vor.u32 %v6137_v53, %v5644_v51  ;;  %v6135_v55 = vld [vmem:[%s9293_s4 + $0xcc] sm:$0xf]  ;;  %v5614_v1 = vld [vmem:[%s9293_s4 + $0x98] sm:$0xf0] }
 0x46e   :  { %v5649_v60 = vor.u32 %v6135_v55, %v5646_v0  ;;  %v5572_v55 = vld [vmem:[%s9293_s4 + $0x40] sm:$0xf] }
 0x470   :  { %2682 = vmatpush.bf16.msra.mxu0 %v5426_v18  ;;  %2696 = vmatpush.bf16.msrb.mxu1 %v5414_v6 }
 0x471   :  { %2722 = vmatpush.bf16.msra.mxu3 %v5422_v19  ;;  %2710 = vmatpush.bf16.msra.mxu2 %v5402_v35  ;;  %v6131_v19 = vld [vmem:[%s9293_s4 + $0xac] sm:$0xf]  ;;  %v6126_v35 = vld [vmem:[%s9293_s4 + $0x84] sm:$0xf] }
 0x474   :  { %2683 = vmatpush.bf16.msra.mxu0 %v5410_v21  ;;  %2697 = vmatpush.bf16.msrb.mxu1 %v5398_v30  ;;  %v6132_v21 = vld [vmem:[%s9293_s4 + $0xac] sm:$0xf0] }
 0x475   :  { %2723 = vmatpush.bf16.msra.mxu3 %v5406_v25  ;;  %v5621_v13 = vor.u32 %v6132_v21, %v5620_v44  ;;  %v6128_v30 = vld [vmem:[%s9293_s4 + $0x8c] sm:$0xf0] }
 0x476   :  { %v5605_v8 = vor.u32 %v6128_v30, %v5604_v9 }
 0x478   :  { %2684 = vmatpush.bf16.msra.mxu0 %v5394_v7  ;;  %3062 = vmatpush.bf16.msra.mxu1 %v5657_v33  ;;  %v5625_v7 = vor.u32 %v6130_v34, %v5622_v28  ;;  %v5574_v28 = vld [vmem:[%s9293_s4 + $0x50] sm:$0xf0] }
 0x47c   :  { %3033 = vmatpush.bf16.msrb.mxu0 %v5653_v63  ;;  %3063 = vmatpush.bf16.msra.mxu1 %v5641_v26  ;;  %v6123_v26 = vld [vmem:[%s9293_s4 + $0x6c] sm:$0xf] }
 0x480   :  { %3034 = vmatpush.bf16.msrb.mxu0 %v5637_v23  ;;  %3064 = vmatpush.bf16.msra.mxu1 %v5625_v7  ;;  %v5596_v23 = vld [vmem:[%s9293_s4 + $0x68] sm:$0xf]  ;;  %v5556_v7 = vld [vmem:[%s9293_s4 + $0x20] sm:$0xf] }
 0x481   :  { %v5597_v53 = vor.u32 %v6125_v45, %v5596_v23  ;;  %v5548_v23 = vld [vmem:[%s9293_s4 + $0x8] sm:$0xf]  ;;  %v6113_v45 = vld [vmem:[%s9293_s4 + $0x14] sm:$0xf0] }
 0x484   :  { %3035 = vmatpush.bf16.msrb.mxu0 %v5621_v13 }
 0x488   :  { %3036 = vmatpush.bf16.msrb.mxu0 %v5605_v8  ;;  %v6117_v8 = vld [vmem:[%s9293_s4 + $0x34] sm:$0xf0] }
 0x4e3   :  { %v2365_v10 = vpop.f32.mrf.mxu0  ;;  %v2378_v40 = vpop.f32.mrf.mxu1 }
 0x4e4   :  { %v2408_v43 = vadd.f32 %v2365_v10, %v6759_v59  ;;  %v2409_v38 = vadd.f32 %v2378_v40, %v6862_v57  ;;  %v5661_v59 = vor.u32 %v6141_v61, %v5660_v49  ;;  %v5662_v57 = vld [vmem:[%s9293_s4 + $0xf8] sm:$0xf0]  ;;  %v6129_v10 = vld [vmem:[%s9293_s4 + $0x94] sm:$0xf0]  ;;  %v6127_v40 = vld [vmem:[%s9293_s4 + $0x8c] sm:$0xf] }
 0x4e5   :  { %v5665_v18 = vor.u32 %v6139_v3, %v5662_v57  ;;  %v5613_v63 = vor.u32 %v6129_v10, %v5612_v31  ;;  %v5617_v61 = vor.u32 %v6127_v40, %v5614_v1  ;;  %v5588_v3 = vld [vmem:[%s9293_s4 + $0x60] sm:$0xf]  ;;  %v6124_v57 = vld [vmem:[%s9293_s4 + $0x6c] sm:$0xf0] }
 0x4e6   :  { %v5388_v11 = vmul.f32 -1.442695, %v2408_v43  ;;  %v5389_v39 = vmul.f32 -1.442695, %v2409_v38  ;;  %3091 = vmatpush.bf16.msrb.mxu2 %v5661_v59  ;;  %v5609_v38 = vor.u32 %v6126_v35, %v5606_v17  ;;  %v5589_v42 = vor.u32 %v6124_v57, %v5588_v3  ;;  %v6114_v35 = vld [vmem:[%s9293_s4 + $0x24] sm:$0xf] }
 0x4e7   :  { %3120 = vmatpush.bf16.msrb.mxu3 %v5665_v18  ;;  %v5558_v17 = vld [vmem:[%s9293_s4 + $0x30] sm:$0xf0]  ;;  %v5540_v3 = vld [vmem:[%s9293_s4] sm:$0xf]  ;;  %v6112_v57 = vld [vmem:[%s9293_s4 + $0xc] sm:$0xf0] }
 0x4e8   :  { %6281 = vpow2.f32 %v5388_v11  ;;  %3065 = vmatpush.bf16.msra.mxu1 %v5609_v38  ;;  %v5590_v11 = vld [vmem:[%s9293_s4 + $0x70] sm:$0xf0]  ;;  %3037 = vmatpush.bf16.msrb.mxu0 %v5589_v42  ;;  %v6110_v42 = vld [vmem:[%s9293_s4 + $0x4] sm:$0xf] }
 0x4e9   :  { %6283 = vpow2.f32 %v5389_v39  ;;  %v5593_v18 = vor.u32 %v6122_v50, %v5590_v11  ;;  %v5542_v50 = vld [vmem:[%s9293_s4 + $0x10] sm:$0xf0] }
 0x4ea   :  { %v2391_v22 = vpop.f32.mrf.mxu2  ;;  %v2404_v6 = vpop.f32.mrf.mxu3  ;;  %3092 = vmatpush.bf16.msrb.mxu2 %v5645_v52  ;;  %v5598_v52 = vld [vmem:[%s9293_s4 + $0x78] sm:$0xf0] }
 0x4eb   :  { %v2410_v20 = vadd.f32 %v2391_v22, %v6823_v36  ;;  %v2367_v29 = vpop.f32.mrf.mxu0  ;;  %v2380_v14 = vpop.f32.mrf.mxu1  ;;  %3121 = vmatpush.bf16.msrb.mxu3 %v5649_v60  ;;  %v5633_v36 = vor.u32 %v6131_v19, %v5630_v32  ;;  %v2411_v51 = vadd.f32 %v2404_v6, %v6826_v37  ;;  %v5601_v44 = vor.u32 %v6123_v26, %v5598_v52  ;;  %v6120_v37 = vld [vmem:[%s9293_s4 + $0x4c] sm:$0xf0]  ;;  %v6118_v60 = vld [vmem:[%s9293_s4 + $0x44] sm:$0xf]  ;;  %v5580_v22 = vld [vmem:[%s9293_s4 + $0x48] sm:$0xf] }
 0x4ec   :  { %3066 = vmatpush.bf16.msra.mxu1 %v5593_v18  ;;  %v5573_v34 = vor.u32 %v6120_v37, %v5572_v55  ;;  %v6121_v6 = vld [vmem:[%s9293_s4 + $0x54] sm:$0xf0]  ;;  %v6119_v19 = vld [vmem:[%s9293_s4 + $0x4c] sm:$0xf]  ;;  %v5577_v30 = vor.u32 %v6118_v60, %v5574_v28  ;;  %v5541_v18 = vor.u32 %v6112_v57, %v5540_v3  ;;  %v5550_v55 = vld [vmem:[%s9293_s4 + $0x18] sm:$0xf0]  ;;  %v5545_v37 = vor.u32 %v6110_v42, %v5542_v50 }
 0x4ed   :  { %v5390_v2 = vmul.f32 -1.442695, %v2410_v20  ;;  %v5582_v20 = vld [vmem:[%s9293_s4 + $0x58] sm:$0xf0]  ;;  %v5549_v60 = vor.u32 %v6113_v45, %v5548_v23  ;;  %v5788_v3 = vld [vmem:[%s9294_s5 + $0xe8] sm:$0xf] }
 0x4ee   :  { %v6282_v25 = vpop.eup %6281  ;;  %3093 = vmatpush.bf16.msrb.mxu2 %v5629_v48  ;;  %v6116_v48 = vld [vmem:[%s9293_s4 + $0x2c] sm:$0xf0]  ;;  %3038 = vmatpush.bf16.msrb.mxu0 %v5573_v34  ;;  %v5585_v10 = vor.u32 %v6119_v19, %v5582_v20  ;;  %v6171_v42 = vld [vmem:[%s9294_s5 + $0xec] sm:$0xf]  ;;  %v5790_v50 = vld [vmem:[%s9294_s5 + $0xf8] sm:$0xf0] }
 0x4ef   :  { %v6284_v24 = vpop.eup %6283  ;;  %v8360_v43 = vadd.f32 1.0, %v6282_v25  ;;  %6285 = vpow2.f32 %v5390_v2  ;;  %3122 = vmatpush.bf16.msrb.mxu3 %v5633_v36  ;;  %v5581_v36 = vor.u32 %v6121_v6, %v5580_v22  ;;  %v5557_v40 = vor.u32 %v6116_v48, %v5556_v7  ;;  %v5564_v25 = vld [vmem:[%s9293_s4 + $0x28] sm:$0xf]  ;;  %v5764_v23 = vld [vmem:[%s9294_s5 + $0xc0] sm:$0xf] }
 0x4f0   :  { %v8362_v49 = vadd.f32 1.0, %v6284_v24  ;;  %3067 = vmatpush.bf16.msra.mxu1 %v5577_v30  ;;  %v5561_v24 = vor.u32 %v6114_v35, %v5558_v17  ;;  %v5565_v38 = vor.u32 %v6117_v8, %v5564_v25  ;;  %v6106_v30 = vld [vmem:[#allocation3] sm:$0xff]  ;;  %v111_v35 = vadd.f32 %v6767_v62, %v6756_v56  ;;  %v5780_v56 = vld [vmem:[%s9294_s5 + $0xe0] sm:$0xf]  ;;  %v6172_v62 = vld [vmem:[%s9294_s5 + $0xec] sm:$0xf0] }
 0x4f1   :  { %6287 = vrcp.f32 %v8360_v43  ;;  %v2433_v39 = vand.u32 2147483647, %v8360_v43  ;;  %v2435_v27 = vand.u32 2147483648, %v8360_v43  ;;  %vm2429_vm14 = vweird.f32 %v8360_v43  ;;  %v6168_v45 = vld [vmem:[%s9294_s5 + $0xcc] sm:$0xf0] }
 0x4f2   :  { %6289 = vrcp.f32 %v8362_v49  ;;  %v2393_v33 = vpop.f32.mrf.mxu2  ;;  %v2406_v59 = vpop.f32.mrf.mxu3  ;;  %3094 = vmatpush.bf16.msrb.mxu2 %v5613_v63  ;;  %v2448_v14 = vand.u32 2147483647, %v8362_v49  ;;  %v2450_v9 = vand.u32 2147483648, %v8362_v49  ;;  %v6115_v63 = vld [vmem:[%s9293_s4 + $0x2c] sm:$0xf]  ;;  %vm2444_vm13 = vweird.f32 %v8362_v49  ;;  %3039 = vmatpush.bf16.msrb.mxu0 %v5557_v40 }
 0x4f3   :  { %3123 = vmatpush.bf16.msrb.mxu3 %v5617_v61  ;;  %vm8442_vm10 = vcmp.eq.f32.partialorder %v2433_v39, 8.507059e+37  ;;  %v5566_v61 = vld [vmem:[%s9293_s4 + $0x38] sm:$0xf0]  ;;  %v140_v17 = vadd.f32 %v6916_v15, %v6792_v12  ;;  %v6170_v12 = vld [vmem:[%s9294_s5 + $0xe4] sm:$0xf] }
 0x4f4   :  { %v5569_v59 = vor.u32 %v6115_v63, %v5566_v61  ;;  %vm2449_vm1 = vcmp.eq.f32.partialorder %v2448_v14, 8.507059e+37  ;;  %3068 = vmatpush.bf16.msra.mxu1 %v5561_v24 }
 0x4f5   :  { %v6286_v41 = vpop.eup %6285 }
 0x4f6   :  { %v8395_v0 = vadd.f32 1.0, %v6286_v41  ;;  %3095 = vmatpush.bf16.msrb.mxu2 %v5597_v53  ;;  %v6111_v41 = vld [vmem:[%s9293_s4 + $0xc] sm:$0xf]  ;;  %v2451_v53 = vor.u32 1.1754944e-38, %v2450_v9  ;;  %3040 = vmatpush.bf16.msrb.mxu0 %v5541_v18 }
 0x4f7   :  { %v8403_v21 = vpop.eup %6287  ;;  %3124 = vmatpush.bf16.msrb.mxu3 %v5601_v44  ;;  %v5553_v6 = vor.u32 %v6111_v41, %v5550_v55  ;;  %v6166_v41 = vld [vmem:[%s9294_s5 + $0xc4] sm:$0xf] }
 0x4f8   :  { %v8414_v13 = vpop.eup %6289  ;;  %v2425_v16 = vmul.f32 %v8403_v21, %v8360_v43  ;;  %6291 = vrcp.f32 %v8395_v0  ;;  %vm2430_vm11 = vweird.f32 %v8403_v21  ;;  %v2436_v43 = vor.u32 1.1754944e-38, %v2435_v27  ;;  %3069 = vmatpush.bf16.msra.mxu1 %v5545_v37  ;;  %v6169_v37 = vld [vmem:[%s9294_s5 + $0xd4] sm:$0xf0] }
 0x4f9   :  { %v2440_v29 = vmul.f32 %v8414_v13, %v8362_v49  ;;  %6293 = vtanh.f32 %v2411_v51  ;;  %vm2445_vm12 = vweird.f32 %v8414_v13  ;;  %vm2431_vm15 = vmor %vm2429_vm14, %vm2430_vm11  ;;  %vm2459_vm3 = vweird.f32 %v8395_v0 }
 0x4fa   :  { %v2426_v32 = vsub.f32 1.0, %v2425_v16  ;;  %3096 = vmatpush.bf16.msrb.mxu2 %v5581_v36  ;;  %vm2446_vm0 = vmor %vm2444_vm13, %vm2445_vm12  ;;  %v6107_v36 = vld [vmem:[#allocation3 + $0x8] sm:$0xff] }
 0x4fb   :  { %v2441_v31 = vsub.f32 1.0, %v2440_v29  ;;  %3125 = vmatpush.bf16.msrb.mxu3 %v5585_v10  ;;  %v2465_v29 = vand.u32 2147483648, %v8395_v0 }
 0x4fc   :  { %v2427_v1 = vmul.f32 %v8403_v21, %v2426_v32 }
 0x4fd   :  { %v2442_v33 = vmul.f32 %v8414_v13, %v2441_v31  ;;  %v2466_v7 = vor.u32 1.1754944e-38, %v2465_v29 }
 0x4fe   :  { %v6292_v11 = vpop.eup %6291  ;;  %v2428_v39 = vadd.f32 %v8403_v21, %v2427_v1  ;;  %3097 = vmatpush.bf16.msrb.mxu2 %v5565_v38  ;;  %v169_v1 = vadd.f32 %v6845_v46, %v6778_v4  ;;  %v8525_v4 = vor.u32 %v6172_v62, %v5780_v56  ;;  %v5782_v46 = vld [vmem:[%s9294_s5 + $0xf0] sm:$0xf0] }
 0x4ff   :  { %v6294_v51 = vpop.eup %6293  ;;  %v2455_v26 = vmul.f32 %v6292_v11, %v8395_v0  ;;  %v2443_v52 = vadd.f32 %v8414_v13, %v2442_v33  ;;  %3126 = vmatpush.bf16.msrb.mxu3 %v5569_v59  ;;  %vm2460_vm2 = vweird.f32 %v6292_v11  ;;  %v6173_v33 = vld [vmem:[%s9294_s5 + $0xf4] sm:$0xf0]  ;;  %v8536_v59 = vor.u32 %v6170_v12, %v5782_v46  ;;  %v5758_v12 = vld [vmem:[%s9294_s5 + $0xb8] sm:$0xf0]  ;;  %v6154_v46 = vld [vmem:[%s9294_s5 + $0x64] sm:$0xf] }
 0x500   :  { %v2432_v44 = vsel %vm2431_vm15, %v8403_v21, %v2428_v39  ;;  %vm2461_vm4 = vmor %vm2459_vm3, %vm2460_vm2  ;;  %v8538_v57 = vor.u32 %v6173_v33, %v5788_v3  ;;  %v8547_v39 = vor.u32 %v6171_v42, %v5790_v50 }
 0x501   :  { %v2456_v34 = vsub.f32 1.0, %v2455_v26  ;;  %v2437_v28 = vsel %vm8442_vm10, %v2436_v43, %v2432_v44  ;;  %v2447_v22 = vsel %vm2446_vm0, %v8414_v13, %v2443_v52  ;;  %v2463_v13 = vand.u32 2147483647, %v8395_v0  ;;  %v6108_v0 = vld [vmem:[#allocation3 + $0x10] sm:$0xff]  ;;  %v5766_v43 = vld [vmem:[%s9294_s5 + $0xd0] sm:$0xf0] }
 0x502   :  { %v2452_v16 = vsel %vm2449_vm1, %v2451_v53, %v2447_v22  ;;  %v2471_v27 = vmul.f32 %v6294_v51, %v2437_v28  ;;  %3098 = vmatpush.bf16.msrb.mxu2 %v5549_v60  ;;  %v8562_v26 = vor.u32 %v6168_v45, %v5764_v23  ;;  %v5772_v52 = vld [vmem:[%s9294_s5 + $0xc8] sm:$0xf]  ;;  %v8573_v44 = vor.u32 %v6166_v41, %v5766_v43  ;;  %v6167_v60 = vld [vmem:[%s9294_s5 + $0xcc] sm:$0xf] }
 0x503   :  { %v2457_v49 = vmul.f32 %v6292_v11, %v2456_v34  ;;  %v2470_v19 = vmul.f32 %v2452_v16, %v8066_v58  ;;  %3127 = vmatpush.bf16.msrb.mxu3 %v5553_v6  ;;  %vm2464_vm5 = vcmp.eq.f32.partialorder %v2463_v13, 8.507059e+37  ;;  %v5774_v34 = vld [vmem:[%s9294_s5 + $0xd8] sm:$0xf0]  ;;  %v5748_v6 = vld [vmem:[%s9294_s5 + $0xa0] sm:$0xf] }
 0x504   :  { %v5750_v13 = vld [vmem:[%s9294_s5 + $0xb0] sm:$0xf0]  ;;  %v6159_v43 = vld [vmem:[%s9294_s5 + $0x8c] sm:$0xf] }
 0x505   :  { %v8502_v21 = vadd.f32 %v2471_v27, %v2470_v19  ;;  %v2458_v20 = vadd.f32 %v6292_v11, %v2457_v49  ;;  %v8592_v27 = vor.u32 %v6169_v37, %v5772_v52  ;;  %v6164_v49 = vld [vmem:[%s9294_s5 + $0xac] sm:$0xf0]  ;;  %v6162_v19 = vld [vmem:[%s9294_s5 + $0xa4] sm:$0xf]  ;;  %v5742_v37 = vld [vmem:[%s9294_s5 + $0x98] sm:$0xf0] }
 0x507   :  { %6295 = vtanh.f32 %v8502_v21  ;;  %v2462_v14 = vsel %vm2461_vm4, %v6292_v11, %v2458_v20  ;;  %v8600_v20 = vor.u32 %v6167_v60, %v5774_v34  ;;  %v5700_v60 = vld [vmem:[%s9294_s5 + $0x40] sm:$0xf]  ;;  %v6152_v34 = vld [vmem:[%s9294_s5 + $0x4c] sm:$0xf0] }
 0x508   :  { %v2467_v48 = vsel %vm2464_vm5, %v2466_v7, %v2462_v14  ;;  %v5756_v14 = vld [vmem:[%s9294_s5 + $0xa8] sm:$0xf] }
 0x50d   :  { %v6296_v58 = vpop.eup %6295 }
 0x50e   :  { %v2474_v32 = vmul.f32 %v6296_v58, %v2467_v48  ;;  %v198_v58 = vadd.f32 %v6847_v47, %v6780_v5  ;;  %v8612_v48 = vor.u32 %v6164_v49, %v5748_v6  ;;  %v6160_v5 = vld [vmem:[%s9294_s5 + $0x8c] sm:$0xf0]  ;;  %v6150_v49 = vld [vmem:[%s9294_s5 + $0x44] sm:$0xf] }
 0x510   :  { %v2475_v9 = vpack.c.bf16 %v2474_v32, %v2474_v32  ;;  %v8614_v32 = vor.u32 %v6162_v19, %v5750_v13  ;;  %v5702_v19 = vld [vmem:[%s9294_s5 + $0x50] sm:$0xf0] }
 0x512   :  { %2477 = vst [vmem:[#allocation3 + $0x18] sm:$0xf] %v2475_v9  ;;  %2685 = vmatmul.bf16.vlgmr.msra.gmra.mxu0 %v2475_v9  ;;  %2698 = vmatmul.bf16.vlgmr.msrb.gmra.mxu1 %v2475_v9 }
 0x513   :  { %2711 = vmatmul.bf16.vlgmr.msra.gmra.mxu2 %v2475_v9  ;;  %2724 = vmatmul.bf16.vlgmr.msra.gmra.mxu3 %v2475_v9  ;;  %v6165_v9 = vld [vmem:[%s9294_s5 + $0xb4] sm:$0xf0] }
 0x514   :  { %3377 = vmatpush.bf16.msra.mxu0 %v8525_v4  ;;  %3390 = vmatpush.bf16.msrb.mxu1 %v8536_v59 }
 0x515   :  { %3403 = vmatpush.bf16.msra.mxu2 %v8538_v57  ;;  %3416 = vmatpush.bf16.msra.mxu3 %v8547_v39 }
 0x518   :  { %3378 = vmatpush.bf16.msra.mxu0 %v8562_v26  ;;  %3391 = vmatpush.bf16.msrb.mxu1 %v8573_v44 }
 0x519   :  { %3404 = vmatpush.bf16.msra.mxu2 %v8592_v27  ;;  %3417 = vmatpush.bf16.msra.mxu3 %v8600_v20 }
 0x51c   :  { %3379 = vmatpush.bf16.msra.mxu0 %v8612_v48  ;;  %3392 = vmatpush.bf16.msrb.mxu1 %v8614_v32 }
 0x522   :  { %3041 = vmatmul.bf16.vlgmr.msrb.gmra.mxu0 %v6106_v30  ;;  %3070 = vmatmul.bf16.vlgmr.msra.gmra.mxu1 %v6106_v30 }
 0x523   :  { %3099 = vmatmul.bf16.vlgmr.msrb.gmra.mxu2 %v6106_v30  ;;  %3128 = vmatmul.bf16.vlgmr.msrb.gmra.mxu3 %v6106_v30  ;;  %v5732_v30 = vld [vmem:[%s9294_s5 + $0x80] sm:$0xf] }
 0x532   :  { %3046 = vmatmul.bf16.gmra.mxu0 %v6107_v36  ;;  %3075 = vmatmul.bf16.gmra.mxu1 %v6107_v36 }
 0x533   :  { %3104 = vmatmul.bf16.gmra.mxu2 %v6107_v36  ;;  %3133 = vmatmul.bf16.gmra.mxu3 %v6107_v36 }
 0x542   :  { %3051 = vmatmul.bf16.gmra.mxu0 %v6108_v0  ;;  %3080 = vmatmul.bf16.gmra.mxu1 %v6108_v0 }
 0x543   :  { %3109 = vmatmul.bf16.gmra.mxu2 %v6108_v0  ;;  %3138 = vmatmul.bf16.gmra.mxu3 %v6108_v0  ;;  %v8629_v0 = vor.u32 %v6165_v9, %v5756_v14  ;;  %v5726_v9 = vld [vmem:[%s9294_s5 + $0x78] sm:$0xf0] }
 0x545   :  { %3405 = vmatpush.bf16.msra.mxu2 %v8629_v0 }
 0x58f   :  { %v2686_v31 = vpop.f32.mrf.mxu0  ;;  %v2699_v2 = vpop.f32.mrf.mxu1 }
 0x590   :  { %v2729_v10 = vadd.f32 %v2686_v31, %v111_v35  ;;  %v2730_v40 = vadd.f32 %v2699_v2, %v140_v17  ;;  %v6158_v35 = vld [vmem:[%s9294_s5 + $0x84] sm:$0xf]  ;;  %v5734_v17 = vld [vmem:[%s9294_s5 + $0x90] sm:$0xf0] }
 0x592   :  { %v5519_v25 = vmul.f32 -1.442695, %v2729_v10  ;;  %v5520_v8 = vmul.f32 -1.442695, %v2730_v40  ;;  %v8642_v10 = vor.u32 %v6160_v5, %v5732_v30  ;;  %v8644_v40 = vor.u32 %v6158_v35, %v5734_v17 }
 0x593   :  { %v8763_v35 = vor.u32 %v6152_v34, %v5700_v60  ;;  %v6142_v34 = vld [vmem:[%s9294_s5 + $0x4] sm:$0xf] }
 0x594   :  { %6297 = vpow2.f32 %v5519_v25  ;;  %v5740_v25 = vld [vmem:[%s9294_s5 + $0x88] sm:$0xf]  ;;  %3380 = vmatpush.bf16.msra.mxu0 %v8642_v10  ;;  %3393 = vmatpush.bf16.msrb.mxu1 %v8644_v40 }
 0x595   :  { %6299 = vpow2.f32 %v5520_v8  ;;  %v6161_v8 = vld [vmem:[%s9294_s5 + $0x94] sm:$0xf0] }
 0x596   :  { %v2712_v24 = vpop.f32.mrf.mxu2  ;;  %v8514_v38 = vpop.f32.mrf.mxu3  ;;  %v8682_v42 = vor.u32 %v6161_v8, %v5740_v25  ;;  %v5684_v8 = vld [vmem:[%s9294_s5 + $0x20] sm:$0xf] }
 0x597   :  { %v2731_v15 = vadd.f32 %v2712_v24, %v169_v1  ;;  %v2688_v63 = vpop.f32.mrf.mxu0  ;;  %v2701_v61 = vpop.f32.mrf.mxu1  ;;  %v2732_v2 = vadd.f32 %v8514_v38, %v198_v58  ;;  %v6163_v1 = vld [vmem:[%s9294_s5 + $0xac] sm:$0xf] }
 0x598   :  { %v5716_v63 = vld [vmem:[%s9294_s5 + $0x60] sm:$0xf]  ;;  %v6156_v61 = vld [vmem:[%s9294_s5 + $0x6c] sm:$0xf0]  ;;  %v8684_v50 = vor.u32 %v6163_v1, %v5758_v12  ;;  %3406 = vmatpush.bf16.msra.mxu2 %v8682_v42  ;;  %v6155_v58 = vld [vmem:[%s9294_s5 + $0x6c] sm:$0xf] }
 0x599   :  { %v5521_v11 = vmul.f32 -1.442695, %v2731_v15  ;;  %v8771_v25 = vor.u32 %v6155_v58, %v5726_v9  ;;  %v6148_v1 = vld [vmem:[%s9294_s5 + $0x2c] sm:$0xf0] }
 0x59a   :  { %v6298_v18 = vpop.eup %6297  ;;  %3418 = vmatpush.bf16.msra.mxu3 %v8684_v50  ;;  %v8810_v45 = vor.u32 %v6148_v1, %v5684_v8 }
 0x59b   :  { %v6300_v51 = vpop.eup %6299  ;;  %v8560_v53 = vadd.f32 1.0, %v6298_v18  ;;  %6301 = vpow2.f32 %v5521_v11  ;;  %v5718_v11 = vld [vmem:[%s9294_s5 + $0x70] sm:$0xf0]  ;;  %v5724_v18 = vld [vmem:[%s9294_s5 + $0x68] sm:$0xf] }
 0x59c   :  { %v8571_v55 = vadd.f32 1.0, %v6300_v51  ;;  %v6157_v51 = vld [vmem:[%s9294_s5 + $0x74] sm:$0xf0] }
 0x59d   :  { %6303 = vrcp.f32 %v8560_v53  ;;  %v2754_v16 = vand.u32 2147483647, %v8560_v53  ;;  %v2756_v29 = vand.u32 2147483648, %v8560_v53  ;;  %v8722_v6 = vor.u32 %v6157_v51, %v5724_v18 }
 0x59e   :  { %6305 = vrcp.f32 %v8571_v55  ;;  %v2714_v28 = vpop.f32.mrf.mxu2  ;;  %v2727_v22 = vpop.f32.mrf.mxu3  ;;  %v2771_v47 = vand.u32 2147483648, %v8571_v55  ;;  %v2769_v62 = vand.u32 2147483647, %v8571_v55  ;;  %vm2765_vm7 = vweird.f32 %v8571_v55 }
 0x59f   :  { %vm8660_vm6 = vcmp.eq.f32.partialorder %v2754_v16, 8.507059e+37  ;;  %v2757_v33 = vor.u32 1.1754944e-38, %v2756_v29  ;;  %v8720_v22 = vor.u32 %v6154_v46, %v5718_v11  ;;  %v8724_v16 = vor.u32 %v6159_v43, %v5742_v37  ;;  %v5708_v29 = vld [vmem:[%s9294_s5 + $0x48] sm:$0xf]  ;;  %3407 = vmatpush.bf16.msra.mxu2 %v8722_v6  ;;  %v6151_v46 = vld [vmem:[%s9294_s5 + $0x4c] sm:$0xf] }
 0x5a0   :  { %v2772_v41 = vor.u32 1.1754944e-38, %v2771_v47  ;;  %vm2750_vm11 = vweird.f32 %v8560_v53  ;;  %vm8757_vm13 = vcmp.eq.f32.partialorder %v2769_v62, 8.507059e+37  ;;  %v5710_v11 = vld [vmem:[%s9294_s5 + $0x58] sm:$0xf0]  ;;  %v5668_v43 = vld [vmem:[%s9294_s5] sm:$0xf] }
 0x5a1   :  { %v6302_v7 = vpop.eup %6301  ;;  %3394 = vmatpush.bf16.msrb.mxu1 %v8720_v22  ;;  %3419 = vmatpush.bf16.msra.mxu3 %v8724_v16  ;;  %v8816_v51 = vor.u32 %v6151_v46, %v5710_v11  ;;  %v6143_v47 = vld [vmem:[%s9294_s5 + $0xc] sm:$0xf] }
 0x5a2   :  { %v8627_v36 = vadd.f32 1.0, %v6302_v7  ;;  %v6153_v7 = vld [vmem:[%s9294_s5 + $0x54] sm:$0xf0] }
 0x5a3   :  { %v8637_v31 = vpop.eup %6303 }
 0x5a4   :  { %v8655_v24 = vpop.eup %6305  ;;  %v2746_v38 = vmul.f32 %v8637_v31, %v8560_v53  ;;  %6307 = vrcp.f32 %v8627_v36  ;;  %vm2751_vm10 = vweird.f32 %v8637_v31  ;;  %vm2780_vm15 = vweird.f32 %v8627_v36 }
 0x5a5   :  { %v2761_v15 = vmul.f32 %v8655_v24, %v8571_v55  ;;  %vm2766_vm8 = vweird.f32 %v8655_v24  ;;  %6309 = vtanh.f32 %v2732_v2  ;;  %v8707_v55 = vor.u32 %v6156_v61, %v5716_v63  ;;  %vm8752_vm12 = vmor %vm2750_vm11, %vm2751_vm10  ;;  %v5686_v61 = vld [vmem:[%s9294_s5 + $0x30] sm:$0xf0]  ;;  %3420 = vmatpush.bf16.msra.mxu3 %v8771_v25 }
 0x5a6   :  { %v2747_v3 = vsub.f32 1.0, %v2746_v38  ;;  %vm8692_vm9 = vmor %vm2765_vm7, %vm2766_vm8  ;;  %v8769_v2 = vor.u32 %v6150_v49, %v5702_v19  ;;  %v6146_v38 = vld [vmem:[%s9294_s5 + $0x24] sm:$0xf]  ;;  %v8788_v63 = vor.u32 %v6153_v7, %v5708_v29  ;;  %v5694_v49 = vld [vmem:[%s9294_s5 + $0x38] sm:$0xf0]  ;;  %v2786_v7 = vand.u32 2147483648, %v8627_v36  ;;  %v3129_v46 = vpop.f32.mrf.mxu3 }
 0x5a7   :  { %v2762_v23 = vsub.f32 1.0, %v2761_v15  ;;  %3381 = vmatpush.bf16.msra.mxu0 %v8707_v55  ;;  %v5676_v29 = vld [vmem:[%s9294_s5 + $0x8] sm:$0xf]  ;;  %v2784_v9 = vand.u32 2147483647, %v8627_v36 }
 0x5a8   :  { %v2748_v52 = vmul.f32 %v8637_v31, %v2747_v3  ;;  %3395 = vmatpush.bf16.msrb.mxu1 %v8769_v2  ;;  %3408 = vmatpush.bf16.msra.mxu2 %v8788_v63  ;;  %v2787_v8 = vor.u32 1.1754944e-38, %v2786_v7 }
 0x5a9   :  { %v2763_v28 = vmul.f32 %v8655_v24, %v2762_v23  ;;  %3421 = vmatpush.bf16.msra.mxu3 %v8816_v51  ;;  %vm2785_vm1 = vcmp.eq.f32.partialorder %v2784_v9, 8.507059e+37 }
 0x5aa   :  { %v8735_v13 = vpop.eup %6307  ;;  %v2749_v14 = vadd.f32 %v8637_v31, %v2748_v52  ;;  %v6147_v52 = vld [vmem:[%s9294_s5 + $0x2c] sm:$0xf] }
 0x5ab   :  { %v2776_v30 = vmul.f32 %v8735_v13, %v8627_v36  ;;  %v2764_v53 = vadd.f32 %v8655_v24, %v2763_v28  ;;  %v6310_v62 = vpop.eup %6309  ;;  %3382 = vmatpush.bf16.msra.mxu0 %v8763_v35  ;;  %v5670_v28 = vld [vmem:[%s9294_s5 + $0x10] sm:$0xf0]  ;;  %vm2781_vm14 = vweird.f32 %v8735_v13  ;;  %v8857_v5 = vor.u32 %v6147_v52, %v5694_v49  ;;  %v5678_v36 = vld [vmem:[%s9294_s5 + $0x18] sm:$0xf0] }
 0x5ac   :  { %v2753_v17 = vsel %vm8752_vm12, %v8637_v31, %v2749_v14  ;;  %v6145_v14 = vld [vmem:[%s9294_s5 + $0x14] sm:$0xf0]  ;;  %vm2782_vm0 = vmor %vm2780_vm15, %vm2781_vm14  ;;  %v8872_v1 = vor.u32 %v6143_v47, %v5678_v36 }
 0x5ad   :  { %v2777_v31 = vsub.f32 1.0, %v2776_v30  ;;  %v2758_v12 = vsel %vm8660_vm6, %v2757_v33, %v2753_v17  ;;  %v2768_v15 = vsel %vm8692_vm9, %v8655_v24, %v2764_v53  ;;  %v5692_v24 = vld [vmem:[%s9294_s5 + $0x28] sm:$0xf]  ;;  %v6149_v33 = vld [vmem:[%s9294_s5 + $0x34] sm:$0xf0]  ;;  %v8855_v30 = vor.u32 %v6142_v34, %v5670_v28  ;;  %3422 = vmatpush.bf16.msra.mxu3 %v8857_v5 }
 0x5ae   :  { %v2773_v56 = vsel %vm8757_vm13, %v2772_v41, %v2768_v15  ;;  %v2792_v3 = vmul.f32 %v6310_v62, %v2758_v12  ;;  %v8814_v41 = vor.u32 %v6146_v38, %v5686_v61  ;;  %v8828_v60 = vor.u32 %v6149_v33, %v5692_v24  ;;  %v3071_v15 = vpop.f32.mrf.mxu1  ;;  %v3100_v61 = vpop.f32.mrf.mxu2 }
 0x5af   :  { %v2778_v18 = vmul.f32 %v8735_v13, %v2777_v31  ;;  %v2791_v23 = vmul.f32 %v2773_v56, %v8502_v21  ;;  %v6144_v21 = vld [vmem:[%s9294_s5 + $0xc] sm:$0xf0]  ;;  %3383 = vmatpush.bf16.msra.mxu0 %v8810_v45  ;;  %v8860_v53 = vor.u32 %v6145_v14, %v5676_v29  ;;  %v8950_v33 = vpop.f32.mrf.mxu3 }
 0x5b0   :  { %v8849_v58 = vor.u32 %v6144_v21, %v5668_v43  ;;  %3396 = vmatpush.bf16.msrb.mxu1 %v8814_v41  ;;  %3409 = vmatpush.bf16.msra.mxu2 %v8828_v60  ;;  %9313 = vst [vmem:[#allocation4_spill] sm:$0xff] %v8950_v33 }
 0x5b1   :  { %v2793_v37 = vadd.f32 %v2792_v3, %v2791_v23  ;;  %v2779_v19 = vadd.f32 %v8735_v13, %v2778_v18  ;;  %3423 = vmatpush.bf16.msra.mxu3 %v8872_v1 }
 0x5b3   :  { %6311 = vtanh.f32 %v2793_v37  ;;  %v2783_v17 = vsel %vm2782_vm0, %v8735_v13, %v2779_v19  ;;  %3384 = vmatpush.bf16.msra.mxu0 %v8849_v58 }
 0x5b4   :  { %3397 = vmatpush.bf16.msrb.mxu1 %v8855_v30  ;;  %v2788_v62 = vsel %vm2785_vm1, %v2787_v8, %v2783_v17  ;;  %3410 = vmatpush.bf16.msra.mxu2 %v8860_v53 }
 0x5b5   :  { %3540 = vmatpush.bf16.msrb.mxu3 %v8547_v39 }
 0x5b6   :  { %v8946_v3 = vpop.f32.mrf.mxu1  ;;  %v8948_v24 = vpop.f32.mrf.mxu2 }
 0x5b7   :  { %3501 = vmatpush.bf16.msrb.mxu0 %v8525_v4  ;;  %v8958_v43 = vpop.f32.mrf.mxu3 }
 0x5b8   :  { %3514 = vmatpush.bf16.msra.mxu1 %v8536_v59  ;;  %3527 = vmatpush.bf16.msrb.mxu2 %v8538_v57  ;;  %9317 = vst [vmem:[#allocation8_spill] sm:$0xff] %v8958_v43 }
 0x5b9   :  { %v6312_v38 = vpop.eup %6311  ;;  %3541 = vmatpush.bf16.msrb.mxu3 %v8600_v20 }
 0x5ba   :  { %v2795_v31 = vmul.f32 %v6312_v38, %v2788_v62  ;;  %v2799_v62 = vld [vmem:[%s9295_s6] sm:$0xf] }
 0x5bb   :  { %3502 = vmatpush.bf16.msrb.mxu0 %v8562_v26 }
 0x5bc   :  { %v2796_v13 = vpack.c.bf16 %v2795_v31, %v2795_v31  ;;  %3515 = vmatpush.bf16.msra.mxu1 %v8573_v44  ;;  %3528 = vmatpush.bf16.msrb.mxu2 %v8592_v27 }
 0x5bd   :  { %3542 = vmatpush.bf16.msrb.mxu3 %v8684_v50 }
 0x5be   :  { %2798 = vst [vmem:[#allocation3 + $0x1c] sm:$0xf] %v2796_v13  ;;  %v8954_v18 = vpop.f32.mrf.mxu1  ;;  %v8956_v23 = vpop.f32.mrf.mxu2 }
 0x5bf   :  { %3503 = vmatpush.bf16.msrb.mxu0 %v8612_v48  ;;  %9315 = vst [vmem:[#allocation6_spill] sm:$0xff] %v8954_v18  ;;  %v8966_v34 = vpop.f32.mrf.mxu3 }
 0x5c0   :  { %3516 = vmatpush.bf16.msra.mxu1 %v8614_v32  ;;  %3529 = vmatpush.bf16.msrb.mxu2 %v8629_v0  ;;  %9316 = vst [vmem:[#allocation7_spill] sm:$0xff] %v8956_v23 }
 0x5c1   :  { %3543 = vmatpush.bf16.msrb.mxu3 %v8724_v16  ;;  %9321 = vst [vmem:[#allocation12_spill] sm:$0xff] %v8966_v34 }
 0x5c3   :  { %3504 = vmatpush.bf16.msrb.mxu0 %v8642_v10 }
 0x5c4   :  { %3517 = vmatpush.bf16.msra.mxu1 %v8644_v40  ;;  %3530 = vmatpush.bf16.msrb.mxu2 %v8682_v42 }
 0x5c5   :  { %v6109_v12 = vld [vmem:[#allocation3 + $0x18] sm:$0xff]  ;;  %3544 = vmatpush.bf16.msrb.mxu3 %v8771_v25 }
 0x5c6   :  { %3056 = vmatmul.bf16.gmra.mxu0 %v6109_v12  ;;  %3085 = vmatmul.bf16.gmra.mxu1 %v6109_v12  ;;  %v8962_v52 = vpop.f32.mrf.mxu1  ;;  %v8964_v37 = vpop.f32.mrf.mxu2 }
 0x5c7   :  { %3114 = vmatmul.bf16.gmra.mxu2 %v6109_v12  ;;  %3143 = vmatmul.bf16.gmra.mxu3 %v6109_v12  ;;  %9319 = vst [vmem:[#allocation10_spill] sm:$0xff] %v8962_v52  ;;  %v8974_v29 = vpop.f32.mrf.mxu3  ;;  %v8999_v12 = vperm.slane %v2799_v62, 0 }
 0x5c8   :  { %3505 = vmatpush.bf16.msrb.mxu0 %v8707_v55  ;;  %3518 = vmatpush.bf16.msra.mxu1 %v8720_v22  ;;  %9320 = vst [vmem:[#allocation11_spill] sm:$0xff] %v8964_v37 }
 0x5c9   :  { %3531 = vmatpush.bf16.msrb.mxu2 %v8722_v6  ;;  %3545 = vmatpush.bf16.msrb.mxu3 %v8816_v51  ;;  %9325 = vst [vmem:[#allocation16_spill] sm:$0xff] %v8974_v29 }
 0x5cc   :  { %3506 = vmatpush.bf16.msrb.mxu0 %v8763_v35  ;;  %3519 = vmatpush.bf16.msra.mxu1 %v8769_v2 }
 0x5cd   :  { %3532 = vmatpush.bf16.msrb.mxu2 %v8788_v63  ;;  %3546 = vmatpush.bf16.msrb.mxu3 %v8857_v5 }
 0x5ce   :  { %v8970_v49 = vpop.f32.mrf.mxu1  ;;  %v8972_v19 = vpop.f32.mrf.mxu2 }
 0x5cf   :  { %9323 = vst [vmem:[#allocation14_spill] sm:$0xff] %v8970_v49  ;;  %v8982_v47 = vpop.f32.mrf.mxu3 }
 0x5d0   :  { %3507 = vmatpush.bf16.msrb.mxu0 %v8810_v45  ;;  %3520 = vmatpush.bf16.msra.mxu1 %v8814_v41  ;;  %9324 = vst [vmem:[#allocation15_spill] sm:$0xff] %v8972_v19  ;;  %v9009_v19 = vperm.slane %v2799_v62, 2 }
 0x5d1   :  { %3533 = vmatpush.bf16.msrb.mxu2 %v8828_v60  ;;  %3547 = vmatpush.bf16.msrb.mxu3 %v8872_v1  ;;  %9329 = vst [vmem:[#allocation20_spill] sm:$0xff] %v8982_v47 }
 0x5d2   :  { %v3101_v49 = vadd.f32 %v3100_v61, %v9009_v19 }
 0x5d4   :  { %3508 = vmatpush.bf16.msrb.mxu0 %v8849_v58  ;;  %3521 = vmatpush.bf16.msra.mxu1 %v8855_v30 }
 0x5d5   :  { %3534 = vmatpush.bf16.msrb.mxu2 %v8860_v53 }
 0x5d6   :  { %3385 = vmatmul.bf16.vlgmr.msra.gmra.mxu0 %v6441_v54  ;;  %3398 = vmatmul.bf16.vlgmr.msrb.gmra.mxu1 %v6441_v54  ;;  %v8978_v7 = vpop.f32.mrf.mxu1  ;;  %v8980_v9 = vpop.f32.mrf.mxu2 }
 0x5d7   :  { %3411 = vmatmul.bf16.vlgmr.msra.gmra.mxu2 %v6441_v54  ;;  %3424 = vmatmul.bf16.vlgmr.msra.gmra.mxu3 %v6441_v54  ;;  %v3042_v54 = vpop.f32.mrf.mxu0  ;;  %9327 = vst [vmem:[#allocation18_spill] sm:$0xff] %v8978_v7 }
 0x5d8   :  { %3625 = vmatpush.bf16.msra.mxu0 %v8525_v4  ;;  %3638 = vmatpush.bf16.msrb.mxu1 %v8536_v59  ;;  %9328 = vst [vmem:[#allocation19_spill] sm:$0xff] %v8980_v9  ;;  %v9001_v9 = vperm.slane %v2799_v62, 1 }
 0x5d9   :  { %3651 = vmatpush.bf16.msra.mxu2 %v8538_v57  ;;  %3664 = vmatpush.bf16.msra.mxu3 %v8547_v39 }
 0x5dc   :  { %3626 = vmatpush.bf16.msra.mxu0 %v8562_v26  ;;  %3639 = vmatpush.bf16.msrb.mxu1 %v8573_v44 }
 0x5dd   :  { %3652 = vmatpush.bf16.msra.mxu2 %v8592_v27  ;;  %3665 = vmatpush.bf16.msra.mxu3 %v8600_v20 }
 0x5df   :  { %v8944_v56 = vpop.f32.mrf.mxu0 }
 0x5e0   :  { %3627 = vmatpush.bf16.msra.mxu0 %v8612_v48  ;;  %3640 = vmatpush.bf16.msrb.mxu1 %v8614_v32 }
 0x5e1   :  { %3653 = vmatpush.bf16.msra.mxu2 %v8629_v0  ;;  %3666 = vmatpush.bf16.msra.mxu3 %v8684_v50 }
 0x5e4   :  { %3628 = vmatpush.bf16.msra.mxu0 %v8642_v10  ;;  %3641 = vmatpush.bf16.msrb.mxu1 %v8644_v40 }
 0x5e5   :  { %3654 = vmatpush.bf16.msra.mxu2 %v8682_v42  ;;  %3667 = vmatpush.bf16.msra.mxu3 %v8724_v16 }
 0x5e7   :  { %v8952_v11 = vpop.f32.mrf.mxu0 }
 0x5e8   :  { %3629 = vmatpush.bf16.msra.mxu0 %v8707_v55  ;;  %3642 = vmatpush.bf16.msrb.mxu1 %v8720_v22  ;;  %9314 = vst [vmem:[#allocation5_spill] sm:$0xff] %v8952_v11 }
 0x5e9   :  { %3655 = vmatpush.bf16.msra.mxu2 %v8722_v6  ;;  %3668 = vmatpush.bf16.msra.mxu3 %v8771_v25 }
 0x5ec   :  { %3630 = vmatpush.bf16.msra.mxu0 %v8763_v35  ;;  %3643 = vmatpush.bf16.msrb.mxu1 %v8769_v2 }
 0x5ed   :  { %3656 = vmatpush.bf16.msra.mxu2 %v8788_v63  ;;  %3669 = vmatpush.bf16.msra.mxu3 %v8816_v51 }
 0x5ef   :  { %v8960_v21 = vpop.f32.mrf.mxu0 }
 0x5f0   :  { %3631 = vmatpush.bf16.msra.mxu0 %v8810_v45  ;;  %3644 = vmatpush.bf16.msrb.mxu1 %v8814_v41  ;;  %9318 = vst [vmem:[#allocation9_spill] sm:$0xff] %v8960_v21 }
 0x5f1   :  { %3657 = vmatpush.bf16.msra.mxu2 %v8828_v60  ;;  %3670 = vmatpush.bf16.msra.mxu3 %v8857_v5 }
 0x5f4   :  { %3632 = vmatpush.bf16.msra.mxu0 %v8849_v58  ;;  %3645 = vmatpush.bf16.msrb.mxu1 %v8855_v30 }
 0x5f5   :  { %3658 = vmatpush.bf16.msra.mxu2 %v8860_v53  ;;  %3671 = vmatpush.bf16.msra.mxu3 %v8872_v1 }
 0x5f7   :  { %v8968_v28 = vpop.f32.mrf.mxu0 }
 0x5f8   :  { %9322 = vst [vmem:[#allocation13_spill] sm:$0xff] %v8968_v28 }
 0x5ff   :  { %v8976_v14 = vpop.f32.mrf.mxu0 }
 0x600   :  { %9326 = vst [vmem:[#allocation17_spill] sm:$0xff] %v8976_v14 }
 0x643   :  { %v8984_v36 = vpop.f32.mrf.mxu0  ;;  %v8986_v17 = vpop.f32.mrf.mxu1 }
 0x644   :  { %9330 = vst [vmem:[#allocation21_spill] sm:$0xff] %v8984_v36  ;;  %v3043_v36 = vadd.f32 %v3042_v54, %v8999_v12 }
 0x645   :  { %9331 = vst [vmem:[#allocation22_spill] sm:$0xff] %v8986_v17  ;;  %v3072_v17 = vadd.f32 %v3071_v15, %v9001_v9 }
 0x64a   :  { %v8988_v8 = vpop.f32.mrf.mxu2  ;;  %v8990_v38 = vpop.f32.mrf.mxu3 }
 0x64b   :  { %9332 = vst [vmem:[#allocation23_spill] sm:$0xff] %v8988_v8  ;;  %v8995_v31 = vpop.f32.mrf.mxu0  ;;  %v8997_v13 = vpop.f32.mrf.mxu1 }
 0x64c   :  { %9333 = vst [vmem:[#allocation24_spill] sm:$0xff] %v8990_v38 }
 0x64d   :  { %9334 = vst [vmem:[#allocation25_spill] sm:$0xff] %v8995_v31 }
 0x64e   :  { %9335 = vst [vmem:[#allocation26_spill] sm:$0xff] %v8997_v13 }
 0x652   :  { %v9005_v47 = vpop.f32.mrf.mxu2  ;;  %v9007_v8 = vpop.f32.mrf.mxu3 }
 0x653   :  { %9336 = vst [vmem:[#allocation27_spill] sm:$0xff] %v9005_v47  ;;  %v3386_v38 = vpop.f32.mrf.mxu0  ;;  %v3399_v7 = vpop.f32.mrf.mxu1 }
 0x654   :  { %9337 = vst [vmem:[#allocation28_spill] sm:$0xff] %v9007_v8  ;;  %v3429_v14 = vadd.f32 %v3386_v38, %v3043_v36  ;;  %v3430_v29 = vadd.f32 %v3399_v7, %v3072_v17  ;;  %v9012_v7 = vperm.slane %v2799_v62, 3 }
 0x656   :  { %v5794_v31 = vmul.f32 -1.442695, %v3429_v14  ;;  %v5795_v13 = vmul.f32 -1.442695, %v3430_v29  ;;  %9338 = vst [vmem:[#allocation29_spill] sm:$0xff] %v9012_v7  ;;  %v3130_v61 = vadd.f32 %v3129_v46, %v9012_v7 }
 0x658   :  { %6313 = vpow2.f32 %v5794_v31 }
 0x659   :  { %6315 = vpow2.f32 %v5795_v13 }
 0x65a   :  { %v3412_v28 = vpop.f32.mrf.mxu2  ;;  %v3425_v54 = vpop.f32.mrf.mxu3 }
 0x65b   :  { %v3431_v34 = vadd.f32 %v3412_v28, %v3101_v49  ;;  %v3388_v15 = vpop.f32.mrf.mxu0  ;;  %v3401_v37 = vpop.f32.mrf.mxu1  ;;  %v3432_v28 = vadd.f32 %v3425_v54, %v3130_v61 }
 0x65d   :  { %v5796_v47 = vmul.f32 -1.442695, %v3431_v34 }
 0x65e   :  { %v6314_v52 = vpop.eup %6313 }
 0x65f   :  { %v6316_v8 = vpop.eup %6315  ;;  %v3442_v21 = vadd.f32 1.0, %v6314_v52  ;;  %6317 = vpow2.f32 %v5796_v47 }
 0x660   :  { %v3443_v36 = vadd.f32 1.0, %v6316_v8 }
 0x661   :  { %6319 = vrcp.f32 %v3442_v21  ;;  %v3456_v47 = vand.u32 2147483648, %v3442_v21  ;;  %v3454_v15 = vand.u32 2147483647, %v3442_v21  ;;  %vm3450_vm4 = vweird.f32 %v3442_v21 }
 0x662   :  { %6321 = vrcp.f32 %v3443_v36  ;;  %v3414_v29 = vpop.f32.mrf.mxu2  ;;  %v3427_v14 = vpop.f32.mrf.mxu3  ;;  %v3471_v8 = vand.u32 2147483648, %v3443_v36  ;;  %vm3465_vm5 = vweird.f32 %v3443_v36 }
 0x663   :  { %v3469_v14 = vand.u32 2147483647, %v3443_v36  ;;  %vm3455_vm7 = vcmp.eq.f32.partialorder %v3454_v15, 8.507059e+37 }
 0x664   :  { %v3472_v23 = vor.u32 1.1754944e-38, %v3471_v8 }
 0x665   :  { %v6318_v17 = vpop.eup %6317  ;;  %vm3470_vm9 = vcmp.eq.f32.partialorder %v3469_v14, 8.507059e+37 }
 0x666   :  { %v3444_v38 = vadd.f32 1.0, %v6318_v17  ;;  %v3457_v17 = vor.u32 1.1754944e-38, %v3456_v47 }
 0x667   :  { %v6320_v31 = vpop.eup %6319 }
 0x668   :  { %v6322_v49 = vpop.eup %6321  ;;  %v3446_v37 = vmul.f32 %v6320_v31, %v3442_v21  ;;  %6323 = vrcp.f32 %v3444_v38  ;;  %vm3451_vm2 = vweird.f32 %v6320_v31  ;;  %vm3480_vm11 = vweird.f32 %v3444_v38 }
 0x669   :  { %v3461_v34 = vmul.f32 %v6322_v49, %v3443_v36  ;;  %6325 = vtanh.f32 %v3432_v28  ;;  %vm3466_vm3 = vweird.f32 %v6322_v49  ;;  %vm3452_vm6 = vmor %vm3450_vm4, %vm3451_vm2  ;;  %v3486_v36 = vand.u32 2147483648, %v3444_v38 }
 0x66a   :  { %v3447_v13 = vsub.f32 1.0, %v3446_v37  ;;  %vm3467_vm8 = vmor %vm3465_vm5, %vm3466_vm3 }
 0x66b   :  { %v3462_v52 = vsub.f32 1.0, %v3461_v34  ;;  %v3487_v8 = vor.u32 1.1754944e-38, %v3486_v36 }
 0x66c   :  { %v3448_v62 = vmul.f32 %v6320_v31, %v3447_v13 }
 0x66d   :  { %v3463_v29 = vmul.f32 %v6322_v49, %v3462_v52 }
 0x66e   :  { %v6324_v43 = vpop.eup %6323  ;;  %v3449_v46 = vadd.f32 %v6320_v31, %v3448_v62 }
 0x66f   :  { %v3476_v54 = vmul.f32 %v6324_v43, %v3444_v38  ;;  %v3464_v61 = vadd.f32 %v6322_v49, %v3463_v29  ;;  %v6326_v28 = vpop.eup %6325  ;;  %vm3481_vm10 = vweird.f32 %v6324_v43 }
 0x670   :  { %v3453_v37 = vsel %vm3452_vm6, %v6320_v31, %v3449_v46  ;;  %v3484_v31 = vand.u32 2147483647, %v3444_v38  ;;  %vm3482_vm12 = vmor %vm3480_vm11, %vm3481_vm10 }
 0x671   :  { %v3477_v34 = vsub.f32 1.0, %v3476_v54  ;;  %v3458_v13 = vsel %vm3455_vm7, %v3457_v17, %v3453_v37  ;;  %v3468_v18 = vsel %vm3467_vm8, %v6322_v49, %v3464_v61  ;;  %v3103_v54 = vadd.f32 %v8948_v24, %v9009_v19 }
 0x672   :  { %v3473_v52 = vsel %vm3470_vm9, %v3472_v23, %v3468_v18  ;;  %v3492_v11 = vmul.f32 %v6326_v28, %v3458_v13  ;;  %vm3485_vm13 = vcmp.eq.f32.partialorder %v3484_v31, 8.507059e+37 }
 0x673   :  { %v3478_v33 = vmul.f32 %v6324_v43, %v3477_v34  ;;  %v3491_v7 = vmul.f32 0.0, %v3473_v52 }
 0x675   :  { %v9015_v62 = vadd.f32 %v3492_v11, %v3491_v7  ;;  %v3479_v21 = vadd.f32 %v6324_v43, %v3478_v33  ;;  %v3045_v33 = vadd.f32 %v8944_v56, %v8999_v12  ;;  %v3074_v11 = vadd.f32 %v8946_v3, %v9001_v9 }
 0x677   :  { %6327 = vtanh.f32 %v9015_v62  ;;  %v3483_v47 = vsel %vm3482_vm12, %v6324_v43, %v3479_v21 }
 0x678   :  { %v3488_v49 = vsel %vm3485_vm13, %v3487_v8, %v3483_v47  ;;  %v9339_v8 = vld [vmem:[#allocation29_spill] sm:$0xff] }
 0x67d   :  { %v6328_v15 = vpop.eup %6327 }
 0x67e   :  { %v3495_v29 = vmul.f32 %v6328_v15, %v3488_v49  ;;  %v9340_v15 = vld [vmem:[#allocation4_spill] sm:$0xff] }
 0x67f   :  { %v3132_v24 = vadd.f32 %v9340_v15, %v9339_v8 }
 0x680   :  { %v3500_v18 = vpack.c.bf16 %v3495_v29, %v3495_v29 }
 0x682   :  { %3509 = vmatmul.bf16.vlgmr.msrb.gmra.mxu0 %v3500_v18  ;;  %3522 = vmatmul.bf16.vlgmr.msra.gmra.mxu1 %v3500_v18 }
 0x683   :  { %3535 = vmatmul.bf16.vlgmr.msrb.gmra.mxu2 %v3500_v18  ;;  %3548 = vmatmul.bf16.vlgmr.msrb.gmra.mxu3 %v3500_v18 }
 0x684   :  { %3749 = vmatpush.bf16.msrb.mxu0 %v8525_v4  ;;  %3762 = vmatpush.bf16.msra.mxu1 %v8536_v59 }
 0x685   :  { %3775 = vmatpush.bf16.msrb.mxu2 %v8538_v57  ;;  %3788 = vmatpush.bf16.msrb.mxu3 %v8547_v39 }
 0x688   :  { %3750 = vmatpush.bf16.msrb.mxu0 %v8562_v26  ;;  %3763 = vmatpush.bf16.msra.mxu1 %v8573_v44 }
 0x689   :  { %3776 = vmatpush.bf16.msrb.mxu2 %v8592_v27  ;;  %3789 = vmatpush.bf16.msrb.mxu3 %v8600_v20 }
 0x68c   :  { %3751 = vmatpush.bf16.msrb.mxu0 %v8612_v48  ;;  %3764 = vmatpush.bf16.msra.mxu1 %v8614_v32 }
 0x68d   :  { %3777 = vmatpush.bf16.msrb.mxu2 %v8629_v0  ;;  %3790 = vmatpush.bf16.msrb.mxu3 %v8684_v50 }
 0x690   :  { %3752 = vmatpush.bf16.msrb.mxu0 %v8642_v10  ;;  %3765 = vmatpush.bf16.msra.mxu1 %v8644_v40 }
 0x691   :  { %3778 = vmatpush.bf16.msrb.mxu2 %v8682_v42  ;;  %3791 = vmatpush.bf16.msrb.mxu3 %v8724_v16 }
 0x694   :  { %3753 = vmatpush.bf16.msrb.mxu0 %v8707_v55  ;;  %3766 = vmatpush.bf16.msra.mxu1 %v8720_v22 }
 0x695   :  { %3779 = vmatpush.bf16.msrb.mxu2 %v8722_v6  ;;  %3792 = vmatpush.bf16.msrb.mxu3 %v8771_v25 }
 0x698   :  { %3754 = vmatpush.bf16.msrb.mxu0 %v8763_v35  ;;  %3767 = vmatpush.bf16.msra.mxu1 %v8769_v2 }
 0x699   :  { %3780 = vmatpush.bf16.msrb.mxu2 %v8788_v63  ;;  %3793 = vmatpush.bf16.msrb.mxu3 %v8816_v51 }
 0x69c   :  { %3755 = vmatpush.bf16.msrb.mxu0 %v8810_v45  ;;  %3768 = vmatpush.bf16.msra.mxu1 %v8814_v41 }
 0x69d   :  { %3781 = vmatpush.bf16.msrb.mxu2 %v8828_v60  ;;  %3794 = vmatpush.bf16.msrb.mxu3 %v8857_v5 }
 0x6a0   :  { %3756 = vmatpush.bf16.msrb.mxu0 %v8849_v58  ;;  %3769 = vmatpush.bf16.msra.mxu1 %v8855_v30 }
 0x6a1   :  { %3782 = vmatpush.bf16.msrb.mxu2 %v8860_v53  ;;  %3795 = vmatpush.bf16.msrb.mxu3 %v8872_v1 }
 0x6ff   :  { %v3510_v23 = vpop.f32.mrf.mxu0  ;;  %v3523_v43 = vpop.f32.mrf.mxu1 }
 0x700   :  { %v3553_v7 = vadd.f32 %v3510_v23, %v3045_v33  ;;  %v3554_v38 = vadd.f32 %v3523_v43, %v3074_v11 }
 0x702   :  { %v5797_v14 = vmul.f32 -1.442695, %v3553_v7  ;;  %v5798_v46 = vmul.f32 -1.442695, %v3554_v38 }
 0x704   :  { %6329 = vpow2.f32 %v5797_v14 }
 0x705   :  { %6331 = vpow2.f32 %v5798_v46 }
 0x706   :  { %v3536_v17 = vpop.f32.mrf.mxu2  ;;  %v3549_v61 = vpop.f32.mrf.mxu3 }
 0x707   :  { %v3555_v37 = vadd.f32 %v3536_v17, %v3103_v54  ;;  %v3512_v28 = vpop.f32.mrf.mxu0  ;;  %v3525_v34 = vpop.f32.mrf.mxu1  ;;  %v3556_v18 = vadd.f32 %v3549_v61, %v3132_v24 }
 0x709   :  { %v5799_v56 = vmul.f32 -1.442695, %v3555_v37 }
 0x70a   :  { %v6330_v13 = vpop.eup %6329 }
 0x70b   :  { %v6332_v52 = vpop.eup %6331  ;;  %v3566_v3 = vadd.f32 1.0, %v6330_v13  ;;  %6333 = vpow2.f32 %v5799_v56 }
 0x70c   :  { %v3567_v21 = vadd.f32 1.0, %v6332_v52 }
 0x70d   :  { %6335 = vrcp.f32 %v3566_v3  ;;  %v3580_v38 = vand.u32 2147483648, %v3566_v3  ;;  %v3578_v54 = vand.u32 2147483647, %v3566_v3  ;;  %vm3574_vm0 = vweird.f32 %v3566_v3 }
 0x70e   :  { %6337 = vrcp.f32 %v3567_v21  ;;  %v3538_v36 = vpop.f32.mrf.mxu2  ;;  %v3551_v31 = vpop.f32.mrf.mxu3  ;;  %v3595_v14 = vand.u32 2147483648, %v3567_v21  ;;  %v3593_v37 = vand.u32 2147483647, %v3567_v21  ;;  %vm3589_vm1 = vweird.f32 %v3567_v21 }
 0x70f   :  { %v3581_v56 = vor.u32 1.1754944e-38, %v3580_v38  ;;  %vm3579_vm4 = vcmp.eq.f32.partialorder %v3578_v54, 8.507059e+37 }
 0x710   :  { %v3596_v52 = vor.u32 1.1754944e-38, %v3595_v14  ;;  %vm3594_vm5 = vcmp.eq.f32.partialorder %v3593_v37, 8.507059e+37  ;;  %v9342_v37 = vld [vmem:[#allocation6_spill] sm:$0xff] }
 0x711   :  { %v6334_v47 = vpop.eup %6333 }
 0x712   :  { %v3568_v49 = vadd.f32 1.0, %v6334_v47 }
 0x713   :  { %v6336_v29 = vpop.eup %6335 }
 0x714   :  { %v6338_v33 = vpop.eup %6337  ;;  %v3570_v11 = vmul.f32 %v6336_v29, %v3566_v3  ;;  %6339 = vrcp.f32 %v3568_v49  ;;  %vm3575_vm14 = vweird.f32 %v6336_v29  ;;  %vm3604_vm7 = vweird.f32 %v3568_v49 }
 0x715   :  { %v3585_v23 = vmul.f32 %v6338_v33, %v3567_v21  ;;  %6341 = vtanh.f32 %v3556_v18  ;;  %vm3590_vm15 = vweird.f32 %v6338_v33  ;;  %vm3576_vm2 = vmor %vm3574_vm0, %vm3575_vm14 }
 0x716   :  { %v3571_v43 = vsub.f32 1.0, %v3570_v11  ;;  %vm3591_vm3 = vmor %vm3589_vm1, %vm3590_vm15 }
 0x717   :  { %v3586_v7 = vsub.f32 1.0, %v3585_v23 }
 0x718   :  { %v3572_v46 = vmul.f32 %v6336_v29, %v3571_v43 }
 0x719   :  { %v3587_v17 = vmul.f32 %v6338_v33, %v3586_v7  ;;  %v3610_v7 = vand.u32 2147483648, %v3568_v49 }
 0x71a   :  { %v6340_v28 = vpop.eup %6339  ;;  %v3573_v34 = vadd.f32 %v6336_v29, %v3572_v46 }
 0x71b   :  { %v3600_v61 = vmul.f32 %v6340_v28, %v3568_v49  ;;  %v3588_v13 = vadd.f32 %v6338_v33, %v3587_v17  ;;  %v6342_v31 = vpop.eup %6341  ;;  %vm3605_vm6 = vweird.f32 %v6340_v28  ;;  %v3611_v14 = vor.u32 1.1754944e-38, %v3610_v7 }
 0x71c   :  { %v3577_v36 = vsel %vm3576_vm2, %v6336_v29, %v3573_v34  ;;  %v3608_v29 = vand.u32 2147483647, %v3568_v49  ;;  %vm3606_vm8 = vmor %vm3604_vm7, %vm3605_vm6 }
 0x71d   :  { %v3601_v47 = vsub.f32 1.0, %v3600_v61  ;;  %v3582_v15 = vsel %vm3579_vm4, %v3581_v56, %v3577_v36  ;;  %v3592_v24 = vsel %vm3591_vm3, %v6338_v33, %v3588_v13 }
 0x71e   :  { %v3597_v18 = vsel %vm3594_vm5, %v3596_v52, %v3592_v24  ;;  %v3616_v11 = vmul.f32 %v6342_v31, %v3582_v15  ;;  %vm3609_vm9 = vcmp.eq.f32.partialorder %v3608_v29, 8.507059e+37  ;;  %v9343_v31 = vld [vmem:[#allocation7_spill] sm:$0xff] }
 0x71f   :  { %v3602_v23 = vmul.f32 %v6340_v28, %v3601_v47  ;;  %v3615_v43 = vmul.f32 %v3597_v18, %v9015_v62  ;;  %v9341_v62 = vld [vmem:[#allocation5_spill] sm:$0xff]  ;;  %v3106_v47 = vadd.f32 %v9343_v31, %v9009_v19 }
 0x720   :  { %v3048_v49 = vadd.f32 %v9341_v62, %v8999_v12 }
 0x721   :  { %v9059_v3 = vadd.f32 %v3616_v11, %v3615_v43  ;;  %v3603_v21 = vadd.f32 %v6340_v28, %v3602_v23 }
 0x723   :  { %6343 = vtanh.f32 %v9059_v3  ;;  %v3607_v38 = vsel %vm3606_vm8, %v6340_v28, %v3603_v21  ;;  %v3077_v28 = vadd.f32 %v9342_v37, %v9001_v9 }
 0x724   :  { %v3612_v46 = vsel %vm3609_vm9, %v3611_v14, %v3607_v38 }
 0x729   :  { %v6344_v33 = vpop.eup %6343 }
 0x72a   :  { %v3619_v54 = vmul.f32 %v6344_v33, %v3612_v46 }
 0x72c   :  { %v3624_v17 = vpack.c.bf16 %v3619_v54, %v3619_v54  ;;  %v9344_v54 = vld [vmem:[#allocation8_spill] sm:$0xff] }
 0x72e   :  { %3633 = vmatmul.bf16.vlgmr.msra.gmra.mxu0 %v3624_v17  ;;  %3646 = vmatmul.bf16.vlgmr.msrb.gmra.mxu1 %v3624_v17 }
 0x72f   :  { %3659 = vmatmul.bf16.vlgmr.msra.gmra.mxu2 %v3624_v17  ;;  %3672 = vmatmul.bf16.vlgmr.msra.gmra.mxu3 %v3624_v17  ;;  %v3135_v17 = vadd.f32 %v9344_v54, %v9339_v8 }
 0x730   :  { %3873 = vmatpush.bf16.msra.mxu0 %v8525_v4  ;;  %3886 = vmatpush.bf16.msrb.mxu1 %v8536_v59 }
 0x731   :  { %3899 = vmatpush.bf16.msra.mxu2 %v8538_v57  ;;  %3912 = vmatpush.bf16.msra.mxu3 %v8547_v39 }
 0x734   :  { %3874 = vmatpush.bf16.msra.mxu0 %v8562_v26  ;;  %3887 = vmatpush.bf16.msrb.mxu1 %v8573_v44 }
 0x735   :  { %3900 = vmatpush.bf16.msra.mxu2 %v8592_v27  ;;  %3913 = vmatpush.bf16.msra.mxu3 %v8600_v20 }
 0x738   :  { %3875 = vmatpush.bf16.msra.mxu0 %v8612_v48  ;;  %3888 = vmatpush.bf16.msrb.mxu1 %v8614_v32 }
 0x739   :  { %3901 = vmatpush.bf16.msra.mxu2 %v8629_v0  ;;  %3914 = vmatpush.bf16.msra.mxu3 %v8684_v50 }
 0x73c   :  { %3876 = vmatpush.bf16.msra.mxu0 %v8642_v10  ;;  %3889 = vmatpush.bf16.msrb.mxu1 %v8644_v40 }
 0x73d   :  { %3902 = vmatpush.bf16.msra.mxu2 %v8682_v42  ;;  %3915 = vmatpush.bf16.msra.mxu3 %v8724_v16 }
 0x740   :  { %3877 = vmatpush.bf16.msra.mxu0 %v8707_v55  ;;  %3890 = vmatpush.bf16.msrb.mxu1 %v8720_v22 }
 0x741   :  { %3903 = vmatpush.bf16.msra.mxu2 %v8722_v6  ;;  %3916 = vmatpush.bf16.msra.mxu3 %v8771_v25 }
 0x744   :  { %3878 = vmatpush.bf16.msra.mxu0 %v8763_v35  ;;  %3891 = vmatpush.bf16.msrb.mxu1 %v8769_v2 }
 0x745   :  { %3904 = vmatpush.bf16.msra.mxu2 %v8788_v63  ;;  %3917 = vmatpush.bf16.msra.mxu3 %v8816_v51 }
 0x748   :  { %3879 = vmatpush.bf16.msra.mxu0 %v8810_v45  ;;  %3892 = vmatpush.bf16.msrb.mxu1 %v8814_v41 }
 0x749   :  { %3905 = vmatpush.bf16.msra.mxu2 %v8828_v60  ;;  %3918 = vmatpush.bf16.msra.mxu3 %v8857_v5 }
 0x74c   :  { %3880 = vmatpush.bf16.msra.mxu0 %v8849_v58  ;;  %3893 = vmatpush.bf16.msrb.mxu1 %v8855_v30 }
 0x74d   :  { %3906 = vmatpush.bf16.msra.mxu2 %v8860_v53  ;;  %3919 = vmatpush.bf16.msra.mxu3 %v8872_v1 }
 0x7ab   :  { %v3634_v34 = vpop.f32.mrf.mxu0  ;;  %v3647_v61 = vpop.f32.mrf.mxu1 }
 0x7ac   :  { %v3677_v56 = vadd.f32 %v3634_v34, %v3048_v49  ;;  %v3678_v13 = vadd.f32 %v3647_v61, %v3077_v28 }
 0x7ae   :  { %v5800_v52 = vmul.f32 -1.442695, %v3677_v56  ;;  %v5801_v36 = vmul.f32 -1.442695, %v3678_v13 }
 0x7b0   :  { %6345 = vpow2.f32 %v5800_v52 }
 0x7b1   :  { %6347 = vpow2.f32 %v5801_v36 }
 0x7b2   :  { %v3660_v15 = vpop.f32.mrf.mxu2  ;;  %v3673_v24 = vpop.f32.mrf.mxu3 }
 0x7b3   :  { %v3679_v18 = vadd.f32 %v3660_v15, %v3106_v47  ;;  %v3636_v11 = vpop.f32.mrf.mxu0  ;;  %v3649_v23 = vpop.f32.mrf.mxu1  ;;  %v3680_v37 = vadd.f32 %v3673_v24, %v3135_v17 }
 0x7b5   :  { %v5802_v43 = vmul.f32 -1.442695, %v3679_v18 }
 0x7b6   :  { %v6346_v21 = vpop.eup %6345 }
 0x7b7   :  { %v6348_v7 = vpop.eup %6347  ;;  %v3690_v29 = vadd.f32 1.0, %v6346_v21  ;;  %6349 = vpow2.f32 %v5802_v43 }
 0x7b8   :  { %v3691_v38 = vadd.f32 1.0, %v6348_v7 }
 0x7b9   :  { %6351 = vrcp.f32 %v3690_v29  ;;  %v3704_v52 = vand.u32 2147483648, %v3690_v29  ;;  %v3702_v47 = vand.u32 2147483647, %v3690_v29  ;;  %vm3698_vm12 = vweird.f32 %v3690_v29 }
 0x7ba   :  { %6353 = vrcp.f32 %v3691_v38  ;;  %v3662_v14 = vpop.f32.mrf.mxu2  ;;  %v3675_v33 = vpop.f32.mrf.mxu3  ;;  %v3719_v36 = vand.u32 2147483648, %v3691_v38  ;;  %v3717_v18 = vand.u32 2147483647, %v3691_v38  ;;  %vm3713_vm13 = vweird.f32 %v3691_v38 }
 0x7bb   :  { %v3705_v43 = vor.u32 1.1754944e-38, %v3704_v52  ;;  %vm3703_vm0 = vcmp.eq.f32.partialorder %v3702_v47, 8.507059e+37 }
 0x7bc   :  { %v3720_v7 = vor.u32 1.1754944e-38, %v3719_v36  ;;  %vm3718_vm1 = vcmp.eq.f32.partialorder %v3717_v18, 8.507059e+37  ;;  %v9346_v18 = vld [vmem:[#allocation10_spill] sm:$0xff] }
 0x7bd   :  { %v6350_v46 = vpop.eup %6349 }
 0x7be   :  { %v3692_v62 = vadd.f32 1.0, %v6350_v46 }
 0x7bf   :  { %v6352_v49 = vpop.eup %6351 }
 0x7c0   :  { %v6354_v28 = vpop.eup %6353  ;;  %v3694_v34 = vmul.f32 %v6352_v49, %v3690_v29  ;;  %6355 = vrcp.f32 %v3692_v62  ;;  %vm3699_vm10 = vweird.f32 %v6352_v49  ;;  %vm3728_vm3 = vweird.f32 %v3692_v62 }
 0x7c1   :  { %v3709_v61 = vmul.f32 %v6354_v28, %v3691_v38  ;;  %6357 = vtanh.f32 %v3680_v37  ;;  %vm3714_vm11 = vweird.f32 %v6354_v28  ;;  %vm3700_vm14 = vmor %vm3698_vm12, %vm3699_vm10 }
 0x7c2   :  { %v3695_v56 = vsub.f32 1.0, %v3694_v34  ;;  %vm3715_vm15 = vmor %vm3713_vm13, %vm3714_vm11 }
 0x7c3   :  { %v3710_v13 = vsub.f32 1.0, %v3709_v61 }
 0x7c4   :  { %v3696_v31 = vmul.f32 %v6352_v49, %v3695_v56 }
 0x7c5   :  { %v3711_v15 = vmul.f32 %v6354_v28, %v3710_v13  ;;  %v3734_v13 = vand.u32 2147483648, %v3692_v62 }
 0x7c6   :  { %v6356_v11 = vpop.eup %6355  ;;  %v3697_v23 = vadd.f32 %v6352_v49, %v3696_v31 }
 0x7c7   :  { %v3724_v24 = vmul.f32 %v6356_v11, %v3692_v62  ;;  %v3712_v21 = vadd.f32 %v6354_v28, %v3711_v15  ;;  %v6358_v33 = vpop.eup %6357  ;;  %vm3729_vm2 = vweird.f32 %v6356_v11  ;;  %v3735_v36 = vor.u32 1.1754944e-38, %v3734_v13 }
 0x7c8   :  { %v3701_v14 = vsel %vm3700_vm14, %v6352_v49, %v3697_v23  ;;  %v3732_v49 = vand.u32 2147483647, %v3692_v62  ;;  %vm3730_vm4 = vmor %vm3728_vm3, %vm3729_vm2 }
 0x7c9   :  { %v3725_v46 = vsub.f32 1.0, %v3724_v24  ;;  %v3706_v54 = vsel %vm3703_vm0, %v3705_v43, %v3701_v14  ;;  %v3716_v17 = vsel %vm3715_vm15, %v6354_v28, %v3712_v21 }
 0x7ca   :  { %v3721_v37 = vsel %vm3718_vm1, %v3720_v7, %v3716_v17  ;;  %v3740_v34 = vmul.f32 %v6358_v33, %v3706_v54  ;;  %vm3733_vm5 = vcmp.eq.f32.partialorder %v3732_v49, 8.507059e+37  ;;  %v9347_v33 = vld [vmem:[#allocation11_spill] sm:$0xff] }
 0x7cb   :  { %v3726_v61 = vmul.f32 %v6356_v11, %v3725_v46  ;;  %v3739_v56 = vmul.f32 %v3721_v37, %v9059_v3  ;;  %v9345_v3 = vld [vmem:[#allocation9_spill] sm:$0xff]  ;;  %v3108_v46 = vadd.f32 %v9347_v33, %v9009_v19 }
 0x7cc   :  { %v3050_v62 = vadd.f32 %v9345_v3, %v8999_v12 }
 0x7cd   :  { %v9103_v29 = vadd.f32 %v3740_v34, %v3739_v56  ;;  %v3727_v38 = vadd.f32 %v6356_v11, %v3726_v61 }
 0x7cf   :  { %6359 = vtanh.f32 %v9103_v29  ;;  %v3731_v52 = vsel %vm3730_vm4, %v6356_v11, %v3727_v38  ;;  %v3079_v11 = vadd.f32 %v9346_v18, %v9001_v9 }
 0x7d0   :  { %v3736_v31 = vsel %vm3733_vm5, %v3735_v36, %v3731_v52 }
 0x7d5   :  { %v6360_v28 = vpop.eup %6359 }
 0x7d6   :  { %v3743_v47 = vmul.f32 %v6360_v28, %v3736_v31 }
 0x7d8   :  { %v3748_v15 = vpack.c.bf16 %v3743_v47, %v3743_v47  ;;  %v9348_v47 = vld [vmem:[#allocation12_spill] sm:$0xff] }
 0x7da   :  { %3757 = vmatmul.bf16.vlgmr.msrb.gmra.mxu0 %v3748_v15  ;;  %3770 = vmatmul.bf16.vlgmr.msra.gmra.mxu1 %v3748_v15 }
 0x7db   :  { %3783 = vmatmul.bf16.vlgmr.msrb.gmra.mxu2 %v3748_v15  ;;  %3796 = vmatmul.bf16.vlgmr.msrb.gmra.mxu3 %v3748_v15  ;;  %v3137_v15 = vadd.f32 %v9348_v47, %v9339_v8 }
 0x7dc   :  { %3997 = vmatpush.bf16.msrb.mxu0 %v8525_v4  ;;  %4010 = vmatpush.bf16.msra.mxu1 %v8536_v59 }
 0x7dd   :  { %4023 = vmatpush.bf16.msrb.mxu2 %v8538_v57  ;;  %4036 = vmatpush.bf16.msrb.mxu3 %v8547_v39 }
 0x7e0   :  { %3998 = vmatpush.bf16.msrb.mxu0 %v8562_v26  ;;  %4011 = vmatpush.bf16.msra.mxu1 %v8573_v44 }
 0x7e1   :  { %4024 = vmatpush.bf16.msrb.mxu2 %v8592_v27  ;;  %4037 = vmatpush.bf16.msrb.mxu3 %v8600_v20 }
 0x7e4   :  { %3999 = vmatpush.bf16.msrb.mxu0 %v8612_v48  ;;  %4012 = vmatpush.bf16.msra.mxu1 %v8614_v32 }
 0x7e5   :  { %4025 = vmatpush.bf16.msrb.mxu2 %v8629_v0  ;;  %4038 = vmatpush.bf16.msrb.mxu3 %v8684_v50 }
 0x7e8   :  { %4000 = vmatpush.bf16.msrb.mxu0 %v8642_v10  ;;  %4013 = vmatpush.bf16.msra.mxu1 %v8644_v40 }
 0x7e9   :  { %4026 = vmatpush.bf16.msrb.mxu2 %v8682_v42  ;;  %4039 = vmatpush.bf16.msrb.mxu3 %v8724_v16 }
 0x7ec   :  { %4001 = vmatpush.bf16.msrb.mxu0 %v8707_v55  ;;  %4014 = vmatpush.bf16.msra.mxu1 %v8720_v22 }
 0x7ed   :  { %4027 = vmatpush.bf16.msrb.mxu2 %v8722_v6  ;;  %4040 = vmatpush.bf16.msrb.mxu3 %v8771_v25 }
 0x7f0   :  { %4002 = vmatpush.bf16.msrb.mxu0 %v8763_v35  ;;  %4015 = vmatpush.bf16.msra.mxu1 %v8769_v2 }
 0x7f1   :  { %4028 = vmatpush.bf16.msrb.mxu2 %v8788_v63  ;;  %4041 = vmatpush.bf16.msrb.mxu3 %v8816_v51 }
 0x7f4   :  { %4003 = vmatpush.bf16.msrb.mxu0 %v8810_v45  ;;  %4016 = vmatpush.bf16.msra.mxu1 %v8814_v41 }
 0x7f5   :  { %4029 = vmatpush.bf16.msrb.mxu2 %v8828_v60  ;;  %4042 = vmatpush.bf16.msrb.mxu3 %v8857_v5 }
 0x7f8   :  { %4004 = vmatpush.bf16.msrb.mxu0 %v8849_v58  ;;  %4017 = vmatpush.bf16.msra.mxu1 %v8855_v30 }
 0x7f9   :  { %4030 = vmatpush.bf16.msrb.mxu2 %v8860_v53  ;;  %4043 = vmatpush.bf16.msrb.mxu3 %v8872_v1 }
 0x857   :  { %v3758_v23 = vpop.f32.mrf.mxu0  ;;  %v3771_v24 = vpop.f32.mrf.mxu1 }
 0x858   :  { %v3801_v43 = vadd.f32 %v3758_v23, %v3050_v62  ;;  %v3802_v21 = vadd.f32 %v3771_v24, %v3079_v11 }
 0x85a   :  { %v5803_v7 = vmul.f32 -1.442695, %v3801_v43  ;;  %v5804_v14 = vmul.f32 -1.442695, %v3802_v21 }
 0x85c   :  { %6361 = vpow2.f32 %v5803_v7 }
 0x85d   :  { %6363 = vpow2.f32 %v5804_v14 }
 0x85e   :  { %v3784_v54 = vpop.f32.mrf.mxu2  ;;  %v3797_v17 = vpop.f32.mrf.mxu3 }
 0x85f   :  { %v3803_v37 = vadd.f32 %v3784_v54, %v3108_v46  ;;  %v3760_v34 = vpop.f32.mrf.mxu0  ;;  %v3773_v61 = vpop.f32.mrf.mxu1  ;;  %v3804_v18 = vadd.f32 %v3797_v17, %v3137_v15 }
 0x861   :  { %v5805_v56 = vmul.f32 -1.442695, %v3803_v37 }
 0x862   :  { %v6362_v38 = vpop.eup %6361 }
 0x863   :  { %v6364_v13 = vpop.eup %6363  ;;  %v3814_v49 = vadd.f32 1.0, %v6362_v38  ;;  %6365 = vpow2.f32 %v5805_v56 }
 0x864   :  { %v3815_v52 = vadd.f32 1.0, %v6364_v13 }
 0x865   :  { %6367 = vrcp.f32 %v3814_v49  ;;  %v3828_v7 = vand.u32 2147483648, %v3814_v49  ;;  %v3826_v46 = vand.u32 2147483647, %v3814_v49  ;;  %vm3822_vm8 = vweird.f32 %v3814_v49 }
 0x866   :  { %6369 = vrcp.f32 %v3815_v52  ;;  %v3786_v36 = vpop.f32.mrf.mxu2  ;;  %v3799_v28 = vpop.f32.mrf.mxu3  ;;  %v3843_v14 = vand.u32 2147483648, %v3815_v52  ;;  %v3841_v37 = vand.u32 2147483647, %v3815_v52  ;;  %vm3837_vm9 = vweird.f32 %v3815_v52 }
 0x867   :  { %v3829_v56 = vor.u32 1.1754944e-38, %v3828_v7  ;;  %vm3827_vm12 = vcmp.eq.f32.partialorder %v3826_v46, 8.507059e+37 }
 0x868   :  { %v3844_v13 = vor.u32 1.1754944e-38, %v3843_v14  ;;  %vm3842_vm13 = vcmp.eq.f32.partialorder %v3841_v37, 8.507059e+37  ;;  %v9350_v37 = vld [vmem:[#allocation14_spill] sm:$0xff] }
 0x869   :  { %v6366_v31 = vpop.eup %6365 }
 0x86a   :  { %v3816_v3 = vadd.f32 1.0, %v6366_v31 }
 0x86b   :  { %v6368_v62 = vpop.eup %6367 }
 0x86c   :  { %v6370_v11 = vpop.eup %6369  ;;  %v3818_v23 = vmul.f32 %v6368_v62, %v3814_v49  ;;  %6371 = vrcp.f32 %v3816_v3  ;;  %vm3823_vm6 = vweird.f32 %v6368_v62  ;;  %vm3852_vm15 = vweird.f32 %v3816_v3 }
 0x86d   :  { %v3833_v24 = vmul.f32 %v6370_v11, %v3815_v52  ;;  %6373 = vtanh.f32 %v3804_v18  ;;  %vm3838_vm7 = vweird.f32 %v6370_v11  ;;  %vm3824_vm10 = vmor %vm3822_vm8, %vm3823_vm6 }
 0x86e   :  { %v3819_v43 = vsub.f32 1.0, %v3818_v23  ;;  %vm3839_vm11 = vmor %vm3837_vm9, %vm3838_vm7 }
 0x86f   :  { %v3834_v21 = vsub.f32 1.0, %v3833_v24 }
 0x870   :  { %v3820_v33 = vmul.f32 %v6368_v62, %v3819_v43 }
 0x871   :  { %v3835_v54 = vmul.f32 %v6370_v11, %v3834_v21  ;;  %v3858_v21 = vand.u32 2147483648, %v3816_v3 }
 0x872   :  { %v6372_v34 = vpop.eup %6371  ;;  %v3821_v61 = vadd.f32 %v6368_v62, %v3820_v33 }
 0x873   :  { %v3848_v17 = vmul.f32 %v6372_v34, %v3816_v3  ;;  %v3836_v38 = vadd.f32 %v6370_v11, %v3835_v54  ;;  %v6374_v28 = vpop.eup %6373  ;;  %vm3853_vm14 = vweird.f32 %v6372_v34  ;;  %v3859_v14 = vor.u32 1.1754944e-38, %v3858_v21 }
 0x874   :  { %v3825_v36 = vsel %vm3824_vm10, %v6368_v62, %v3821_v61  ;;  %v3856_v62 = vand.u32 2147483647, %v3816_v3  ;;  %vm3854_vm0 = vmor %vm3852_vm15, %vm3853_vm14 }
 0x875   :  { %v3849_v31 = vsub.f32 1.0, %v3848_v17  ;;  %v3830_v47 = vsel %vm3827_vm12, %v3829_v56, %v3825_v36  ;;  %v3840_v15 = vsel %vm3839_vm11, %v6370_v11, %v3836_v38 }
 0x876   :  { %v3845_v18 = vsel %vm3842_vm13, %v3844_v13, %v3840_v15  ;;  %v3864_v23 = vmul.f32 %v6374_v28, %v3830_v47  ;;  %vm3857_vm1 = vcmp.eq.f32.partialorder %v3856_v62, 8.507059e+37  ;;  %v9351_v28 = vld [vmem:[#allocation15_spill] sm:$0xff] }
 0x877   :  { %v3850_v24 = vmul.f32 %v6372_v34, %v3849_v31  ;;  %v3863_v43 = vmul.f32 %v3845_v18, %v9103_v29  ;;  %v9349_v29 = vld [vmem:[#allocation13_spill] sm:$0xff]  ;;  %v3111_v31 = vadd.f32 %v9351_v28, %v9009_v19 }
 0x878   :  { %v3053_v3 = vadd.f32 %v9349_v29, %v8999_v12 }
 0x879   :  { %v9147_v49 = vadd.f32 %v3864_v23, %v3863_v43  ;;  %v3851_v52 = vadd.f32 %v6372_v34, %v3850_v24 }
 0x87b   :  { %6375 = vtanh.f32 %v9147_v49  ;;  %v3855_v7 = vsel %vm3854_vm0, %v6372_v34, %v3851_v52  ;;  %v3082_v34 = vadd.f32 %v9350_v37, %v9001_v9 }
 0x87c   :  { %v3860_v33 = vsel %vm3857_vm1, %v3859_v14, %v3855_v7 }
 0x881   :  { %v6376_v11 = vpop.eup %6375 }
 0x882   :  { %v3867_v46 = vmul.f32 %v6376_v11, %v3860_v33 }
 0x884   :  { %v3872_v54 = vpack.c.bf16 %v3867_v46, %v3867_v46  ;;  %v9352_v46 = vld [vmem:[#allocation16_spill] sm:$0xff] }
 0x886   :  { %3881 = vmatmul.bf16.vlgmr.msra.gmra.mxu0 %v3872_v54  ;;  %3894 = vmatmul.bf16.vlgmr.msrb.gmra.mxu1 %v3872_v54 }
 0x887   :  { %3907 = vmatmul.bf16.vlgmr.msra.gmra.mxu2 %v3872_v54  ;;  %3920 = vmatmul.bf16.vlgmr.msra.gmra.mxu3 %v3872_v54  ;;  %v3140_v54 = vadd.f32 %v9352_v46, %v9339_v8 }
 0x888   :  { %4121 = vmatpush.bf16.msra.mxu0 %v8525_v4  ;;  %4134 = vmatpush.bf16.msrb.mxu1 %v8536_v59 }
 0x889   :  { %4147 = vmatpush.bf16.msra.mxu2 %v8538_v57  ;;  %4160 = vmatpush.bf16.msra.mxu3 %v8547_v39 }
 0x88c   :  { %4122 = vmatpush.bf16.msra.mxu0 %v8562_v26  ;;  %4135 = vmatpush.bf16.msrb.mxu1 %v8573_v44 }
 0x88d   :  { %4148 = vmatpush.bf16.msra.mxu2 %v8592_v27  ;;  %4161 = vmatpush.bf16.msra.mxu3 %v8600_v20 }
 0x890   :  { %4123 = vmatpush.bf16.msra.mxu0 %v8612_v48  ;;  %4136 = vmatpush.bf16.msrb.mxu1 %v8614_v32 }
 0x891   :  { %4149 = vmatpush.bf16.msra.mxu2 %v8629_v0  ;;  %4162 = vmatpush.bf16.msra.mxu3 %v8684_v50 }
 0x894   :  { %4124 = vmatpush.bf16.msra.mxu0 %v8642_v10  ;;  %4137 = vmatpush.bf16.msrb.mxu1 %v8644_v40 }
 0x895   :  { %4150 = vmatpush.bf16.msra.mxu2 %v8682_v42  ;;  %4163 = vmatpush.bf16.msra.mxu3 %v8724_v16 }
 0x898   :  { %4125 = vmatpush.bf16.msra.mxu0 %v8707_v55  ;;  %4138 = vmatpush.bf16.msrb.mxu1 %v8720_v22 }
 0x899   :  { %4151 = vmatpush.bf16.msra.mxu2 %v8722_v6  ;;  %4164 = vmatpush.bf16.msra.mxu3 %v8771_v25 }
 0x89c   :  { %4126 = vmatpush.bf16.msra.mxu0 %v8763_v35  ;;  %4139 = vmatpush.bf16.msrb.mxu1 %v8769_v2 }
 0x89d   :  { %4152 = vmatpush.bf16.msra.mxu2 %v8788_v63  ;;  %4165 = vmatpush.bf16.msra.mxu3 %v8816_v51 }
 0x8a0   :  { %4127 = vmatpush.bf16.msra.mxu0 %v8810_v45  ;;  %4140 = vmatpush.bf16.msrb.mxu1 %v8814_v41 }
 0x8a1   :  { %4153 = vmatpush.bf16.msra.mxu2 %v8828_v60  ;;  %4166 = vmatpush.bf16.msra.mxu3 %v8857_v5 }
 0x8a4   :  { %4128 = vmatpush.bf16.msra.mxu0 %v8849_v58  ;;  %4141 = vmatpush.bf16.msrb.mxu1 %v8855_v30 }
 0x8a5   :  { %4154 = vmatpush.bf16.msra.mxu2 %v8860_v53  ;;  %4167 = vmatpush.bf16.msra.mxu3 %v8872_v1 }
 0x903   :  { %v3882_v61 = vpop.f32.mrf.mxu0  ;;  %v3895_v17 = vpop.f32.mrf.mxu1 }
 0x904   :  { %v3925_v56 = vadd.f32 %v3882_v61, %v3053_v3  ;;  %v3926_v38 = vadd.f32 %v3895_v17, %v3082_v34 }
 0x906   :  { %v5806_v13 = vmul.f32 -1.442695, %v3925_v56  ;;  %v5807_v36 = vmul.f32 -1.442695, %v3926_v38 }
 0x908   :  { %6377 = vpow2.f32 %v5806_v13 }
 0x909   :  { %6379 = vpow2.f32 %v5807_v36 }
 0x90a   :  { %v3908_v47 = vpop.f32.mrf.mxu2  ;;  %v3921_v15 = vpop.f32.mrf.mxu3 }
 0x90b   :  { %v3927_v18 = vadd.f32 %v3908_v47, %v3111_v31  ;;  %v3884_v23 = vpop.f32.mrf.mxu0  ;;  %v3897_v24 = vpop.f32.mrf.mxu1  ;;  %v3928_v37 = vadd.f32 %v3921_v15, %v3140_v54 }
 0x90d   :  { %v5808_v43 = vmul.f32 -1.442695, %v3927_v18 }
 0x90e   :  { %v6378_v52 = vpop.eup %6377 }
 0x90f   :  { %v6380_v21 = vpop.eup %6379  ;;  %v3938_v62 = vadd.f32 1.0, %v6378_v52  ;;  %6381 = vpow2.f32 %v5808_v43 }
 0x910   :  { %v3939_v7 = vadd.f32 1.0, %v6380_v21 }
 0x911   :  { %6383 = vrcp.f32 %v3938_v62  ;;  %v3952_v13 = vand.u32 2147483648, %v3938_v62  ;;  %v3950_v31 = vand.u32 2147483647, %v3938_v62  ;;  %vm3946_vm4 = vweird.f32 %v3938_v62 }
 0x912   :  { %6385 = vrcp.f32 %v3939_v7  ;;  %v3910_v14 = vpop.f32.mrf.mxu2  ;;  %v3923_v11 = vpop.f32.mrf.mxu3  ;;  %v3967_v36 = vand.u32 2147483648, %v3939_v7  ;;  %v3965_v18 = vand.u32 2147483647, %v3939_v7  ;;  %vm3961_vm5 = vweird.f32 %v3939_v7 }
 0x913   :  { %v3953_v43 = vor.u32 1.1754944e-38, %v3952_v13  ;;  %vm3951_vm8 = vcmp.eq.f32.partialorder %v3950_v31, 8.507059e+37 }
 0x914   :  { %v3968_v21 = vor.u32 1.1754944e-38, %v3967_v36  ;;  %vm3966_vm9 = vcmp.eq.f32.partialorder %v3965_v18, 8.507059e+37 }
 0x915   :  { %v6382_v33 = vpop.eup %6381 }
 0x916   :  { %v3940_v29 = vadd.f32 1.0, %v6382_v33 }
 0x917   :  { %v6384_v3 = vpop.eup %6383 }
 0x918   :  { %v6386_v34 = vpop.eup %6385  ;;  %v3942_v61 = vmul.f32 %v6384_v3, %v3938_v62  ;;  %6387 = vrcp.f32 %v3940_v29  ;;  %vm3947_vm2 = vweird.f32 %v6384_v3  ;;  %vm3976_vm11 = vweird.f32 %v3940_v29 }
 0x919   :  { %v3957_v17 = vmul.f32 %v6386_v34, %v3939_v7  ;;  %6389 = vtanh.f32 %v3928_v37  ;;  %vm3962_vm3 = vweird.f32 %v6386_v34  ;;  %vm3948_vm6 = vmor %vm3946_vm4, %vm3947_vm2 }
 0x91a   :  { %v3943_v56 = vsub.f32 1.0, %v3942_v61  ;;  %vm3963_vm7 = vmor %vm3961_vm5, %vm3962_vm3 }
 0x91b   :  { %v3958_v38 = vsub.f32 1.0, %v3957_v17 }
 0x91c   :  { %v3944_v28 = vmul.f32 %v6384_v3, %v3943_v56 }
 0x91d   :  { %v3959_v47 = vmul.f32 %v6386_v34, %v3958_v38  ;;  %v3982_v38 = vand.u32 2147483648, %v3940_v29 }
 0x91e   :  { %v6388_v23 = vpop.eup %6387  ;;  %v3945_v24 = vadd.f32 %v6384_v3, %v3944_v28 }
 0x91f   :  { %v3972_v15 = vmul.f32 %v6388_v23, %v3940_v29  ;;  %v3960_v52 = vadd.f32 %v6386_v34, %v3959_v47  ;;  %v6390_v11 = vpop.eup %6389  ;;  %vm3977_vm10 = vweird.f32 %v6388_v23  ;;  %v3983_v36 = vor.u32 1.1754944e-38, %v3982_v38 }
 0x920   :  { %v3949_v14 = vsel %vm3948_vm6, %v6384_v3, %v3945_v24  ;;  %v3980_v3 = vand.u32 2147483647, %v3940_v29  ;;  %vm3978_vm12 = vmor %vm3976_vm11, %vm3977_vm10 }
 0x921   :  { %v3973_v33 = vsub.f32 1.0, %v3972_v15  ;;  %v3954_v46 = vsel %vm3951_vm8, %v3953_v43, %v3949_v14  ;;  %v3964_v54 = vsel %vm3963_vm7, %v6386_v34, %v3960_v52 }
 0x922   :  { %v3969_v37 = vsel %vm3966_vm9, %v3968_v21, %v3964_v54  ;;  %v3988_v61 = vmul.f32 %v6390_v11, %v3954_v46  ;;  %vm3981_vm13 = vcmp.eq.f32.partialorder %v3980_v3, 8.507059e+37 }
 0x923   :  { %v3974_v17 = vmul.f32 %v6388_v23, %v3973_v33  ;;  %v3987_v56 = vmul.f32 %v3969_v37, %v9147_v49 }
 0x925   :  { %v9191_v62 = vadd.f32 %v3988_v61, %v3987_v56  ;;  %v3975_v7 = vadd.f32 %v6388_v23, %v3974_v17 }
 0x927   :  { %6391 = vtanh.f32 %v9191_v62  ;;  %v3979_v13 = vsel %vm3978_vm12, %v6388_v23, %v3975_v7 }
 0x928   :  { %v3984_v28 = vsel %vm3981_vm13, %v3983_v36, %v3979_v13 }
 0x92d   :  { %v6392_v34 = vpop.eup %6391 }
 0x92e   :  { %v3991_v31 = vmul.f32 %v6392_v34, %v3984_v28 }
 0x930   :  { %v3996_v47 = vpack.c.bf16 %v3991_v31, %v3991_v31 }
 0x932   :  { %4005 = vmatmul.bf16.vlgmr.msrb.gmra.mxu0 %v3996_v47  ;;  %4018 = vmatmul.bf16.vlgmr.msra.gmra.mxu1 %v3996_v47 }
 0x933   :  { %4031 = vmatmul.bf16.vlgmr.msrb.gmra.mxu2 %v3996_v47  ;;  %4044 = vmatmul.bf16.vlgmr.msrb.gmra.mxu3 %v3996_v47 }
 0x934   :  { %4245 = vmatpush.bf16.msrb.mxu0 %v8525_v4  ;;  %4258 = vmatpush.bf16.msra.mxu1 %v8536_v59  ;;  %v9353_v4 = vld [vmem:[#allocation17_spill] sm:$0xff] }
 0x935   :  { %4271 = vmatpush.bf16.msrb.mxu2 %v8538_v57  ;;  %4284 = vmatpush.bf16.msrb.mxu3 %v8547_v39  ;;  %v3055_v59 = vadd.f32 %v9353_v4, %v8999_v12  ;;  %v9354_v57 = vld [vmem:[#allocation18_spill] sm:$0xff] }
 0x936   :  { %v3084_v39 = vadd.f32 %v9354_v57, %v9001_v9 }
 0x938   :  { %4246 = vmatpush.bf16.msrb.mxu0 %v8562_v26  ;;  %4259 = vmatpush.bf16.msra.mxu1 %v8573_v44 }
 0x939   :  { %4272 = vmatpush.bf16.msrb.mxu2 %v8592_v27  ;;  %4285 = vmatpush.bf16.msrb.mxu3 %v8600_v20 }
 0x93c   :  { %4247 = vmatpush.bf16.msrb.mxu0 %v8612_v48  ;;  %4260 = vmatpush.bf16.msra.mxu1 %v8614_v32 }
 0x93d   :  { %4273 = vmatpush.bf16.msrb.mxu2 %v8629_v0  ;;  %4286 = vmatpush.bf16.msrb.mxu3 %v8684_v50  ;;  %v9355_v0 = vld [vmem:[#allocation19_spill] sm:$0xff] }
 0x940   :  { %4248 = vmatpush.bf16.msrb.mxu0 %v8642_v10  ;;  %4261 = vmatpush.bf16.msra.mxu1 %v8644_v40  ;;  %v3113_v10 = vadd.f32 %v9355_v0, %v9009_v19 }
 0x941   :  { %4274 = vmatpush.bf16.msrb.mxu2 %v8682_v42  ;;  %4287 = vmatpush.bf16.msrb.mxu3 %v8724_v16 }
 0x944   :  { %4249 = vmatpush.bf16.msrb.mxu0 %v8707_v55  ;;  %4262 = vmatpush.bf16.msra.mxu1 %v8720_v22 }
 0x945   :  { %4275 = vmatpush.bf16.msrb.mxu2 %v8722_v6  ;;  %4288 = vmatpush.bf16.msrb.mxu3 %v8771_v25 }
 0x948   :  { %4250 = vmatpush.bf16.msrb.mxu0 %v8763_v35  ;;  %4263 = vmatpush.bf16.msra.mxu1 %v8769_v2 }
 0x949   :  { %4276 = vmatpush.bf16.msrb.mxu2 %v8788_v63  ;;  %4289 = vmatpush.bf16.msrb.mxu3 %v8816_v51  ;;  %v9356_v51 = vld [vmem:[#allocation20_spill] sm:$0xff] }
 0x94c   :  { %4251 = vmatpush.bf16.msrb.mxu0 %v8810_v45  ;;  %4264 = vmatpush.bf16.msra.mxu1 %v8814_v41 }
 0x94d   :  { %4277 = vmatpush.bf16.msrb.mxu2 %v8828_v60  ;;  %4290 = vmatpush.bf16.msrb.mxu3 %v8857_v5  ;;  %v3142_v60 = vadd.f32 %v9356_v51, %v9339_v8 }
 0x950   :  { %4252 = vmatpush.bf16.msrb.mxu0 %v8849_v58  ;;  %4265 = vmatpush.bf16.msra.mxu1 %v8855_v30 }
 0x951   :  { %4278 = vmatpush.bf16.msrb.mxu2 %v8860_v53  ;;  %4291 = vmatpush.bf16.msrb.mxu3 %v8872_v1 }
 0x9af   :  { %v4006_v26 = vpop.f32.mrf.mxu0  ;;  %v4019_v44 = vpop.f32.mrf.mxu1 }
 0x9b0   :  { %v4049_v27 = vadd.f32 %v4006_v26, %v3055_v59  ;;  %v4050_v20 = vadd.f32 %v4019_v44, %v3084_v39 }
 0x9b2   :  { %v5809_v48 = vmul.f32 -1.442695, %v4049_v27  ;;  %v5810_v32 = vmul.f32 -1.442695, %v4050_v20 }
 0x9b4   :  { %6393 = vpow2.f32 %v5809_v48  ;;  %v9358_v48 = vld [vmem:[#allocation22_spill] sm:$0xff] }
 0x9b5   :  { %6395 = vpow2.f32 %v5810_v32  ;;  %v3087_v32 = vadd.f32 %v9358_v48, %v9001_v9 }
 0x9b6   :  { %v4032_v40 = vpop.f32.mrf.mxu2  ;;  %v4045_v42 = vpop.f32.mrf.mxu3 }
 0x9b7   :  { %v4051_v50 = vadd.f32 %v4032_v40, %v3113_v10  ;;  %v4008_v55 = vpop.f32.mrf.mxu0  ;;  %v4021_v22 = vpop.f32.mrf.mxu1  ;;  %v4052_v5 = vadd.f32 %v4045_v42, %v3142_v60 }
 0x9b8   :  { %v9359_v22 = vld [vmem:[#allocation23_spill] sm:$0xff] }
 0x9b9   :  { %v5811_v6 = vmul.f32 -1.442695, %v4051_v50 }
 0x9ba   :  { %v6394_v16 = vpop.eup %6393 }
 0x9bb   :  { %v6396_v35 = vpop.eup %6395  ;;  %v4062_v2 = vadd.f32 1.0, %v6394_v16  ;;  %6397 = vpow2.f32 %v5811_v6  ;;  %v3116_v6 = vadd.f32 %v9359_v22, %v9009_v19  ;;  %v9361_v22 = vld [vmem:[#allocation25_spill] sm:$0xff] }
 0x9bc   :  { %v4063_v25 = vadd.f32 1.0, %v6396_v35 }
 0x9bd   :  { %6399 = vrcp.f32 %v4062_v2  ;;  %v4076_v23 = vand.u32 2147483648, %v4062_v2  ;;  %v4074_v43 = vand.u32 2147483647, %v4062_v2  ;;  %vm4070_vm0 = vweird.f32 %v4062_v2 }
 0x9be   :  { %6401 = vrcp.f32 %v4063_v25  ;;  %v4034_v63 = vpop.f32.mrf.mxu2  ;;  %v4047_v45 = vpop.f32.mrf.mxu3  ;;  %v4091_v24 = vand.u32 2147483648, %v4063_v25  ;;  %v4089_v21 = vand.u32 2147483647, %v4063_v25  ;;  %vm4085_vm1 = vweird.f32 %v4063_v25 }
 0x9bf   :  { %v4077_v46 = vor.u32 1.1754944e-38, %v4076_v23  ;;  %vm4075_vm4 = vcmp.eq.f32.partialorder %v4074_v43, 8.507059e+37 }
 0x9c0   :  { %v4092_v37 = vor.u32 1.1754944e-38, %v4091_v24  ;;  %vm4090_vm5 = vcmp.eq.f32.partialorder %v4089_v21, 8.507059e+37 }
 0x9c1   :  { %v6398_v41 = vpop.eup %6397 }
 0x9c2   :  { %v4064_v58 = vadd.f32 1.0, %v6398_v41 }
 0x9c3   :  { %v6400_v30 = vpop.eup %6399 }
 0x9c4   :  { %v6402_v53 = vpop.eup %6401  ;;  %v4066_v1 = vmul.f32 %v6400_v30, %v4062_v2  ;;  %6403 = vrcp.f32 %v4064_v58  ;;  %vm4071_vm14 = vweird.f32 %v6400_v30  ;;  %v4106_v47 = vand.u32 2147483648, %v4064_v58 }
 0x9c5   :  { %v4081_v49 = vmul.f32 %v6402_v53, %v4063_v25  ;;  %6405 = vtanh.f32 %v4052_v5  ;;  %vm4086_vm15 = vweird.f32 %v6402_v53  ;;  %vm4072_vm2 = vmor %vm4070_vm0, %vm4071_vm14  ;;  %vm4100_vm7 = vweird.f32 %v4064_v58 }
 0x9c6   :  { %v4067_v29 = vsub.f32 1.0, %v4066_v1  ;;  %vm4087_vm3 = vmor %vm4085_vm1, %vm4086_vm15  ;;  %v4104_v4 = vand.u32 2147483647, %v4064_v58  ;;  %v4107_v57 = vor.u32 1.1754944e-38, %v4106_v47  ;;  %v9360_v1 = vld [vmem:[#allocation24_spill] sm:$0xff] }
 0x9c7   :  { %v4082_v18 = vsub.f32 1.0, %v4081_v49  ;;  %v3145_v49 = vadd.f32 %v9360_v1, %v9339_v8 }
 0x9c8   :  { %v4068_v15 = vmul.f32 %v6400_v30, %v4067_v29  ;;  %vm4105_vm9 = vcmp.eq.f32.partialorder %v4104_v4, 8.507059e+37 }
 0x9c9   :  { %v4083_v52 = vmul.f32 %v6402_v53, %v4082_v18 }
 0x9ca   :  { %v6404_v14 = vpop.eup %6403  ;;  %v4069_v11 = vadd.f32 %v6400_v30, %v4068_v15 }
 0x9cb   :  { %v4096_v33 = vmul.f32 %v6404_v14, %v4064_v58  ;;  %v4084_v54 = vadd.f32 %v6402_v53, %v4083_v52  ;;  %v6406_v17 = vpop.eup %6405  ;;  %vm4101_vm6 = vweird.f32 %v6404_v14 }
 0x9cc   :  { %v4073_v61 = vsel %vm4072_vm2, %v6400_v30, %v4069_v11  ;;  %vm4102_vm8 = vmor %vm4100_vm7, %vm4101_vm6 }
 0x9cd   :  { %v4097_v56 = vsub.f32 1.0, %v4096_v33  ;;  %v4078_v7 = vsel %vm4075_vm4, %v4077_v46, %v4073_v61  ;;  %v4088_v38 = vsel %vm4087_vm3, %v6402_v53, %v4084_v54 }
 0x9ce   :  { %v4093_v3 = vsel %vm4090_vm5, %v4092_v37, %v4088_v38  ;;  %v4112_v13 = vmul.f32 %v6406_v17, %v4078_v7 }
 0x9cf   :  { %v4098_v36 = vmul.f32 %v6404_v14, %v4097_v56  ;;  %v4111_v34 = vmul.f32 %v4093_v3, %v9191_v62  ;;  %v9357_v62 = vld [vmem:[#allocation21_spill] sm:$0xff] }
 0x9d0   :  { %v3058_v20 = vadd.f32 %v9357_v62, %v8999_v12 }
 0x9d1   :  { %v9235_v28 = vadd.f32 %v4112_v13, %v4111_v34  ;;  %v4099_v31 = vadd.f32 %v6404_v14, %v4098_v36 }
 0x9d3   :  { %6407 = vtanh.f32 %v9235_v28  ;;  %v4103_v59 = vsel %vm4102_vm8, %v6404_v14, %v4099_v31 }
 0x9d4   :  { %v4108_v26 = vsel %vm4105_vm9, %v4107_v57, %v4103_v59 }
 0x9d9   :  { %v6408_v39 = vpop.eup %6407 }
 0x9da   :  { %v4115_v44 = vmul.f32 %v6408_v39, %v4108_v26 }
 0x9dc   :  { %v4120_v27 = vpack.c.bf16 %v4115_v44, %v4115_v44 }
 0x9de   :  { %4129 = vmatmul.bf16.vlgmr.msra.gmra.mxu0 %v4120_v27  ;;  %4142 = vmatmul.bf16.vlgmr.msrb.gmra.mxu1 %v4120_v27 }
 0x9df   :  { %4155 = vmatmul.bf16.vlgmr.msra.gmra.mxu2 %v4120_v27  ;;  %4168 = vmatmul.bf16.vlgmr.msra.gmra.mxu3 %v4120_v27 }
 0xa5b   :  { %v4130_v0 = vpop.f32.mrf.mxu0  ;;  %v4143_v10 = vpop.f32.mrf.mxu1 }
 0xa5c   :  { %v4173_v40 = vadd.f32 %v4130_v0, %v3058_v20  ;;  %v4174_v42 = vadd.f32 %v4143_v10, %v3087_v32 }
 0xa5e   :  { %v5812_v50 = vmul.f32 -1.442695, %v4173_v40  ;;  %v5813_v55 = vmul.f32 -1.442695, %v4174_v42  ;;  %v6180_v42 = vld [vmem:[%s9297_s7 + $0x30] sm:$0xff] }
 0xa60   :  { %6409 = vpow2.f32 %v5812_v50  ;;  %v6179_v50 = vld [vmem:[%s9297_s7 + $0x28] sm:$0xff] }
 0xa61   :  { %6411 = vpow2.f32 %v5813_v55  ;;  %v6178_v55 = vld [vmem:[%s9297_s7 + $0x20] sm:$0xff] }
 0xa62   :  { %v4156_v16 = vpop.f32.mrf.mxu2  ;;  %v4169_v35 = vpop.f32.mrf.mxu3 }
 0xa63   :  { %v4175_v2 = vadd.f32 %v4156_v16, %v3116_v6  ;;  %v4132_v25 = vpop.f32.mrf.mxu0  ;;  %v4145_v63 = vpop.f32.mrf.mxu1  ;;  %v4176_v23 = vadd.f32 %v4169_v35, %v3145_v49  ;;  %v3060_v6 = vadd.f32 %v9361_v22, %v8999_v12  ;;  %v9362_v16 = vld [vmem:[#allocation26_spill] sm:$0xff]  ;;  %v9363_v12 = vld [vmem:[#allocation27_spill] sm:$0xff] }
 0xa64   :  { %v3089_v35 = vadd.f32 %v9362_v16, %v9001_v9  ;;  %v6175_v9 = vld [vmem:[%s9297_s7 + $0x8] sm:$0xff] }
 0xa65   :  { %v5814_v45 = vmul.f32 -1.442695, %v4175_v2  ;;  %v6177_v2 = vld [vmem:[%s9297_s7 + $0x18] sm:$0xff] }
 0xa66   :  { %v6410_v41 = vpop.eup %6409 }
 0xa67   :  { %v6412_v51 = vpop.eup %6411  ;;  %v4186_v60 = vadd.f32 1.0, %v6410_v41  ;;  %6413 = vpow2.f32 %v5814_v45 }
 0xa68   :  { %v4187_v58 = vadd.f32 1.0, %v6412_v51 }
 0xa69   :  { %6415 = vrcp.f32 %v4186_v60  ;;  %v4200_v14 = vand.u32 2147483648, %v4186_v60  ;;  %v4198_v46 = vand.u32 2147483647, %v4186_v60  ;;  %vm4194_vm12 = vweird.f32 %v4186_v60 }
 0xa6a   :  { %6417 = vrcp.f32 %v4187_v58  ;;  %v4158_v30 = vpop.f32.mrf.mxu2  ;;  %v4171_v5 = vpop.f32.mrf.mxu3  ;;  %v4215_v11 = vand.u32 2147483648, %v4187_v58  ;;  %v4213_v37 = vand.u32 2147483647, %v4187_v58  ;;  %vm4209_vm13 = vweird.f32 %v4187_v58 }
 0xa6b   :  { %v4201_v7 = vor.u32 1.1754944e-38, %v4200_v14  ;;  %vm4199_vm0 = vcmp.eq.f32.partialorder %v4198_v46, 8.507059e+37  ;;  %v3118_v30 = vadd.f32 %v9363_v12, %v9009_v19 }
 0xa6c   :  { %v4216_v3 = vor.u32 1.1754944e-38, %v4215_v11  ;;  %vm4214_vm1 = vcmp.eq.f32.partialorder %v4213_v37, 8.507059e+37  ;;  %v9364_v11 = vld [vmem:[#allocation28_spill] sm:$0xff] }
 0xa6d   :  { %v6414_v53 = vpop.eup %6413 }
 0xa6e   :  { %v4188_v29 = vadd.f32 1.0, %v6414_v53 }
 0xa6f   :  { %v6416_v18 = vpop.eup %6415 }
 0xa70   :  { %v6418_v24 = vpop.eup %6417  ;;  %v4190_v15 = vmul.f32 %v6416_v18, %v4186_v60  ;;  %6419 = vrcp.f32 %v4188_v29  ;;  %vm4195_vm10 = vweird.f32 %v6416_v18  ;;  %v4230_v27 = vand.u32 2147483648, %v4188_v29 }
 0xa71   :  { %v4205_v43 = vmul.f32 %v6418_v24, %v4187_v58  ;;  %6421 = vtanh.f32 %v4176_v23  ;;  %vm4210_vm11 = vweird.f32 %v6418_v24  ;;  %vm4196_vm14 = vmor %vm4194_vm12, %vm4195_vm10  ;;  %vm4224_vm3 = vweird.f32 %v4188_v29  ;;  %v6176_v58 = vld [vmem:[%s9297_s7 + $0x10] sm:$0xff] }
 0xa72   :  { %v4191_v52 = vsub.f32 1.0, %v4190_v15  ;;  %vm4211_vm15 = vmor %vm4209_vm13, %vm4210_vm11  ;;  %v4228_v62 = vand.u32 2147483647, %v4188_v29  ;;  %v4231_v48 = vor.u32 1.1754944e-38, %v4230_v27 }
 0xa73   :  { %v4206_v21 = vsub.f32 1.0, %v4205_v43 }
 0xa74   :  { %v4192_v33 = vmul.f32 %v6416_v18, %v4191_v52  ;;  %vm4229_vm5 = vcmp.eq.f32.partialorder %v4228_v62, 8.507059e+37 }
 0xa75   :  { %v4207_v54 = vmul.f32 %v6418_v24, %v4206_v21 }
 0xa76   :  { %v6420_v61 = vpop.eup %6419  ;;  %v4193_v17 = vadd.f32 %v6416_v18, %v4192_v33  ;;  %v3147_v33 = vadd.f32 %v9364_v11, %v9339_v8 }
 0xa77   :  { %v4220_v56 = vmul.f32 %v6420_v61, %v4188_v29  ;;  %v4208_v38 = vadd.f32 %v6418_v24, %v4207_v54  ;;  %v6422_v36 = vpop.eup %6421  ;;  %vm4225_vm2 = vweird.f32 %v6420_v61 }
 0xa78   :  { %v4197_v13 = vsel %vm4196_vm14, %v6416_v18, %v4193_v17  ;;  %vm4226_vm4 = vmor %vm4224_vm3, %vm4225_vm2  ;;  %v6174_v18 = vld [vmem:[%s9297_s7] sm:$0xff] }
 0xa79   :  { %v4221_v34 = vsub.f32 1.0, %v4220_v56  ;;  %v4202_v31 = vsel %vm4199_vm0, %v4201_v7, %v4197_v13  ;;  %v4212_v47 = vsel %vm4211_vm15, %v6418_v24, %v4208_v38 }
 0xa7a   :  { %v4217_v4 = vsel %vm4214_vm1, %v4216_v3, %v4212_v47  ;;  %v4236_v59 = vmul.f32 %v6422_v36, %v4202_v31 }
 0xa7b   :  { %v4222_v57 = vmul.f32 %v6420_v61, %v4221_v34  ;;  %v4235_v39 = vmul.f32 %v4217_v4, %v9235_v28  ;;  %v6181_v28 = vld [vmem:[%s9297_s7 + $0x38] sm:$0xff] }
 0xa7c   :  { %4433 = vmatpush.bf16.msra.mxu0 %v6181_v28 }
 0xa7d   :  { %v9247_v26 = vadd.f32 %v4236_v59, %v4235_v39  ;;  %v4223_v44 = vadd.f32 %v6420_v61, %v4222_v57 }
 0xa7f   :  { %6423 = vtanh.f32 %v9247_v26  ;;  %v4227_v20 = vsel %vm4226_vm4, %v6420_v61, %v4223_v44 }
 0xa80   :  { %v4232_v0 = vsel %vm4229_vm5, %v4231_v48, %v4227_v20  ;;  %4434 = vmatpush.bf16.msra.mxu0 %v6180_v42 }
 0xa84   :  { %4435 = vmatpush.bf16.msra.mxu0 %v6179_v50 }
 0xa85   :  { %v6424_v32 = vpop.eup %6423 }
 0xa86   :  { %v4239_v10 = vmul.f32 %v6424_v32, %v4232_v0 }
 0xa88   :  { %v4244_v40 = vpack.c.bf16 %v4239_v10, %v4239_v10  ;;  %4436 = vmatpush.bf16.msra.mxu0 %v6178_v55 }
 0xa8a   :  { %4253 = vmatmul.bf16.vlgmr.msrb.gmra.mxu0 %v4244_v40  ;;  %4266 = vmatmul.bf16.vlgmr.msra.gmra.mxu1 %v4244_v40 }
 0xa8b   :  { %4279 = vmatmul.bf16.vlgmr.msrb.gmra.mxu2 %v4244_v40  ;;  %4292 = vmatmul.bf16.vlgmr.msrb.gmra.mxu3 %v4244_v40 }
 0xa8c   :  { %4437 = vmatpush.bf16.msra.mxu0 %v6177_v2 }
 0xa90   :  { %4438 = vmatpush.bf16.msra.mxu0 %v6176_v58 }
 0xa94   :  { %4439 = vmatpush.bf16.msra.mxu0 %v6175_v9 }
 0xa98   :  { %4440 = vmatpush.bf16.msra.mxu0 %v6174_v18 }
 0xb07   :  { %v4254_v25 = vpop.f32.mrf.mxu0  ;;  %v4267_v63 = vpop.f32.mrf.mxu1 }
 0xb08   :  { %v4297_v45 = vadd.f32 %v4254_v25, %v3060_v6  ;;  %v4298_v41 = vadd.f32 %v4267_v63, %v3089_v35 }
 0xb0a   :  { %v5815_v51 = vmul.f32 -1.442695, %v4297_v45  ;;  %v5816_v60 = vmul.f32 -1.442695, %v4298_v41 }
 0xb0c   :  { %6425 = vpow2.f32 %v5815_v51 }
 0xb0d   :  { %6427 = vpow2.f32 %v5816_v60 }
 0xb0e   :  { %v4280_v5 = vpop.f32.mrf.mxu2  ;;  %v4293_v53 = vpop.f32.mrf.mxu3 }
 0xb0f   :  { %v4299_v1 = vadd.f32 %v4280_v5, %v3118_v30  ;;  %v4256_v49 = vpop.f32.mrf.mxu0  ;;  %v4269_v29 = vpop.f32.mrf.mxu1  ;;  %v4300_v37 = vadd.f32 %v4293_v53, %v3147_v33 }
 0xb11   :  { %v5817_v23 = vmul.f32 -1.442695, %v4299_v1 }
 0xb12   :  { %v6426_v24 = vpop.eup %6425 }
 0xb13   :  { %v6428_v15 = vpop.eup %6427  ;;  %v4310_v43 = vadd.f32 1.0, %v6426_v24  ;;  %6429 = vpow2.f32 %v5817_v23 }
 0xb14   :  { %v4311_v52 = vadd.f32 1.0, %v6428_v15 }
 0xb15   :  { %6431 = vrcp.f32 %v4310_v43  ;;  %v4324_v3 = vand.u32 2147483648, %v4310_v43  ;;  %v4322_v34 = vand.u32 2147483647, %v4310_v43  ;;  %vm4318_vm8 = vweird.f32 %v4310_v43 }
 0xb16   :  { %6433 = vrcp.f32 %v4311_v52  ;;  %v4282_v19 = vpop.f32.mrf.mxu2  ;;  %v4295_v21 = vpop.f32.mrf.mxu3  ;;  %v4339_v13 = vand.u32 2147483648, %v4311_v52  ;;  %v4337_v47 = vand.u32 2147483647, %v4311_v52  ;;  %vm4333_vm9 = vweird.f32 %v4311_v52 }
 0xb17   :  { %v4325_v57 = vor.u32 1.1754944e-38, %v4324_v3  ;;  %vm4323_vm12 = vcmp.eq.f32.partialorder %v4322_v34, 8.507059e+37 }
 0xb18   :  { %v4340_v44 = vor.u32 1.1754944e-38, %v4339_v13  ;;  %vm4338_vm13 = vcmp.eq.f32.partialorder %v4337_v47, 8.507059e+37 }
 0xb19   :  { %v6430_v14 = vpop.eup %6429 }
 0xb1a   :  { %v4312_v46 = vadd.f32 1.0, %v6430_v14 }
 0xb1b   :  { %v6432_v54 = vpop.eup %6431 }
 0xb1c   :  { %v6434_v61 = vpop.eup %6433  ;;  %v4314_v17 = vmul.f32 %v6432_v54, %v4310_v43  ;;  %6435 = vrcp.f32 %v4312_v46  ;;  %vm4319_vm6 = vweird.f32 %v6432_v54  ;;  %v4354_v55 = vand.u32 2147483648, %v4312_v46 }
 0xb1d   :  { %v4329_v56 = vmul.f32 %v6434_v61, %v4311_v52  ;;  %6437 = vtanh.f32 %v4300_v37  ;;  %vm4334_vm7 = vweird.f32 %v6434_v61  ;;  %vm4320_vm10 = vmor %vm4318_vm8, %vm4319_vm6  ;;  %vm4348_vm15 = vweird.f32 %v4312_v46 }
 0xb1e   :  { %v4315_v7 = vsub.f32 1.0, %v4314_v17  ;;  %vm4335_vm11 = vmor %vm4333_vm9, %vm4334_vm7  ;;  %v4352_v22 = vand.u32 2147483647, %v4312_v46  ;;  %v4355_v16 = vor.u32 1.1754944e-38, %v4354_v55 }
 0xb1f   :  { %v4330_v38 = vsub.f32 1.0, %v4329_v56 }
 0xb20   :  { %v4316_v36 = vmul.f32 %v6432_v54, %v4315_v7  ;;  %vm4353_vm1 = vcmp.eq.f32.partialorder %v4352_v22, 8.507059e+37 }
 0xb21   :  { %v4331_v31 = vmul.f32 %v6434_v61, %v4330_v38 }
 0xb22   :  { %v6436_v4 = vpop.eup %6435  ;;  %v4317_v8 = vadd.f32 %v6432_v54, %v4316_v36 }
 0xb23   :  { %v4344_v59 = vmul.f32 %v6436_v4, %v4312_v46  ;;  %v4332_v39 = vadd.f32 %v6434_v61, %v4331_v31  ;;  %v6438_v62 = vpop.eup %6437  ;;  %vm4349_vm14 = vweird.f32 %v6436_v4 }
 0xb24   :  { %v4321_v27 = vsel %vm4320_vm10, %v6432_v54, %v4317_v8  ;;  %vm4350_vm0 = vmor %vm4348_vm15, %vm4349_vm14 }
 0xb25   :  { %v4345_v20 = vsub.f32 1.0, %v4344_v59  ;;  %v4326_v48 = vsel %vm4323_vm12, %v4325_v57, %v4321_v27  ;;  %v4336_v32 = vsel %vm4335_vm11, %v6434_v61, %v4332_v39 }
 0xb26   :  { %v4341_v0 = vsel %vm4338_vm13, %v4340_v44, %v4336_v32  ;;  %v4360_v10 = vmul.f32 %v6438_v62, %v4326_v48 }
 0xb27   :  { %v4346_v40 = vmul.f32 %v6436_v4, %v4345_v20  ;;  %v4359_v28 = vmul.f32 %v4341_v0, %v9247_v26  ;;  %v6184_v26 = vld [vmem:[%s9296_s8] ss:$0 sm:$0xff] }
 0xb29   :  { %v4361_v42 = vadd.f32 %v4360_v10, %v4359_v28  ;;  %v4347_v50 = vadd.f32 %v6436_v4, %v4346_v40 }
 0xb2b   :  { %6439 = vtanh.f32 %v4361_v42  ;;  %v4351_v6 = vsel %vm4350_vm0, %v6436_v4, %v4347_v50 }
 0xb2c   :  { %v4356_v2 = vsel %vm4353_vm1, %v4355_v16, %v4351_v6 }
 0xb31   :  { %v6440_v35 = vpop.eup %6439 }
 0xb32   :  { %v4363_v25 = vmul.f32 %v6440_v35, %v4356_v2 }
 0xb34   :  { %v4364_v63 = vpack.c.bf16 %v4363_v25, %v4363_v25 }
 0xb36   :  { %4441 = vmatmul.bf16.vlgmr.msra.gmra.mxu0 %v4364_v63 }
 0xbb3   :  { %v4442_v45 = vpop.f32.mrf.mxu0 }
 0xbb4   :  { %v4443_v41 = vadd.f32 %v6184_v26, %v4442_v45 }
 0xbb6   :  { %4446 = vst [vmem:[%s9298_s9] sm:$0xff] %v4443_v41 }
 0xbbb   :  { %v4444_v51 = vpop.f32.mrf.mxu0 }

</bundles_post_ra>
